<compile_context>
chip_gen: v5e
topology: v5e:2x2
jax: 0.10.0
libtpu: 0.0.40
codegen_flags: <defaults>
</compile_context>

<pallas_src>
import jax
import jax.numpy as jnp
from jax import lax
from jax.experimental import pallas as pl
from jax.experimental.pallas import tpu as pltpu

# ---------------- model configuration (small, consistent with the module) ----
BATCH       = 2
NUM_PATCH   = 2
PATCH_SIZE  = 64
P           = 8                      # ViT.P
DIM         = 32
DEPTH       = 3
HEADS       = 4
DIM_HEAD    = DIM // HEADS           # 8
INNER       = HEADS * DIM_HEAD       # 32
MLP_DIM     = 128
NUM_CLASSES = 49                     # number_gesture=49, class_rest=False
NC_PAD      = 128                    # lane-dense padded class dim
SEQ_IN      = NUM_PATCH * P          # 16 patch tokens
P_IN        = PATCH_SIZE // P        # 8 features per token
N_TOK       = SEQ_IN + 1             # 17 (cls token + patches)
TOT         = BATCH * N_TOK          # 34 fused token rows
LN_EPS      = 1e-5
ATT_SCALE   = DIM_HEAD ** -0.5
MASK_NEG    = -1e30

# ---------------- packed-slab row layout --------------------------------------
# bf16 weight slab (RW_TOT, 128): every weight at an 8-aligned row offset,
# lane offset 0, natural lane width (zero padded to 128 lanes).
RW_PE1       = 0                         # (P_IN, 4*DIM) = (8, 128)
RW_PE2       = RW_PE1 + P_IN             # (4*DIM, DIM)  = (128, 32)
RW_LAYER0    = RW_PE2 + 4 * DIM          # per-layer block starts here (136)
LW_QK        = 0                         # (DIM, 2*INNER) = (32, 64)   [Q | K]
LW_VWO       = DIM                       # (DIM, HEADS*DIM) = (32, 128) [Wv_h @ Wo_h per head]
LW_F1        = 2 * DIM                   # (DIM, MLP_DIM) = (32, 128)
LW_F2        = 3 * DIM                   # (MLP_DIM, DIM) = (128, 32)
LAYER_W_ROWS = 3 * DIM + MLP_DIM         # 224
RW_HEAD      = RW_LAYER0 + DEPTH * LAYER_W_ROWS   # (DIM, NC_PAD) = (32, 128); row 808
RW_TOT       = RW_HEAD + DIM                       # 840

# f32 constants slab (RC_TOT, 128): pos, mask and every bias / LN vector.
RC_POS       = 0                         # (TOT, DIM)
RC_MASK      = 40                        # (TOT, TOT) block-diagonal additive bias
RC_PEB1      = 80                        # (1, 128)
RC_PEB2      = 81                        # (1, DIM)
RC_LNFG      = 82                        # (1, DIM)
RC_LNFB      = 83                        # (1, DIM)
RC_BH        = 84                        # (1, 128)
RC_LAYER0    = 88                        # per-layer vector block starts here
LAYER_C_ROWS = 8                         # [aln_g, aln_b, bo, fln_g, fln_b, bf1, bf2]
RC_TOT       = RC_LAYER0 + DEPTH * LAYER_C_ROWS    # 112


# ---------------- shared math helpers (used by kernel AND reference) ---------
def _layernorm(x, g, b):
    mu = jnp.mean(x, axis=-1, keepdims=True)
    var = jnp.mean(jnp.square(x - mu), axis=-1, keepdims=True)
    return (x - mu) * lax.rsqrt(var + LN_EPS) * g + b


def _gelu(x):
    # tanh-approximation GELU: transcendental goes to the EUP slot.
    c = 0.7978845608028654  # sqrt(2/pi)
    return 0.5 * x * (1.0 + jnp.tanh(c * (x + 0.044715 * x * x * x)))


# ---------------- the Pallas kernel ------------------------------------------
# Single grid step: patch-embedding MLP, DEPTH transformer blocks, final
# LayerNorm + classifier head on the fused (TOT, DIM) token matrix.
# Token row order: [cls_b0, cls_b1, patches_b0 (16), patches_b1 (16)].
def vit_kernel(x_ref, w_ref, c_ref, out_ref):
    f32 = jnp.float32
    bf = jnp.bfloat16

    pos = c_ref[RC_POS:RC_POS + TOT, 0:DIM]            # (TOT, DIM) cls fold included
    mask = c_ref[RC_MASK:RC_MASK + TOT, 0:TOT]          # (TOT, TOT) block-diag bias

    # --- patch embedding: Linear -> ReLU -> Linear (bf16 matmuls, f32 accum) --
    # cls rows are zero inputs; their constant embedding relu(b1)@W2+b2 is
    # pre-subtracted from pos (see pack_params), so the plain add below
    # reproduces cat(cls, tok) + pos.
    h = jnp.dot(x_ref[...].astype(bf), w_ref[RW_PE1:RW_PE1 + P_IN, :],
                preferred_element_type=f32) + c_ref[RC_PEB1:RC_PEB1 + 1, :]
    h = jnp.maximum(h, 0.0)
    x = jnp.dot(h.astype(bf), w_ref[RW_PE2:RW_PE2 + 4 * DIM, 0:DIM],
                preferred_element_type=f32) + c_ref[RC_PEB2:RC_PEB2 + 1, 0:DIM]
    x = x + pos                                         # (TOT, DIM) f32

    # --- transformer blocks ---------------------------------------------------
    for l in range(DEPTH):
        lw = RW_LAYER0 + l * LAYER_W_ROWS
        lc = RC_LAYER0 + l * LAYER_C_ROWS

        # Attention: fused Q|K projection + fused (V @ Wo) per-head projection.
        xn = _layernorm(x, c_ref[lc:lc + 1, 0:DIM], c_ref[lc + 1:lc + 2, 0:DIM])
        xn_bf = xn.astype(bf)
        qk = jnp.dot(xn_bf, w_ref[lw + LW_QK:lw + LW_QK + DIM, 0:2 * INNER],
                     preferred_element_type=f32)        # (TOT, 64) = [Q | K]
        vwo = jnp.dot(xn_bf, w_ref[lw + LW_VWO:lw + LW_VWO + DIM, :],
                      preferred_element_type=f32)       # (TOT, 128) = [xn@Wv_h@Wo_h]*4
        for hh in range(HEADS):
            q_h = qk[:, hh * DIM_HEAD:(hh + 1) * DIM_HEAD].astype(bf)
            k_h = qk[:, INNER + hh * DIM_HEAD:INNER + (hh + 1) * DIM_HEAD].astype(bf)
            dots = jnp.einsum('nd,md->nm', q_h, k_h,
                              preferred_element_type=f32) * ATT_SCALE + mask
            dots = dots - jnp.max(dots, axis=-1, keepdims=True)
            e = jnp.exp(dots)
            attn = e * pl.reciprocal(jnp.sum(e, axis=-1, keepdims=True), approx=True)
            # accumulate this head's contribution straight into the residual
            # (output projection already folded into the vwo weight).
            x = x + jnp.dot(attn.astype(bf),
                            vwo[:, hh * DIM:(hh + 1) * DIM].astype(bf),
                            preferred_element_type=f32)
        x = x + c_ref[lc + 2:lc + 3, 0:DIM]              # to_out bias

        # FeedForward
        xn = _layernorm(x, c_ref[lc + 3:lc + 4, 0:DIM], c_ref[lc + 4:lc + 5, 0:DIM])
        hf = jnp.dot(xn.astype(bf), w_ref[lw + LW_F1:lw + LW_F1 + DIM, :],
                     preferred_element_type=f32) + c_ref[lc + 5:lc + 6, :]
        hf = _gelu(hf)
        x = x + jnp.dot(hf.astype(bf), w_ref[lw + LW_F2:lw + LW_F2 + MLP_DIM, 0:DIM],
                        preferred_element_type=f32) + c_ref[lc + 6:lc + 7, 0:DIM]

    # --- final LayerNorm + classifier head on the cls rows only ---------------
    # Both cls tokens sit at rows 0..1, so the aligned first 8-row tile is
    # enough (rows 2..7 are don't-care patch rows).  Output stays lane-dense.
    cls8 = x[0:8, :]
    xn = _layernorm(cls8, c_ref[RC_LNFG:RC_LNFG + 1, 0:DIM],
                    c_ref[RC_LNFB:RC_LNFB + 1, 0:DIM])
    out_ref[...] = jnp.dot(xn.astype(bf), w_ref[RW_HEAD:RW_HEAD + DIM, :],
                           preferred_element_type=f32) + c_ref[RC_BH:RC_BH + 1, :]


# ---------------- wrapper ------------------------------------------------------
@jax.jit
def vit_pallas(x, w_slab, c_slab):
    """x: (BATCH, PATCH_SIZE, NUM_PATCH) float32, PyTorch input convention."""
    B = x.shape[0]
    # glue: permute(0,2,1) + reshape(B, num_patch*P, patch_size/P), then order
    # rows as [cls_b0, cls_b1, patches_b0, patches_b1] with zero cls rows.
    xr = jnp.transpose(x, (0, 2, 1)).reshape(B * SEQ_IN, P_IN)
    x_ext = jnp.concatenate([jnp.zeros((B, P_IN), jnp.float32), xr], axis=0)  # (TOT, P_IN)

    out = pl.pallas_call(
        vit_kernel,
        out_shape=jax.ShapeDtypeStruct((8, NC_PAD), jnp.float32),
        grid=(1,),
        in_specs=[pl.BlockSpec((TOT, P_IN), lambda i: (0, 0)),
                  pl.BlockSpec((RW_TOT, 128), lambda i: (0, 0)),
                  pl.BlockSpec((RC_TOT, 128), lambda i: (0, 0))],
        out_specs=pl.BlockSpec((8, NC_PAD), lambda i: (0, 0)),
        compiler_params=pltpu.CompilerParams(dimension_semantics=("arbitrary",)),
    )(x_ext, w_slab, c_slab)
    # rows 0..B-1 are the cls tokens of batches 0..B-1; drop the lane padding.
    return out[:B, :NUM_CLASSES]


# ---------------- deterministic synthetic parameters ---------------------------
def init_params(key):
    names = ['pe_w1', 'pe_b1', 'pe_w2', 'pe_b2', 'cls', 'pos',
             'aln_g', 'aln_b', 'wqkv', 'wo', 'bo',
             'fln_g', 'fln_b', 'wf1', 'bf1', 'wf2', 'bf2',
             'lnf_g', 'lnf_b', 'wh', 'bh']
    keys = dict(zip(names, jax.random.split(key, len(names))))
    n = lambda k, shape, s=0.1: (s * jax.random.normal(keys[k], shape)).astype(jnp.float32)
    bf = jnp.bfloat16

    p = {
        # matmul weights stored as bf16 (the reference upcasts the SAME values)
        'pe_w1': n('pe_w1', (P_IN, 4 * DIM)).astype(bf),
        'pe_b1': n('pe_b1', (1, 4 * DIM), 0.05),
        'pe_w2': n('pe_w2', (4 * DIM, DIM)).astype(bf),
        'pe_b2': n('pe_b2', (1, DIM), 0.05),
        'cls':   n('cls',   (1, 1, DIM)),
        'pos':   n('pos',   (1, N_TOK, DIM)),
        'aln_g': 1.0 + n('aln_g', (DEPTH, 1, DIM), 0.05),
        'aln_b': n('aln_b', (DEPTH, 1, DIM), 0.05),
        # fused QKV weight, PyTorch to_qkv layout: [Q(h0..h3) | K(h0..h3) | V(h0..h3)]
        'wqkv':  n('wqkv', (DEPTH, DIM, 3 * INNER)).astype(bf),
        # output projection (rows ordered (head, dim_head) like the concat)
        'wo':    n('wo', (DEPTH, INNER, DIM)).astype(bf),
        'bo':    n('bo', (DEPTH, 1, DIM), 0.05),
        'fln_g': 1.0 + n('fln_g', (DEPTH, 1, DIM), 0.05),
        'fln_b': n('fln_b', (DEPTH, 1, DIM), 0.05),
        'wf1':   n('wf1', (DEPTH, DIM, MLP_DIM)).astype(bf),
        'bf1':   n('bf1', (DEPTH, 1, MLP_DIM), 0.05),
        'wf2':   n('wf2', (DEPTH, MLP_DIM, DIM)).astype(bf),
        'bf2':   n('bf2', (DEPTH, 1, DIM), 0.05),
        'lnf_g': 1.0 + n('lnf_g', (1, DIM), 0.05),
        'lnf_b': n('lnf_b', (1, DIM), 0.05),
    }
    wh = n('wh', (DIM, NUM_CLASSES))
    bh = n('bh', (1, NUM_CLASSES), 0.05)
    # lane-dense classifier weights (pad classes to 128 lanes)
    p['wh_pad'] = jnp.zeros((DIM, NC_PAD), jnp.float32).at[:, :NUM_CLASSES].set(wh).astype(bf)
    p['bh_pad'] = jnp.zeros((1, NC_PAD), jnp.float32).at[:, :NUM_CLASSES].set(bh)
    return p


# ---------------- one-time parameter / constant packing ------------------------
def pack_params(p):
    """Builds the two kernel operand slabs. Runs once, outside the hot path."""
    f32 = jnp.float32

    # ---- bf16 weight slab -----------------------------------------------------
    w = jnp.zeros((RW_TOT, 128), f32)
    w = w.at[RW_PE1:RW_PE1 + P_IN, :].set(p['pe_w1'].astype(f32))
    w = w.at[RW_PE2:RW_PE2 + 4 * DIM, :DIM].set(p['pe_w2'].astype(f32))
    for l in range(DEPTH):
        lw = RW_LAYER0 + l * LAYER_W_ROWS
        wqkv = p['wqkv'][l].astype(f32)
        wo = p['wo'][l].astype(f32)
        # Q | K columns as-is
        w = w.at[lw + LW_QK:lw + LW_QK + DIM, :2 * INNER].set(wqkv[:, :2 * INNER])
        # fold the output projection into V per head: Wvo_h = Wv_h @ Wo_h
        wv = wqkv[:, 2 * INNER:3 * INNER]
        for hh in range(HEADS):
            wvo_h = wv[:, hh * DIM_HEAD:(hh + 1) * DIM_HEAD] @ wo[hh * DIM_HEAD:(hh + 1) * DIM_HEAD, :]
            w = w.at[lw + LW_VWO:lw + LW_VWO + DIM, hh * DIM:(hh + 1) * DIM].set(wvo_h)
        w = w.at[lw + LW_F1:lw + LW_F1 + DIM, :MLP_DIM].set(p['wf1'][l].astype(f32))
        w = w.at[lw + LW_F2:lw + LW_F2 + MLP_DIM, :DIM].set(p['wf2'][l].astype(f32))
    w = w.at[RW_HEAD:RW_HEAD + DIM, :].set(p['wh_pad'].astype(f32))
    w_slab = w.astype(jnp.bfloat16)

    # ---- f32 constants slab -----------------------------------------------------
    c = jnp.zeros((RC_TOT, 128), f32)
    # Fold cls token into the positional embedding so the kernel needs no
    # sublane concatenation: the kernel runs the patch-embedding MLP on zero
    # cls rows, whose (constant) output relu(b1)@W2 + b2 is subtracted here.
    # TODO(synk): this fold is exact for this patch-embed structure only.
    h0 = jnp.maximum(p['pe_b1'], 0.0).astype(jnp.bfloat16).astype(f32)
    zero_emb = h0 @ p['pe_w2'].astype(f32) + p['pe_b2']                 # (1, DIM)
    cls_row = p['pos'][0, 0] + p['cls'][0, 0] - zero_emb[0]             # (DIM,)
    pos_rows = jnp.concatenate(
        [jnp.broadcast_to(cls_row[None, :], (BATCH, DIM)),              # cls rows
         jnp.tile(p['pos'][0, 1:], (BATCH, 1))], axis=0)                # patch rows
    c = c.at[RC_POS:RC_POS + TOT, :DIM].set(pos_rows)

    # block-diagonal batch mask for token order [cls_b0, cls_b1, patches_b0, patches_b1]
    batch_ids = jnp.concatenate([jnp.arange(BATCH, dtype=jnp.int32),
                                 jnp.repeat(jnp.arange(BATCH, dtype=jnp.int32), SEQ_IN)])
    mask_bias = jnp.where(batch_ids[:, None] == batch_ids[None, :], 0.0, MASK_NEG).astype(f32)
    c = c.at[RC_MASK:RC_MASK + TOT, :TOT].set(mask_bias)

    c = c.at[RC_PEB1, :].set(p['pe_b1'][0])
    c = c.at[RC_PEB2, :DIM].set(p['pe_b2'][0])
    c = c.at[RC_LNFG, :DIM].set(p['lnf_g'][0])
    c = c.at[RC_LNFB, :DIM].set(p['lnf_b'][0])
    c = c.at[RC_BH, :].set(p['bh_pad'][0])
    for l in range(DEPTH):
        lc = RC_LAYER0 + l * LAYER_C_ROWS
        c = c.at[lc + 0, :DIM].set(p['aln_g'][l, 0])
        c = c.at[lc + 1, :DIM].set(p['aln_b'][l, 0])
        c = c.at[lc + 2, :DIM].set(p['bo'][l, 0])
        c = c.at[lc + 3, :DIM].set(p['fln_g'][l, 0])
        c = c.at[lc + 4, :DIM].set(p['fln_b'][l, 0])
        c = c.at[lc + 5, :].set(p['bf1'][l, 0])
        c = c.at[lc + 6, :DIM].set(p['bf2'][l, 0])
    return w_slab, c


# ---------------- plain-JAX reference (mirrors the PyTorch forward) ------------
def vit_reference(x, p):
    f32 = jnp.float32
    B = x.shape[0]
    xr = jnp.transpose(x, (0, 2, 1)).reshape(B, SEQ_IN, P_IN)
    h = jnp.maximum(xr @ p['pe_w1'].astype(f32) + p['pe_b1'][0], 0.0)
    tok = h @ p['pe_w2'].astype(f32) + p['pe_b2'][0]
    cls = jnp.broadcast_to(p['cls'], (B, 1, DIM))
    xt = jnp.concatenate([cls, tok], axis=1) + p['pos']
    for l in range(DEPTH):
        xn = _layernorm(xt, p['aln_g'][l], p['aln_b'][l])
        qkv = xn @ p['wqkv'][l].astype(f32)                               # (B, N, 3*INNER)
        q, k, v = jnp.split(qkv, 3, axis=-1)
        split_heads = lambda t: t.reshape(B, N_TOK, HEADS, DIM_HEAD).transpose(0, 2, 1, 3)
        q, k, v = split_heads(q), split_heads(k), split_heads(v)
        dots = jnp.einsum('bhnd,bhmd->bhnm', q, k) * ATT_SCALE
        attn = jax.nn.softmax(dots, axis=-1)
        ov = jnp.einsum('bhnm,bhmd->bhnd', attn, v)
        ov = ov.transpose(0, 2, 1, 3).reshape(B, N_TOK, INNER)
        xt = ov @ p['wo'][l].astype(f32) + p['bo'][l] + xt
        xn = _layernorm(xt, p['fln_g'][l], p['fln_b'][l])
        hf = _gelu(xn @ p['wf1'][l].astype(f32) + p['bf1'][l])
        xt = hf @ p['wf2'][l].astype(f32) + p['bf2'][l] + xt
    x0 = _layernorm(xt[:, 0], p['lnf_g'], p['lnf_b'])
    return (x0 @ p['wh_pad'].astype(f32) + p['bh_pad'][0])[:, :NUM_CLASSES]


# ---------------- main ----------------------------------------------------------
if __name__ == "__main__":
    key = jax.random.PRNGKey(0)
    pkey, xkey = jax.random.split(key)
    params = init_params(pkey)
    w_slab, c_slab = pack_params(params)       # one-time packing (hoisted off the hot path)
    x = jax.random.normal(xkey, (BATCH, PATCH_SIZE, NUM_PATCH), dtype=jnp.float32)

    out = jax.block_until_ready(vit_pallas(x, w_slab, c_slab))
    ref = jax.block_until_ready(vit_reference(x, params))

    assert out.shape == (BATCH, NUM_CLASSES), out.shape
    err = float(jnp.max(jnp.abs(out - ref)))
    assert err < 5e-2, f"mismatch vs reference: max abs err = {err}"
    print("KERNEL_OK")
</pallas_src>

<mosaic_0001>
module attributes {stable_mosaic.version = 11 : i64} {
  func.func @vit_kernel(%arg0: i32, %arg1: memref<34x8xf32, #tpu.memory_space<vmem>>, %arg2: memref<840x128xbf16, #tpu.memory_space<vmem>>, %arg3: memref<112x128xf32, #tpu.memory_space<vmem>>, %arg4: memref<8x128xf32, #tpu.memory_space<vmem>>) attributes {dimension_semantics = [#tpu.dimension_semantics<arbitrary>], iteration_bounds = array<i64: 1>, scalar_prefetch = 0 : i64, scratch_operands = 0 : i64, tpu.core_type = #tpu.core_type<tc>, window_params = [{pipeline_mode = #tpu.pipeline_mode<synchronous>, transform_indices = @transform_0, window_bounds = array<i64: 34, 8>}, {pipeline_mode = #tpu.pipeline_mode<synchronous>, transform_indices = @transform_1, window_bounds = array<i64: 840, 128>}, {pipeline_mode = #tpu.pipeline_mode<synchronous>, transform_indices = @transform_2, window_bounds = array<i64: 112, 128>}, {pipeline_mode = #tpu.pipeline_mode<synchronous>, transform_indices = @transform_3, window_bounds = array<i64: 8, 128>}]} {
    %c0 = arith.constant 0 : index
    %c0_0 = arith.constant 0 : index
    %0 = vector.load %arg3[%c0, %c0_0] : memref<112x128xf32, #tpu.memory_space<vmem>>, vector<34x32xf32>
    %c40 = arith.constant 40 : index
    %c0_1 = arith.constant 0 : index
    %1 = vector.load %arg3[%c40, %c0_1] : memref<112x128xf32, #tpu.memory_space<vmem>>, vector<34x34xf32>
    %c0_2 = arith.constant 0 : index
    %c0_3 = arith.constant 0 : index
    %2 = vector.load %arg1[%c0_2, %c0_3] : memref<34x8xf32, #tpu.memory_space<vmem>>, vector<34x8xf32>
    %3 = arith.truncf %2 : vector<34x8xf32> to vector<34x8xbf16>
    %c0_4 = arith.constant 0 : index
    %c0_5 = arith.constant 0 : index
    %4 = vector.load %arg2[%c0_4, %c0_5] : memref<840x128xbf16, #tpu.memory_space<vmem>>, vector<8x128xbf16>
    %cst = arith.constant dense<0.000000e+00> : vector<34x128xf32>
    %5 = tpu.matmul %3, %4, %cst {dimension_numbers = #tpu.dot_dimension_numbers<[1], [0], [0], [1], [0, 0, 1, 1], [], []>} : vector<34x8xbf16>, vector<8x128xbf16>, vector<34x128xf32> -> vector<34x128xf32>
    %c80 = arith.constant 80 : index
    %c0_6 = arith.constant 0 : index
    %6 = vector.load %arg3[%c80, %c0_6] : memref<112x128xf32, #tpu.memory_space<vmem>>, vector<1x128xf32>
    %7 = vector.broadcast %6 : vector<1x128xf32> to vector<34x128xf32>
    %8 = arith.addf %5, %7 : vector<34x128xf32>
    %cst_7 = arith.constant 0.000000e+00 : f32
    %9 = vector.broadcast %cst_7 : f32 to vector<34x128xf32>
    %10 = arith.maximumf %8, %9 : vector<34x128xf32>
    %11 = arith.truncf %10 : vector<34x128xf32> to vector<34x128xbf16>
    %c8 = arith.constant 8 : index
    %c0_8 = arith.constant 0 : index
    %12 = vector.load %arg2[%c8, %c0_8] : memref<840x128xbf16, #tpu.memory_space<vmem>>, vector<128x32xbf16>
    %cst_9 = arith.constant dense<0.000000e+00> : vector<34x32xf32>
    %13 = tpu.matmul %11, %12, %cst_9 {dimension_numbers = #tpu.dot_dimension_numbers<[1], [0], [0], [1], [0, 0, 1, 1], [], []>} : vector<34x128xbf16>, vector<128x32xbf16>, vector<34x32xf32> -> vector<34x32xf32>
    %c81 = arith.constant 81 : index
    %c0_10 = arith.constant 0 : index
    %14 = vector.load %arg3[%c81, %c0_10] : memref<112x128xf32, #tpu.memory_space<vmem>>, vector<1x32xf32>
    %15 = vector.broadcast %14 : vector<1x32xf32> to vector<34x32xf32>
    %16 = arith.addf %13, %15 : vector<34x32xf32>
    %17 = arith.addf %16, %0 : vector<34x32xf32>
    %c88 = arith.constant 88 : index
    %c0_11 = arith.constant 0 : index
    %18 = vector.load %arg3[%c88, %c0_11] : memref<112x128xf32, #tpu.memory_space<vmem>>, vector<1x32xf32>
    %c89 = arith.constant 89 : index
    %c0_12 = arith.constant 0 : index
    %19 = vector.load %arg3[%c89, %c0_12] : memref<112x128xf32, #tpu.memory_space<vmem>>, vector<1x32xf32>
    %cst_13 = arith.constant dense<0.000000e+00> : vector<34xf32>
    %20 = vector.multi_reduction <add>, %17, %cst_13 [1] : vector<34x32xf32> to vector<34xf32>
    %21 = vector.shape_cast %20 : vector<34xf32> to vector<34x1xf32>
    %cst_14 = arith.constant 3.200000e+01 : f32
    %22 = vector.broadcast %cst_14 : f32 to vector<34x1xf32>
    %23 = arith.divf %21, %22 : vector<34x1xf32>
    %24 = vector.broadcast %23 : vector<34x1xf32> to vector<34x32xf32>
    %25 = arith.subf %17, %24 : vector<34x32xf32>
    %26 = arith.mulf %25, %25 : vector<34x32xf32>
    %cst_15 = arith.constant dense<0.000000e+00> : vector<34xf32>
    %27 = vector.multi_reduction <add>, %26, %cst_15 [1] : vector<34x32xf32> to vector<34xf32>
    %28 = vector.shape_cast %27 : vector<34xf32> to vector<34x1xf32>
    %cst_16 = arith.constant 3.200000e+01 : f32
    %29 = vector.broadcast %cst_16 : f32 to vector<34x1xf32>
    %30 = arith.divf %28, %29 : vector<34x1xf32>
    %31 = vector.broadcast %23 : vector<34x1xf32> to vector<34x32xf32>
    %32 = arith.subf %17, %31 : vector<34x32xf32>
    %cst_17 = arith.constant 9.99999974E-6 : f32
    %33 = vector.broadcast %cst_17 : f32 to vector<34x1xf32>
    %34 = arith.addf %30, %33 : vector<34x1xf32>
    %35 = math.rsqrt %34 : vector<34x1xf32>
    %36 = vector.broadcast %35 : vector<34x1xf32> to vector<34x32xf32>
    %37 = arith.mulf %32, %36 : vector<34x32xf32>
    %38 = vector.broadcast %18 : vector<1x32xf32> to vector<34x32xf32>
    %39 = arith.mulf %37, %38 : vector<34x32xf32>
    %40 = vector.broadcast %19 : vector<1x32xf32> to vector<34x32xf32>
    %41 = arith.addf %39, %40 : vector<34x32xf32>
    %42 = arith.truncf %41 : vector<34x32xf32> to vector<34x32xbf16>
    %c136 = arith.constant 136 : index
    %c0_18 = arith.constant 0 : index
    %43 = vector.load %arg2[%c136, %c0_18] : memref<840x128xbf16, #tpu.memory_space<vmem>>, vector<32x64xbf16>
    %cst_19 = arith.constant dense<0.000000e+00> : vector<34x64xf32>
    %44 = tpu.matmul %42, %43, %cst_19 {dimension_numbers = #tpu.dot_dimension_numbers<[1], [0], [0], [1], [0, 0, 1, 1], [], []>} : vector<34x32xbf16>, vector<32x64xbf16>, vector<34x64xf32> -> vector<34x64xf32>
    %c168 = arith.constant 168 : index
    %c0_20 = arith.constant 0 : index
    %45 = vector.load %arg2[%c168, %c0_20] : memref<840x128xbf16, #tpu.memory_space<vmem>>, vector<32x128xbf16>
    %cst_21 = arith.constant dense<0.000000e+00> : vector<34x128xf32>
    %46 = tpu.matmul %42, %45, %cst_21 {dimension_numbers = #tpu.dot_dimension_numbers<[1], [0], [0], [1], [0, 0, 1, 1], [], []>} : vector<34x32xbf16>, vector<32x128xbf16>, vector<34x128xf32> -> vector<34x128xf32>
    %47 = vector.extract_strided_slice %44 {offsets = [0, 0], sizes = [34, 8], strides = [1, 1]} : vector<34x64xf32> to vector<34x8xf32>
    %48 = arith.truncf %47 : vector<34x8xf32> to vector<34x8xbf16>
    %49 = vector.extract_strided_slice %44 {offsets = [0, 32], sizes = [34, 8], strides = [1, 1]} : vector<34x64xf32> to vector<34x8xf32>
    %50 = arith.truncf %49 : vector<34x8xf32> to vector<34x8xbf16>
    "tpu.trace_start"() <{level = 10 : i32, message = "nd,md->nm"}> : () -> ()
    %cst_22 = arith.constant dense<0.000000e+00> : vector<34x34xf32>
    %51 = tpu.matmul %48, %50, %cst_22 {dimension_numbers = #tpu.dot_dimension_numbers<[1], [1], [0], [0], [0, 0, 1, 0], [], []>} : vector<34x8xbf16>, vector<34x8xbf16>, vector<34x34xf32> -> vector<34x34xf32>
    "tpu.trace_stop"() : () -> ()
    %cst_23 = arith.constant 0.353553385 : f32
    %52 = vector.broadcast %cst_23 : f32 to vector<34x34xf32>
    %53 = arith.mulf %51, %52 : vector<34x34xf32>
    %54 = arith.addf %53, %1 : vector<34x34xf32>
    %cst_24 = arith.constant dense<0xFF800000> : vector<34xf32>
    %55 = vector.multi_reduction <maximumf>, %54, %cst_24 [1] : vector<34x34xf32> to vector<34xf32>
    %56 = vector.shape_cast %55 : vector<34xf32> to vector<34x1xf32>
    %57 = vector.broadcast %56 : vector<34x1xf32> to vector<34x34xf32>
    %58 = arith.subf %54, %57 : vector<34x34xf32>
    %59 = math.exp %58 : vector<34x34xf32>
    %cst_25 = arith.constant dense<0.000000e+00> : vector<34xf32>
    %60 = vector.multi_reduction <add>, %59, %cst_25 [1] : vector<34x34xf32> to vector<34xf32>
    %61 = vector.shape_cast %60 : vector<34xf32> to vector<34x1xf32>
    %62 = tpu.reciprocal %61 {approx = true} : vector<34x1xf32> -> vector<34x1xf32>
    %63 = vector.broadcast %62 : vector<34x1xf32> to vector<34x34xf32>
    %64 = arith.mulf %59, %63 : vector<34x34xf32>
    %65 = arith.truncf %64 : vector<34x34xf32> to vector<34x34xbf16>
    %66 = vector.extract_strided_slice %46 {offsets = [0, 0], sizes = [34, 32], strides = [1, 1]} : vector<34x128xf32> to vector<34x32xf32>
    %67 = arith.truncf %66 : vector<34x32xf32> to vector<34x32xbf16>
    %cst_26 = arith.constant dense<0.000000e+00> : vector<34x32xf32>
    %68 = tpu.matmul %65, %67, %cst_26 {dimension_numbers = #tpu.dot_dimension_numbers<[1], [0], [0], [1], [0, 0, 1, 1], [], []>} : vector<34x34xbf16>, vector<34x32xbf16>, vector<34x32xf32> -> vector<34x32xf32>
    %69 = arith.addf %17, %68 : vector<34x32xf32>
    %70 = vector.extract_strided_slice %44 {offsets = [0, 8], sizes = [34, 8], strides = [1, 1]} : vector<34x64xf32> to vector<34x8xf32>
    %71 = arith.truncf %70 : vector<34x8xf32> to vector<34x8xbf16>
    %72 = vector.extract_strided_slice %44 {offsets = [0, 40], sizes = [34, 8], strides = [1, 1]} : vector<34x64xf32> to vector<34x8xf32>
    %73 = arith.truncf %72 : vector<34x8xf32> to vector<34x8xbf16>
    "tpu.trace_start"() <{level = 10 : i32, message = "nd,md->nm"}> : () -> ()
    %cst_27 = arith.constant dense<0.000000e+00> : vector<34x34xf32>
    %74 = tpu.matmul %71, %73, %cst_27 {dimension_numbers = #tpu.dot_dimension_numbers<[1], [1], [0], [0], [0, 0, 1, 0], [], []>} : vector<34x8xbf16>, vector<34x8xbf16>, vector<34x34xf32> -> vector<34x34xf32>
    "tpu.trace_stop"() : () -> ()
    %cst_28 = arith.constant 0.353553385 : f32
    %75 = vector.broadcast %cst_28 : f32 to vector<34x34xf32>
    %76 = arith.mulf %74, %75 : vector<34x34xf32>
    %77 = arith.addf %76, %1 : vector<34x34xf32>
    %cst_29 = arith.constant dense<0xFF800000> : vector<34xf32>
    %78 = vector.multi_reduction <maximumf>, %77, %cst_29 [1] : vector<34x34xf32> to vector<34xf32>
    %79 = vector.shape_cast %78 : vector<34xf32> to vector<34x1xf32>
    %80 = vector.broadcast %79 : vector<34x1xf32> to vector<34x34xf32>
    %81 = arith.subf %77, %80 : vector<34x34xf32>
    %82 = math.exp %81 : vector<34x34xf32>
    %cst_30 = arith.constant dense<0.000000e+00> : vector<34xf32>
    %83 = vector.multi_reduction <add>, %82, %cst_30 [1] : vector<34x34xf32> to vector<34xf32>
    %84 = vector.shape_cast %83 : vector<34xf32> to vector<34x1xf32>
    %85 = tpu.reciprocal %84 {approx = true} : vector<34x1xf32> -> vector<34x1xf32>
    %86 = vector.broadcast %85 : vector<34x1xf32> to vector<34x34xf32>
    %87 = arith.mulf %82, %86 : vector<34x34xf32>
    %88 = arith.truncf %87 : vector<34x34xf32> to vector<34x34xbf16>
    %89 = vector.extract_strided_slice %46 {offsets = [0, 32], sizes = [34, 32], strides = [1, 1]} : vector<34x128xf32> to vector<34x32xf32>
    %90 = arith.truncf %89 : vector<34x32xf32> to vector<34x32xbf16>
    %cst_31 = arith.constant dense<0.000000e+00> : vector<34x32xf32>
    %91 = tpu.matmul %88, %90, %cst_31 {dimension_numbers = #tpu.dot_dimension_numbers<[1], [0], [0], [1], [0, 0, 1, 1], [], []>} : vector<34x34xbf16>, vector<34x32xbf16>, vector<34x32xf32> -> vector<34x32xf32>
    %92 = arith.addf %69, %91 : vector<34x32xf32>
    %93 = vector.extract_strided_slice %44 {offsets = [0, 16], sizes = [34, 8], strides = [1, 1]} : vector<34x64xf32> to vector<34x8xf32>
    %94 = arith.truncf %93 : vector<34x8xf32> to vector<34x8xbf16>
    %95 = vector.extract_strided_slice %44 {offsets = [0, 48], sizes = [34, 8], strides = [1, 1]} : vector<34x64xf32> to vector<34x8xf32>
    %96 = arith.truncf %95 : vector<34x8xf32> to vector<34x8xbf16>
    "tpu.trace_start"() <{level = 10 : i32, message = "nd,md->nm"}> : () -> ()
    %cst_32 = arith.constant dense<0.000000e+00> : vector<34x34xf32>
    %97 = tpu.matmul %94, %96, %cst_32 {dimension_numbers = #tpu.dot_dimension_numbers<[1], [1], [0], [0], [0, 0, 1, 0], [], []>} : vector<34x8xbf16>, vector<34x8xbf16>, vector<34x34xf32> -> vector<34x34xf32>
    "tpu.trace_stop"() : () -> ()
    %cst_33 = arith.constant 0.353553385 : f32
    %98 = vector.broadcast %cst_33 : f32 to vector<34x34xf32>
    %99 = arith.mulf %97, %98 : vector<34x34xf32>
    %100 = arith.addf %99, %1 : vector<34x34xf32>
    %cst_34 = arith.constant dense<0xFF800000> : vector<34xf32>
    %101 = vector.multi_reduction <maximumf>, %100, %cst_34 [1] : vector<34x34xf32> to vector<34xf32>
    %102 = vector.shape_cast %101 : vector<34xf32> to vector<34x1xf32>
    %103 = vector.broadcast %102 : vector<34x1xf32> to vector<34x34xf32>
    %104 = arith.subf %100, %103 : vector<34x34xf32>
    %105 = math.exp %104 : vector<34x34xf32>
    %cst_35 = arith.constant dense<0.000000e+00> : vector<34xf32>
    %106 = vector.multi_reduction <add>, %105, %cst_35 [1] : vector<34x34xf32> to vector<34xf32>
    %107 = vector.shape_cast %106 : vector<34xf32> to vector<34x1xf32>
    %108 = tpu.reciprocal %107 {approx = true} : vector<34x1xf32> -> vector<34x1xf32>
    %109 = vector.broadcast %108 : vector<34x1xf32> to vector<34x34xf32>
    %110 = arith.mulf %105, %109 : vector<34x34xf32>
    %111 = arith.truncf %110 : vector<34x34xf32> to vector<34x34xbf16>
    %112 = vector.extract_strided_slice %46 {offsets = [0, 64], sizes = [34, 32], strides = [1, 1]} : vector<34x128xf32> to vector<34x32xf32>
    %113 = arith.truncf %112 : vector<34x32xf32> to vector<34x32xbf16>
    %cst_36 = arith.constant dense<0.000000e+00> : vector<34x32xf32>
    %114 = tpu.matmul %111, %113, %cst_36 {dimension_numbers = #tpu.dot_dimension_numbers<[1], [0], [0], [1], [0, 0, 1, 1], [], []>} : vector<34x34xbf16>, vector<34x32xbf16>, vector<34x32xf32> -> vector<34x32xf32>
    %115 = arith.addf %92, %114 : vector<34x32xf32>
    %116 = vector.extract_strided_slice %44 {offsets = [0, 24], sizes = [34, 8], strides = [1, 1]} : vector<34x64xf32> to vector<34x8xf32>
    %117 = arith.truncf %116 : vector<34x8xf32> to vector<34x8xbf16>
    %118 = vector.extract_strided_slice %44 {offsets = [0, 56], sizes = [34, 8], strides = [1, 1]} : vector<34x64xf32> to vector<34x8xf32>
    %119 = arith.truncf %118 : vector<34x8xf32> to vector<34x8xbf16>
    "tpu.trace_start"() <{level = 10 : i32, message = "nd,md->nm"}> : () -> ()
    %cst_37 = arith.constant dense<0.000000e+00> : vector<34x34xf32>
    %120 = tpu.matmul %117, %119, %cst_37 {dimension_numbers = #tpu.dot_dimension_numbers<[1], [1], [0], [0], [0, 0, 1, 0], [], []>} : vector<34x8xbf16>, vector<34x8xbf16>, vector<34x34xf32> -> vector<34x34xf32>
    "tpu.trace_stop"() : () -> ()
    %cst_38 = arith.constant 0.353553385 : f32
    %121 = vector.broadcast %cst_38 : f32 to vector<34x34xf32>
    %122 = arith.mulf %120, %121 : vector<34x34xf32>
    %123 = arith.addf %122, %1 : vector<34x34xf32>
    %cst_39 = arith.constant dense<0xFF800000> : vector<34xf32>
    %124 = vector.multi_reduction <maximumf>, %123, %cst_39 [1] : vector<34x34xf32> to vector<34xf32>
    %125 = vector.shape_cast %124 : vector<34xf32> to vector<34x1xf32>
    %126 = vector.broadcast %125 : vector<34x1xf32> to vector<34x34xf32>
    %127 = arith.subf %123, %126 : vector<34x34xf32>
    %128 = math.exp %127 : vector<34x34xf32>
    %cst_40 = arith.constant dense<0.000000e+00> : vector<34xf32>
    %129 = vector.multi_reduction <add>, %128, %cst_40 [1] : vector<34x34xf32> to vector<34xf32>
    %130 = vector.shape_cast %129 : vector<34xf32> to vector<34x1xf32>
    %131 = tpu.reciprocal %130 {approx = true} : vector<34x1xf32> -> vector<34x1xf32>
    %132 = vector.broadcast %131 : vector<34x1xf32> to vector<34x34xf32>
    %133 = arith.mulf %128, %132 : vector<34x34xf32>
    %134 = arith.truncf %133 : vector<34x34xf32> to vector<34x34xbf16>
    %135 = vector.extract_strided_slice %46 {offsets = [0, 96], sizes = [34, 32], strides = [1, 1]} : vector<34x128xf32> to vector<34x32xf32>
    %136 = arith.truncf %135 : vector<34x32xf32> to vector<34x32xbf16>
    %cst_41 = arith.constant dense<0.000000e+00> : vector<34x32xf32>
    %137 = tpu.matmul %134, %136, %cst_41 {dimension_numbers = #tpu.dot_dimension_numbers<[1], [0], [0], [1], [0, 0, 1, 1], [], []>} : vector<34x34xbf16>, vector<34x32xbf16>, vector<34x32xf32> -> vector<34x32xf32>
    %138 = arith.addf %115, %137 : vector<34x32xf32>
    %c90 = arith.constant 90 : index
    %c0_42 = arith.constant 0 : index
    %139 = vector.load %arg3[%c90, %c0_42] : memref<112x128xf32, #tpu.memory_space<vmem>>, vector<1x32xf32>
    %140 = vector.broadcast %139 : vector<1x32xf32> to vector<34x32xf32>
    %141 = arith.addf %138, %140 : vector<34x32xf32>
    %c91 = arith.constant 91 : index
    %c0_43 = arith.constant 0 : index
    %142 = vector.load %arg3[%c91, %c0_43] : memref<112x128xf32, #tpu.memory_space<vmem>>, vector<1x32xf32>
    %c92 = arith.constant 92 : index
    %c0_44 = arith.constant 0 : index
    %143 = vector.load %arg3[%c92, %c0_44] : memref<112x128xf32, #tpu.memory_space<vmem>>, vector<1x32xf32>
    %cst_45 = arith.constant dense<0.000000e+00> : vector<34xf32>
    %144 = vector.multi_reduction <add>, %141, %cst_45 [1] : vector<34x32xf32> to vector<34xf32>
    %145 = vector.shape_cast %144 : vector<34xf32> to vector<34x1xf32>
    %cst_46 = arith.constant 3.200000e+01 : f32
    %146 = vector.broadcast %cst_46 : f32 to vector<34x1xf32>
    %147 = arith.divf %145, %146 : vector<34x1xf32>
    %148 = vector.broadcast %147 : vector<34x1xf32> to vector<34x32xf32>
    %149 = arith.subf %141, %148 : vector<34x32xf32>
    %150 = arith.mulf %149, %149 : vector<34x32xf32>
    %cst_47 = arith.constant dense<0.000000e+00> : vector<34xf32>
    %151 = vector.multi_reduction <add>, %150, %cst_47 [1] : vector<34x32xf32> to vector<34xf32>
    %152 = vector.shape_cast %151 : vector<34xf32> to vector<34x1xf32>
    %cst_48 = arith.constant 3.200000e+01 : f32
    %153 = vector.broadcast %cst_48 : f32 to vector<34x1xf32>
    %154 = arith.divf %152, %153 : vector<34x1xf32>
    %155 = vector.broadcast %147 : vector<34x1xf32> to vector<34x32xf32>
    %156 = arith.subf %141, %155 : vector<34x32xf32>
    %cst_49 = arith.constant 9.99999974E-6 : f32
    %157 = vector.broadcast %cst_49 : f32 to vector<34x1xf32>
    %158 = arith.addf %154, %157 : vector<34x1xf32>
    %159 = math.rsqrt %158 : vector<34x1xf32>
    %160 = vector.broadcast %159 : vector<34x1xf32> to vector<34x32xf32>
    %161 = arith.mulf %156, %160 : vector<34x32xf32>
    %162 = vector.broadcast %142 : vector<1x32xf32> to vector<34x32xf32>
    %163 = arith.mulf %161, %162 : vector<34x32xf32>
    %164 = vector.broadcast %143 : vector<1x32xf32> to vector<34x32xf32>
    %165 = arith.addf %163, %164 : vector<34x32xf32>
    %166 = arith.truncf %165 : vector<34x32xf32> to vector<34x32xbf16>
    %c200 = arith.constant 200 : index
    %c0_50 = arith.constant 0 : index
    %167 = vector.load %arg2[%c200, %c0_50] : memref<840x128xbf16, #tpu.memory_space<vmem>>, vector<32x128xbf16>
    %cst_51 = arith.constant dense<0.000000e+00> : vector<34x128xf32>
    %168 = tpu.matmul %166, %167, %cst_51 {dimension_numbers = #tpu.dot_dimension_numbers<[1], [0], [0], [1], [0, 0, 1, 1], [], []>} : vector<34x32xbf16>, vector<32x128xbf16>, vector<34x128xf32> -> vector<34x128xf32>
    %c93 = arith.constant 93 : index
    %c0_52 = arith.constant 0 : index
    %169 = vector.load %arg3[%c93, %c0_52] : memref<112x128xf32, #tpu.memory_space<vmem>>, vector<1x128xf32>
    %170 = vector.broadcast %169 : vector<1x128xf32> to vector<34x128xf32>
    %171 = arith.addf %168, %170 : vector<34x128xf32>
    %cst_53 = arith.constant 5.000000e-01 : f32
    %172 = vector.broadcast %cst_53 : f32 to vector<34x128xf32>
    %173 = arith.mulf %172, %171 : vector<34x128xf32>
    %cst_54 = arith.constant 4.471500e-02 : f32
    %174 = vector.broadcast %cst_54 : f32 to vector<34x128xf32>
    %175 = arith.mulf %174, %171 : vector<34x128xf32>
    %176 = arith.mulf %175, %171 : vector<34x128xf32>
    %177 = arith.mulf %176, %171 : vector<34x128xf32>
    %178 = arith.addf %171, %177 : vector<34x128xf32>
    %cst_55 = arith.constant 0.797884583 : f32
    %179 = vector.broadcast %cst_55 : f32 to vector<34x128xf32>
    %180 = arith.mulf %179, %178 : vector<34x128xf32>
    %181 = math.tanh %180 : vector<34x128xf32>
    %cst_56 = arith.constant 1.000000e+00 : f32
    %182 = vector.broadcast %cst_56 : f32 to vector<34x128xf32>
    %183 = arith.addf %182, %181 : vector<34x128xf32>
    %184 = arith.mulf %173, %183 : vector<34x128xf32>
    %185 = arith.truncf %184 : vector<34x128xf32> to vector<34x128xbf16>
    %c232 = arith.constant 232 : index
    %c0_57 = arith.constant 0 : index
    %186 = vector.load %arg2[%c232, %c0_57] : memref<840x128xbf16, #tpu.memory_space<vmem>>, vector<128x32xbf16>
    %cst_58 = arith.constant dense<0.000000e+00> : vector<34x32xf32>
    %187 = tpu.matmul %185, %186, %cst_58 {dimension_numbers = #tpu.dot_dimension_numbers<[1], [0], [0], [1], [0, 0, 1, 1], [], []>} : vector<34x128xbf16>, vector<128x32xbf16>, vector<34x32xf32> -> vector<34x32xf32>
    %188 = arith.addf %141, %187 : vector<34x32xf32>
    %c94 = arith.constant 94 : index
    %c0_59 = arith.constant 0 : index
    %189 = vector.load %arg3[%c94, %c0_59] : memref<112x128xf32, #tpu.memory_space<vmem>>, vector<1x32xf32>
    %190 = vector.broadcast %189 : vector<1x32xf32> to vector<34x32xf32>
    %191 = arith.addf %188, %190 : vector<34x32xf32>
    %c96 = arith.constant 96 : index
    %c0_60 = arith.constant 0 : index
    %192 = vector.load %arg3[%c96, %c0_60] : memref<112x128xf32, #tpu.memory_space<vmem>>, vector<1x32xf32>
    %c97 = arith.constant 97 : index
    %c0_61 = arith.constant 0 : index
    %193 = vector.load %arg3[%c97, %c0_61] : memref<112x128xf32, #tpu.memory_space<vmem>>, vector<1x32xf32>
    %cst_62 = arith.constant dense<0.000000e+00> : vector<34xf32>
    %194 = vector.multi_reduction <add>, %191, %cst_62 [1] : vector<34x32xf32> to vector<34xf32>
    %195 = vector.shape_cast %194 : vector<34xf32> to vector<34x1xf32>
    %cst_63 = arith.constant 3.200000e+01 : f32
    %196 = vector.broadcast %cst_63 : f32 to vector<34x1xf32>
    %197 = arith.divf %195, %196 : vector<34x1xf32>
    %198 = vector.broadcast %197 : vector<34x1xf32> to vector<34x32xf32>
    %199 = arith.subf %191, %198 : vector<34x32xf32>
    %200 = arith.mulf %199, %199 : vector<34x32xf32>
    %cst_64 = arith.constant dense<0.000000e+00> : vector<34xf32>
    %201 = vector.multi_reduction <add>, %200, %cst_64 [1] : vector<34x32xf32> to vector<34xf32>
    %202 = vector.shape_cast %201 : vector<34xf32> to vector<34x1xf32>
    %cst_65 = arith.constant 3.200000e+01 : f32
    %203 = vector.broadcast %cst_65 : f32 to vector<34x1xf32>
    %204 = arith.divf %202, %203 : vector<34x1xf32>
    %205 = vector.broadcast %197 : vector<34x1xf32> to vector<34x32xf32>
    %206 = arith.subf %191, %205 : vector<34x32xf32>
    %cst_66 = arith.constant 9.99999974E-6 : f32
    %207 = vector.broadcast %cst_66 : f32 to vector<34x1xf32>
    %208 = arith.addf %204, %207 : vector<34x1xf32>
    %209 = math.rsqrt %208 : vector<34x1xf32>
    %210 = vector.broadcast %209 : vector<34x1xf32> to vector<34x32xf32>
    %211 = arith.mulf %206, %210 : vector<34x32xf32>
    %212 = vector.broadcast %192 : vector<1x32xf32> to vector<34x32xf32>
    %213 = arith.mulf %211, %212 : vector<34x32xf32>
    %214 = vector.broadcast %193 : vector<1x32xf32> to vector<34x32xf32>
    %215 = arith.addf %213, %214 : vector<34x32xf32>
    %216 = arith.truncf %215 : vector<34x32xf32> to vector<34x32xbf16>
    %c360 = arith.constant 360 : index
    %c0_67 = arith.constant 0 : index
    %217 = vector.load %arg2[%c360, %c0_67] : memref<840x128xbf16, #tpu.memory_space<vmem>>, vector<32x64xbf16>
    %cst_68 = arith.constant dense<0.000000e+00> : vector<34x64xf32>
    %218 = tpu.matmul %216, %217, %cst_68 {dimension_numbers = #tpu.dot_dimension_numbers<[1], [0], [0], [1], [0, 0, 1, 1], [], []>} : vector<34x32xbf16>, vector<32x64xbf16>, vector<34x64xf32> -> vector<34x64xf32>
    %c392 = arith.constant 392 : index
    %c0_69 = arith.constant 0 : index
    %219 = vector.load %arg2[%c392, %c0_69] : memref<840x128xbf16, #tpu.memory_space<vmem>>, vector<32x128xbf16>
    %cst_70 = arith.constant dense<0.000000e+00> : vector<34x128xf32>
    %220 = tpu.matmul %216, %219, %cst_70 {dimension_numbers = #tpu.dot_dimension_numbers<[1], [0], [0], [1], [0, 0, 1, 1], [], []>} : vector<34x32xbf16>, vector<32x128xbf16>, vector<34x128xf32> -> vector<34x128xf32>
    %221 = vector.extract_strided_slice %218 {offsets = [0, 0], sizes = [34, 8], strides = [1, 1]} : vector<34x64xf32> to vector<34x8xf32>
    %222 = arith.truncf %221 : vector<34x8xf32> to vector<34x8xbf16>
    %223 = vector.extract_strided_slice %218 {offsets = [0, 32], sizes = [34, 8], strides = [1, 1]} : vector<34x64xf32> to vector<34x8xf32>
    %224 = arith.truncf %223 : vector<34x8xf32> to vector<34x8xbf16>
    "tpu.trace_start"() <{level = 10 : i32, message = "nd,md->nm"}> : () -> ()
    %cst_71 = arith.constant dense<0.000000e+00> : vector<34x34xf32>
    %225 = tpu.matmul %222, %224, %cst_71 {dimension_numbers = #tpu.dot_dimension_numbers<[1], [1], [0], [0], [0, 0, 1, 0], [], []>} : vector<34x8xbf16>, vector<34x8xbf16>, vector<34x34xf32> -> vector<34x34xf32>
    "tpu.trace_stop"() : () -> ()
    %cst_72 = arith.constant 0.353553385 : f32
    %226 = vector.broadcast %cst_72 : f32 to vector<34x34xf32>
    %227 = arith.mulf %225, %226 : vector<34x34xf32>
    %228 = arith.addf %227, %1 : vector<34x34xf32>
    %cst_73 = arith.constant dense<0xFF800000> : vector<34xf32>
    %229 = vector.multi_reduction <maximumf>, %228, %cst_73 [1] : vector<34x34xf32> to vector<34xf32>
    %230 = vector.shape_cast %229 : vector<34xf32> to vector<34x1xf32>
    %231 = vector.broadcast %230 : vector<34x1xf32> to vector<34x34xf32>
    %232 = arith.subf %228, %231 : vector<34x34xf32>
    %233 = math.exp %232 : vector<34x34xf32>
    %cst_74 = arith.constant dense<0.000000e+00> : vector<34xf32>
    %234 = vector.multi_reduction <add>, %233, %cst_74 [1] : vector<34x34xf32> to vector<34xf32>
    %235 = vector.shape_cast %234 : vector<34xf32> to vector<34x1xf32>
    %236 = tpu.reciprocal %235 {approx = true} : vector<34x1xf32> -> vector<34x1xf32>
    %237 = vector.broadcast %236 : vector<34x1xf32> to vector<34x34xf32>
    %238 = arith.mulf %233, %237 : vector<34x34xf32>
    %239 = arith.truncf %238 : vector<34x34xf32> to vector<34x34xbf16>
    %240 = vector.extract_strided_slice %220 {offsets = [0, 0], sizes = [34, 32], strides = [1, 1]} : vector<34x128xf32> to vector<34x32xf32>
    %241 = arith.truncf %240 : vector<34x32xf32> to vector<34x32xbf16>
    %cst_75 = arith.constant dense<0.000000e+00> : vector<34x32xf32>
    %242 = tpu.matmul %239, %241, %cst_75 {dimension_numbers = #tpu.dot_dimension_numbers<[1], [0], [0], [1], [0, 0, 1, 1], [], []>} : vector<34x34xbf16>, vector<34x32xbf16>, vector<34x32xf32> -> vector<34x32xf32>
    %243 = arith.addf %191, %242 : vector<34x32xf32>
    %244 = vector.extract_strided_slice %218 {offsets = [0, 8], sizes = [34, 8], strides = [1, 1]} : vector<34x64xf32> to vector<34x8xf32>
    %245 = arith.truncf %244 : vector<34x8xf32> to vector<34x8xbf16>
    %246 = vector.extract_strided_slice %218 {offsets = [0, 40], sizes = [34, 8], strides = [1, 1]} : vector<34x64xf32> to vector<34x8xf32>
    %247 = arith.truncf %246 : vector<34x8xf32> to vector<34x8xbf16>
    "tpu.trace_start"() <{level = 10 : i32, message = "nd,md->nm"}> : () -> ()
    %cst_76 = arith.constant dense<0.000000e+00> : vector<34x34xf32>
    %248 = tpu.matmul %245, %247, %cst_76 {dimension_numbers = #tpu.dot_dimension_numbers<[1], [1], [0], [0], [0, 0, 1, 0], [], []>} : vector<34x8xbf16>, vector<34x8xbf16>, vector<34x34xf32> -> vector<34x34xf32>
    "tpu.trace_stop"() : () -> ()
    %cst_77 = arith.constant 0.353553385 : f32
    %249 = vector.broadcast %cst_77 : f32 to vector<34x34xf32>
    %250 = arith.mulf %248, %249 : vector<34x34xf32>
    %251 = arith.addf %250, %1 : vector<34x34xf32>
    %cst_78 = arith.constant dense<0xFF800000> : vector<34xf32>
    %252 = vector.multi_reduction <maximumf>, %251, %cst_78 [1] : vector<34x34xf32> to vector<34xf32>
    %253 = vector.shape_cast %252 : vector<34xf32> to vector<34x1xf32>
    %254 = vector.broadcast %253 : vector<34x1xf32> to vector<34x34xf32>
    %255 = arith.subf %251, %254 : vector<34x34xf32>
    %256 = math.exp %255 : vector<34x34xf32>
    %cst_79 = arith.constant dense<0.000000e+00> : vector<34xf32>
    %257 = vector.multi_reduction <add>, %256, %cst_79 [1] : vector<34x34xf32> to vector<34xf32>
    %258 = vector.shape_cast %257 : vector<34xf32> to vector<34x1xf32>
    %259 = tpu.reciprocal %258 {approx = true} : vector<34x1xf32> -> vector<34x1xf32>
    %260 = vector.broadcast %259 : vector<34x1xf32> to vector<34x34xf32>
    %261 = arith.mulf %256, %260 : vector<34x34xf32>
    %262 = arith.truncf %261 : vector<34x34xf32> to vector<34x34xbf16>
    %263 = vector.extract_strided_slice %220 {offsets = [0, 32], sizes = [34, 32], strides = [1, 1]} : vector<34x128xf32> to vector<34x32xf32>
    %264 = arith.truncf %263 : vector<34x32xf32> to vector<34x32xbf16>
    %cst_80 = arith.constant dense<0.000000e+00> : vector<34x32xf32>
    %265 = tpu.matmul %262, %264, %cst_80 {dimension_numbers = #tpu.dot_dimension_numbers<[1], [0], [0], [1], [0, 0, 1, 1], [], []>} : vector<34x34xbf16>, vector<34x32xbf16>, vector<34x32xf32> -> vector<34x32xf32>
    %266 = arith.addf %243, %265 : vector<34x32xf32>
    %267 = vector.extract_strided_slice %218 {offsets = [0, 16], sizes = [34, 8], strides = [1, 1]} : vector<34x64xf32> to vector<34x8xf32>
    %268 = arith.truncf %267 : vector<34x8xf32> to vector<34x8xbf16>
    %269 = vector.extract_strided_slice %218 {offsets = [0, 48], sizes = [34, 8], strides = [1, 1]} : vector<34x64xf32> to vector<34x8xf32>
    %270 = arith.truncf %269 : vector<34x8xf32> to vector<34x8xbf16>
    "tpu.trace_start"() <{level = 10 : i32, message = "nd,md->nm"}> : () -> ()
    %cst_81 = arith.constant dense<0.000000e+00> : vector<34x34xf32>
    %271 = tpu.matmul %268, %270, %cst_81 {dimension_numbers = #tpu.dot_dimension_numbers<[1], [1], [0], [0], [0, 0, 1, 0], [], []>} : vector<34x8xbf16>, vector<34x8xbf16>, vector<34x34xf32> -> vector<34x34xf32>
    "tpu.trace_stop"() : () -> ()
    %cst_82 = arith.constant 0.353553385 : f32
    %272 = vector.broadcast %cst_82 : f32 to vector<34x34xf32>
    %273 = arith.mulf %271, %272 : vector<34x34xf32>
    %274 = arith.addf %273, %1 : vector<34x34xf32>
    %cst_83 = arith.constant dense<0xFF800000> : vector<34xf32>
    %275 = vector.multi_reduction <maximumf>, %274, %cst_83 [1] : vector<34x34xf32> to vector<34xf32>
    %276 = vector.shape_cast %275 : vector<34xf32> to vector<34x1xf32>
    %277 = vector.broadcast %276 : vector<34x1xf32> to vector<34x34xf32>
    %278 = arith.subf %274, %277 : vector<34x34xf32>
    %279 = math.exp %278 : vector<34x34xf32>
    %cst_84 = arith.constant dense<0.000000e+00> : vector<34xf32>
    %280 = vector.multi_reduction <add>, %279, %cst_84 [1] : vector<34x34xf32> to vector<34xf32>
    %281 = vector.shape_cast %280 : vector<34xf32> to vector<34x1xf32>
    %282 = tpu.reciprocal %281 {approx = true} : vector<34x1xf32> -> vector<34x1xf32>
    %283 = vector.broadcast %282 : vector<34x1xf32> to vector<34x34xf32>
    %284 = arith.mulf %279, %283 : vector<34x34xf32>
    %285 = arith.truncf %284 : vector<34x34xf32> to vector<34x34xbf16>
    %286 = vector.extract_strided_slice %220 {offsets = [0, 64], sizes = [34, 32], strides = [1, 1]} : vector<34x128xf32> to vector<34x32xf32>
    %287 = arith.truncf %286 : vector<34x32xf32> to vector<34x32xbf16>
    %cst_85 = arith.constant dense<0.000000e+00> : vector<34x32xf32>
    %288 = tpu.matmul %285, %287, %cst_85 {dimension_numbers = #tpu.dot_dimension_numbers<[1], [0], [0], [1], [0, 0, 1, 1], [], []>} : vector<34x34xbf16>, vector<34x32xbf16>, vector<34x32xf32> -> vector<34x32xf32>
    %289 = arith.addf %266, %288 : vector<34x32xf32>
    %290 = vector.extract_strided_slice %218 {offsets = [0, 24], sizes = [34, 8], strides = [1, 1]} : vector<34x64xf32> to vector<34x8xf32>
    %291 = arith.truncf %290 : vector<34x8xf32> to vector<34x8xbf16>
    %292 = vector.extract_strided_slice %218 {offsets = [0, 56], sizes = [34, 8], strides = [1, 1]} : vector<34x64xf32> to vector<34x8xf32>
    %293 = arith.truncf %292 : vector<34x8xf32> to vector<34x8xbf16>
    "tpu.trace_start"() <{level = 10 : i32, message = "nd,md->nm"}> : () -> ()
    %cst_86 = arith.constant dense<0.000000e+00> : vector<34x34xf32>
    %294 = tpu.matmul %291, %293, %cst_86 {dimension_numbers = #tpu.dot_dimension_numbers<[1], [1], [0], [0], [0, 0, 1, 0], [], []>} : vector<34x8xbf16>, vector<34x8xbf16>, vector<34x34xf32> -> vector<34x34xf32>
    "tpu.trace_stop"() : () -> ()
    %cst_87 = arith.constant 0.353553385 : f32
    %295 = vector.broadcast %cst_87 : f32 to vector<34x34xf32>
    %296 = arith.mulf %294, %295 : vector<34x34xf32>
    %297 = arith.addf %296, %1 : vector<34x34xf32>
    %cst_88 = arith.constant dense<0xFF800000> : vector<34xf32>
    %298 = vector.multi_reduction <maximumf>, %297, %cst_88 [1] : vector<34x34xf32> to vector<34xf32>
    %299 = vector.shape_cast %298 : vector<34xf32> to vector<34x1xf32>
    %300 = vector.broadcast %299 : vector<34x1xf32> to vector<34x34xf32>
    %301 = arith.subf %297, %300 : vector<34x34xf32>
    %302 = math.exp %301 : vector<34x34xf32>
    %cst_89 = arith.constant dense<0.000000e+00> : vector<34xf32>
    %303 = vector.multi_reduction <add>, %302, %cst_89 [1] : vector<34x34xf32> to vector<34xf32>
    %304 = vector.shape_cast %303 : vector<34xf32> to vector<34x1xf32>
    %305 = tpu.reciprocal %304 {approx = true} : vector<34x1xf32> -> vector<34x1xf32>
    %306 = vector.broadcast %305 : vector<34x1xf32> to vector<34x34xf32>
    %307 = arith.mulf %302, %306 : vector<34x34xf32>
    %308 = arith.truncf %307 : vector<34x34xf32> to vector<34x34xbf16>
    %309 = vector.extract_strided_slice %220 {offsets = [0, 96], sizes = [34, 32], strides = [1, 1]} : vector<34x128xf32> to vector<34x32xf32>
    %310 = arith.truncf %309 : vector<34x32xf32> to vector<34x32xbf16>
    %cst_90 = arith.constant dense<0.000000e+00> : vector<34x32xf32>
    %311 = tpu.matmul %308, %310, %cst_90 {dimension_numbers = #tpu.dot_dimension_numbers<[1], [0], [0], [1], [0, 0, 1, 1], [], []>} : vector<34x34xbf16>, vector<34x32xbf16>, vector<34x32xf32> -> vector<34x32xf32>
    %312 = arith.addf %289, %311 : vector<34x32xf32>
    %c98 = arith.constant 98 : index
    %c0_91 = arith.constant 0 : index
    %313 = vector.load %arg3[%c98, %c0_91] : memref<112x128xf32, #tpu.memory_space<vmem>>, vector<1x32xf32>
    %314 = vector.broadcast %313 : vector<1x32xf32> to vector<34x32xf32>
    %315 = arith.addf %312, %314 : vector<34x32xf32>
    %c99 = arith.constant 99 : index
    %c0_92 = arith.constant 0 : index
    %316 = vector.load %arg3[%c99, %c0_92] : memref<112x128xf32, #tpu.memory_space<vmem>>, vector<1x32xf32>
    %c100 = arith.constant 100 : index
    %c0_93 = arith.constant 0 : index
    %317 = vector.load %arg3[%c100, %c0_93] : memref<112x128xf32, #tpu.memory_space<vmem>>, vector<1x32xf32>
    %cst_94 = arith.constant dense<0.000000e+00> : vector<34xf32>
    %318 = vector.multi_reduction <add>, %315, %cst_94 [1] : vector<34x32xf32> to vector<34xf32>
    %319 = vector.shape_cast %318 : vector<34xf32> to vector<34x1xf32>
    %cst_95 = arith.constant 3.200000e+01 : f32
    %320 = vector.broadcast %cst_95 : f32 to vector<34x1xf32>
    %321 = arith.divf %319, %320 : vector<34x1xf32>
    %322 = vector.broadcast %321 : vector<34x1xf32> to vector<34x32xf32>
    %323 = arith.subf %315, %322 : vector<34x32xf32>
    %324 = arith.mulf %323, %323 : vector<34x32xf32>
    %cst_96 = arith.constant dense<0.000000e+00> : vector<34xf32>
    %325 = vector.multi_reduction <add>, %324, %cst_96 [1] : vector<34x32xf32> to vector<34xf32>
    %326 = vector.shape_cast %325 : vector<34xf32> to vector<34x1xf32>
    %cst_97 = arith.constant 3.200000e+01 : f32
    %327 = vector.broadcast %cst_97 : f32 to vector<34x1xf32>
    %328 = arith.divf %326, %327 : vector<34x1xf32>
    %329 = vector.broadcast %321 : vector<34x1xf32> to vector<34x32xf32>
    %330 = arith.subf %315, %329 : vector<34x32xf32>
    %cst_98 = arith.constant 9.99999974E-6 : f32
    %331 = vector.broadcast %cst_98 : f32 to vector<34x1xf32>
    %332 = arith.addf %328, %331 : vector<34x1xf32>
    %333 = math.rsqrt %332 : vector<34x1xf32>
    %334 = vector.broadcast %333 : vector<34x1xf32> to vector<34x32xf32>
    %335 = arith.mulf %330, %334 : vector<34x32xf32>
    %336 = vector.broadcast %316 : vector<1x32xf32> to vector<34x32xf32>
    %337 = arith.mulf %335, %336 : vector<34x32xf32>
    %338 = vector.broadcast %317 : vector<1x32xf32> to vector<34x32xf32>
    %339 = arith.addf %337, %338 : vector<34x32xf32>
    %340 = arith.truncf %339 : vector<34x32xf32> to vector<34x32xbf16>
    %c424 = arith.constant 424 : index
    %c0_99 = arith.constant 0 : index
    %341 = vector.load %arg2[%c424, %c0_99] : memref<840x128xbf16, #tpu.memory_space<vmem>>, vector<32x128xbf16>
    %cst_100 = arith.constant dense<0.000000e+00> : vector<34x128xf32>
    %342 = tpu.matmul %340, %341, %cst_100 {dimension_numbers = #tpu.dot_dimension_numbers<[1], [0], [0], [1], [0, 0, 1, 1], [], []>} : vector<34x32xbf16>, vector<32x128xbf16>, vector<34x128xf32> -> vector<34x128xf32>
    %c101 = arith.constant 101 : index
    %c0_101 = arith.constant 0 : index
    %343 = vector.load %arg3[%c101, %c0_101] : memref<112x128xf32, #tpu.memory_space<vmem>>, vector<1x128xf32>
    %344 = vector.broadcast %343 : vector<1x128xf32> to vector<34x128xf32>
    %345 = arith.addf %342, %344 : vector<34x128xf32>
    %cst_102 = arith.constant 5.000000e-01 : f32
    %346 = vector.broadcast %cst_102 : f32 to vector<34x128xf32>
    %347 = arith.mulf %346, %345 : vector<34x128xf32>
    %cst_103 = arith.constant 4.471500e-02 : f32
    %348 = vector.broadcast %cst_103 : f32 to vector<34x128xf32>
    %349 = arith.mulf %348, %345 : vector<34x128xf32>
    %350 = arith.mulf %349, %345 : vector<34x128xf32>
    %351 = arith.mulf %350, %345 : vector<34x128xf32>
    %352 = arith.addf %345, %351 : vector<34x128xf32>
    %cst_104 = arith.constant 0.797884583 : f32
    %353 = vector.broadcast %cst_104 : f32 to vector<34x128xf32>
    %354 = arith.mulf %353, %352 : vector<34x128xf32>
    %355 = math.tanh %354 : vector<34x128xf32>
    %cst_105 = arith.constant 1.000000e+00 : f32
    %356 = vector.broadcast %cst_105 : f32 to vector<34x128xf32>
    %357 = arith.addf %356, %355 : vector<34x128xf32>
    %358 = arith.mulf %347, %357 : vector<34x128xf32>
    %359 = arith.truncf %358 : vector<34x128xf32> to vector<34x128xbf16>
    %c456 = arith.constant 456 : index
    %c0_106 = arith.constant 0 : index
    %360 = vector.load %arg2[%c456, %c0_106] : memref<840x128xbf16, #tpu.memory_space<vmem>>, vector<128x32xbf16>
    %cst_107 = arith.constant dense<0.000000e+00> : vector<34x32xf32>
    %361 = tpu.matmul %359, %360, %cst_107 {dimension_numbers = #tpu.dot_dimension_numbers<[1], [0], [0], [1], [0, 0, 1, 1], [], []>} : vector<34x128xbf16>, vector<128x32xbf16>, vector<34x32xf32> -> vector<34x32xf32>
    %362 = arith.addf %315, %361 : vector<34x32xf32>
    %c102 = arith.constant 102 : index
    %c0_108 = arith.constant 0 : index
    %363 = vector.load %arg3[%c102, %c0_108] : memref<112x128xf32, #tpu.memory_space<vmem>>, vector<1x32xf32>
    %364 = vector.broadcast %363 : vector<1x32xf32> to vector<34x32xf32>
    %365 = arith.addf %362, %364 : vector<34x32xf32>
    %c104 = arith.constant 104 : index
    %c0_109 = arith.constant 0 : index
    %366 = vector.load %arg3[%c104, %c0_109] : memref<112x128xf32, #tpu.memory_space<vmem>>, vector<1x32xf32>
    %c105 = arith.constant 105 : index
    %c0_110 = arith.constant 0 : index
    %367 = vector.load %arg3[%c105, %c0_110] : memref<112x128xf32, #tpu.memory_space<vmem>>, vector<1x32xf32>
    %cst_111 = arith.constant dense<0.000000e+00> : vector<34xf32>
    %368 = vector.multi_reduction <add>, %365, %cst_111 [1] : vector<34x32xf32> to vector<34xf32>
    %369 = vector.shape_cast %368 : vector<34xf32> to vector<34x1xf32>
    %cst_112 = arith.constant 3.200000e+01 : f32
    %370 = vector.broadcast %cst_112 : f32 to vector<34x1xf32>
    %371 = arith.divf %369, %370 : vector<34x1xf32>
    %372 = vector.broadcast %371 : vector<34x1xf32> to vector<34x32xf32>
    %373 = arith.subf %365, %372 : vector<34x32xf32>
    %374 = arith.mulf %373, %373 : vector<34x32xf32>
    %cst_113 = arith.constant dense<0.000000e+00> : vector<34xf32>
    %375 = vector.multi_reduction <add>, %374, %cst_113 [1] : vector<34x32xf32> to vector<34xf32>
    %376 = vector.shape_cast %375 : vector<34xf32> to vector<34x1xf32>
    %cst_114 = arith.constant 3.200000e+01 : f32
    %377 = vector.broadcast %cst_114 : f32 to vector<34x1xf32>
    %378 = arith.divf %376, %377 : vector<34x1xf32>
    %379 = vector.broadcast %371 : vector<34x1xf32> to vector<34x32xf32>
    %380 = arith.subf %365, %379 : vector<34x32xf32>
    %cst_115 = arith.constant 9.99999974E-6 : f32
    %381 = vector.broadcast %cst_115 : f32 to vector<34x1xf32>
    %382 = arith.addf %378, %381 : vector<34x1xf32>
    %383 = math.rsqrt %382 : vector<34x1xf32>
    %384 = vector.broadcast %383 : vector<34x1xf32> to vector<34x32xf32>
    %385 = arith.mulf %380, %384 : vector<34x32xf32>
    %386 = vector.broadcast %366 : vector<1x32xf32> to vector<34x32xf32>
    %387 = arith.mulf %385, %386 : vector<34x32xf32>
    %388 = vector.broadcast %367 : vector<1x32xf32> to vector<34x32xf32>
    %389 = arith.addf %387, %388 : vector<34x32xf32>
    %390 = arith.truncf %389 : vector<34x32xf32> to vector<34x32xbf16>
    %c584 = arith.constant 584 : index
    %c0_116 = arith.constant 0 : index
    %391 = vector.load %arg2[%c584, %c0_116] : memref<840x128xbf16, #tpu.memory_space<vmem>>, vector<32x64xbf16>
    %cst_117 = arith.constant dense<0.000000e+00> : vector<34x64xf32>
    %392 = tpu.matmul %390, %391, %cst_117 {dimension_numbers = #tpu.dot_dimension_numbers<[1], [0], [0], [1], [0, 0, 1, 1], [], []>} : vector<34x32xbf16>, vector<32x64xbf16>, vector<34x64xf32> -> vector<34x64xf32>
    %c616 = arith.constant 616 : index
    %c0_118 = arith.constant 0 : index
    %393 = vector.load %arg2[%c616, %c0_118] : memref<840x128xbf16, #tpu.memory_space<vmem>>, vector<32x128xbf16>
    %cst_119 = arith.constant dense<0.000000e+00> : vector<34x128xf32>
    %394 = tpu.matmul %390, %393, %cst_119 {dimension_numbers = #tpu.dot_dimension_numbers<[1], [0], [0], [1], [0, 0, 1, 1], [], []>} : vector<34x32xbf16>, vector<32x128xbf16>, vector<34x128xf32> -> vector<34x128xf32>
    %395 = vector.extract_strided_slice %392 {offsets = [0, 0], sizes = [34, 8], strides = [1, 1]} : vector<34x64xf32> to vector<34x8xf32>
    %396 = arith.truncf %395 : vector<34x8xf32> to vector<34x8xbf16>
    %397 = vector.extract_strided_slice %392 {offsets = [0, 32], sizes = [34, 8], strides = [1, 1]} : vector<34x64xf32> to vector<34x8xf32>
    %398 = arith.truncf %397 : vector<34x8xf32> to vector<34x8xbf16>
    "tpu.trace_start"() <{level = 10 : i32, message = "nd,md->nm"}> : () -> ()
    %cst_120 = arith.constant dense<0.000000e+00> : vector<34x34xf32>
    %399 = tpu.matmul %396, %398, %cst_120 {dimension_numbers = #tpu.dot_dimension_numbers<[1], [1], [0], [0], [0, 0, 1, 0], [], []>} : vector<34x8xbf16>, vector<34x8xbf16>, vector<34x34xf32> -> vector<34x34xf32>
    "tpu.trace_stop"() : () -> ()
    %cst_121 = arith.constant 0.353553385 : f32
    %400 = vector.broadcast %cst_121 : f32 to vector<34x34xf32>
    %401 = arith.mulf %399, %400 : vector<34x34xf32>
    %402 = arith.addf %401, %1 : vector<34x34xf32>
    %cst_122 = arith.constant dense<0xFF800000> : vector<34xf32>
    %403 = vector.multi_reduction <maximumf>, %402, %cst_122 [1] : vector<34x34xf32> to vector<34xf32>
    %404 = vector.shape_cast %403 : vector<34xf32> to vector<34x1xf32>
    %405 = vector.broadcast %404 : vector<34x1xf32> to vector<34x34xf32>
    %406 = arith.subf %402, %405 : vector<34x34xf32>
    %407 = math.exp %406 : vector<34x34xf32>
    %cst_123 = arith.constant dense<0.000000e+00> : vector<34xf32>
    %408 = vector.multi_reduction <add>, %407, %cst_123 [1] : vector<34x34xf32> to vector<34xf32>
    %409 = vector.shape_cast %408 : vector<34xf32> to vector<34x1xf32>
    %410 = tpu.reciprocal %409 {approx = true} : vector<34x1xf32> -> vector<34x1xf32>
    %411 = vector.broadcast %410 : vector<34x1xf32> to vector<34x34xf32>
    %412 = arith.mulf %407, %411 : vector<34x34xf32>
    %413 = arith.truncf %412 : vector<34x34xf32> to vector<34x34xbf16>
    %414 = vector.extract_strided_slice %394 {offsets = [0, 0], sizes = [34, 32], strides = [1, 1]} : vector<34x128xf32> to vector<34x32xf32>
    %415 = arith.truncf %414 : vector<34x32xf32> to vector<34x32xbf16>
    %cst_124 = arith.constant dense<0.000000e+00> : vector<34x32xf32>
    %416 = tpu.matmul %413, %415, %cst_124 {dimension_numbers = #tpu.dot_dimension_numbers<[1], [0], [0], [1], [0, 0, 1, 1], [], []>} : vector<34x34xbf16>, vector<34x32xbf16>, vector<34x32xf32> -> vector<34x32xf32>
    %417 = arith.addf %365, %416 : vector<34x32xf32>
    %418 = vector.extract_strided_slice %392 {offsets = [0, 8], sizes = [34, 8], strides = [1, 1]} : vector<34x64xf32> to vector<34x8xf32>
    %419 = arith.truncf %418 : vector<34x8xf32> to vector<34x8xbf16>
    %420 = vector.extract_strided_slice %392 {offsets = [0, 40], sizes = [34, 8], strides = [1, 1]} : vector<34x64xf32> to vector<34x8xf32>
    %421 = arith.truncf %420 : vector<34x8xf32> to vector<34x8xbf16>
    "tpu.trace_start"() <{level = 10 : i32, message = "nd,md->nm"}> : () -> ()
    %cst_125 = arith.constant dense<0.000000e+00> : vector<34x34xf32>
    %422 = tpu.matmul %419, %421, %cst_125 {dimension_numbers = #tpu.dot_dimension_numbers<[1], [1], [0], [0], [0, 0, 1, 0], [], []>} : vector<34x8xbf16>, vector<34x8xbf16>, vector<34x34xf32> -> vector<34x34xf32>
    "tpu.trace_stop"() : () -> ()
    %cst_126 = arith.constant 0.353553385 : f32
    %423 = vector.broadcast %cst_126 : f32 to vector<34x34xf32>
    %424 = arith.mulf %422, %423 : vector<34x34xf32>
    %425 = arith.addf %424, %1 : vector<34x34xf32>
    %cst_127 = arith.constant dense<0xFF800000> : vector<34xf32>
    %426 = vector.multi_reduction <maximumf>, %425, %cst_127 [1] : vector<34x34xf32> to vector<34xf32>
    %427 = vector.shape_cast %426 : vector<34xf32> to vector<34x1xf32>
    %428 = vector.broadcast %427 : vector<34x1xf32> to vector<34x34xf32>
    %429 = arith.subf %425, %428 : vector<34x34xf32>
    %430 = math.exp %429 : vector<34x34xf32>
    %cst_128 = arith.constant dense<0.000000e+00> : vector<34xf32>
    %431 = vector.multi_reduction <add>, %430, %cst_128 [1] : vector<34x34xf32> to vector<34xf32>
    %432 = vector.shape_cast %431 : vector<34xf32> to vector<34x1xf32>
    %433 = tpu.reciprocal %432 {approx = true} : vector<34x1xf32> -> vector<34x1xf32>
    %434 = vector.broadcast %433 : vector<34x1xf32> to vector<34x34xf32>
    %435 = arith.mulf %430, %434 : vector<34x34xf32>
    %436 = arith.truncf %435 : vector<34x34xf32> to vector<34x34xbf16>
    %437 = vector.extract_strided_slice %394 {offsets = [0, 32], sizes = [34, 32], strides = [1, 1]} : vector<34x128xf32> to vector<34x32xf32>
    %438 = arith.truncf %437 : vector<34x32xf32> to vector<34x32xbf16>
    %cst_129 = arith.constant dense<0.000000e+00> : vector<34x32xf32>
    %439 = tpu.matmul %436, %438, %cst_129 {dimension_numbers = #tpu.dot_dimension_numbers<[1], [0], [0], [1], [0, 0, 1, 1], [], []>} : vector<34x34xbf16>, vector<34x32xbf16>, vector<34x32xf32> -> vector<34x32xf32>
    %440 = arith.addf %417, %439 : vector<34x32xf32>
    %441 = vector.extract_strided_slice %392 {offsets = [0, 16], sizes = [34, 8], strides = [1, 1]} : vector<34x64xf32> to vector<34x8xf32>
    %442 = arith.truncf %441 : vector<34x8xf32> to vector<34x8xbf16>
    %443 = vector.extract_strided_slice %392 {offsets = [0, 48], sizes = [34, 8], strides = [1, 1]} : vector<34x64xf32> to vector<34x8xf32>
    %444 = arith.truncf %443 : vector<34x8xf32> to vector<34x8xbf16>
    "tpu.trace_start"() <{level = 10 : i32, message = "nd,md->nm"}> : () -> ()
    %cst_130 = arith.constant dense<0.000000e+00> : vector<34x34xf32>
    %445 = tpu.matmul %442, %444, %cst_130 {dimension_numbers = #tpu.dot_dimension_numbers<[1], [1], [0], [0], [0, 0, 1, 0], [], []>} : vector<34x8xbf16>, vector<34x8xbf16>, vector<34x34xf32> -> vector<34x34xf32>
    "tpu.trace_stop"() : () -> ()
    %cst_131 = arith.constant 0.353553385 : f32
    %446 = vector.broadcast %cst_131 : f32 to vector<34x34xf32>
    %447 = arith.mulf %445, %446 : vector<34x34xf32>
    %448 = arith.addf %447, %1 : vector<34x34xf32>
    %cst_132 = arith.constant dense<0xFF800000> : vector<34xf32>
    %449 = vector.multi_reduction <maximumf>, %448, %cst_132 [1] : vector<34x34xf32> to vector<34xf32>
    %450 = vector.shape_cast %449 : vector<34xf32> to vector<34x1xf32>
    %451 = vector.broadcast %450 : vector<34x1xf32> to vector<34x34xf32>
    %452 = arith.subf %448, %451 : vector<34x34xf32>
    %453 = math.exp %452 : vector<34x34xf32>
    %cst_133 = arith.constant dense<0.000000e+00> : vector<34xf32>
    %454 = vector.multi_reduction <add>, %453, %cst_133 [1] : vector<34x34xf32> to vector<34xf32>
    %455 = vector.shape_cast %454 : vector<34xf32> to vector<34x1xf32>
    %456 = tpu.reciprocal %455 {approx = true} : vector<34x1xf32> -> vector<34x1xf32>
    %457 = vector.broadcast %456 : vector<34x1xf32> to vector<34x34xf32>
    %458 = arith.mulf %453, %457 : vector<34x34xf32>
    %459 = arith.truncf %458 : vector<34x34xf32> to vector<34x34xbf16>
    %460 = vector.extract_strided_slice %394 {offsets = [0, 64], sizes = [34, 32], strides = [1, 1]} : vector<34x128xf32> to vector<34x32xf32>
    %461 = arith.truncf %460 : vector<34x32xf32> to vector<34x32xbf16>
    %cst_134 = arith.constant dense<0.000000e+00> : vector<34x32xf32>
    %462 = tpu.matmul %459, %461, %cst_134 {dimension_numbers = #tpu.dot_dimension_numbers<[1], [0], [0], [1], [0, 0, 1, 1], [], []>} : vector<34x34xbf16>, vector<34x32xbf16>, vector<34x32xf32> -> vector<34x32xf32>
    %463 = arith.addf %440, %462 : vector<34x32xf32>
    %464 = vector.extract_strided_slice %392 {offsets = [0, 24], sizes = [34, 8], strides = [1, 1]} : vector<34x64xf32> to vector<34x8xf32>
    %465 = arith.truncf %464 : vector<34x8xf32> to vector<34x8xbf16>
    %466 = vector.extract_strided_slice %392 {offsets = [0, 56], sizes = [34, 8], strides = [1, 1]} : vector<34x64xf32> to vector<34x8xf32>
    %467 = arith.truncf %466 : vector<34x8xf32> to vector<34x8xbf16>
    "tpu.trace_start"() <{level = 10 : i32, message = "nd,md->nm"}> : () -> ()
    %cst_135 = arith.constant dense<0.000000e+00> : vector<34x34xf32>
    %468 = tpu.matmul %465, %467, %cst_135 {dimension_numbers = #tpu.dot_dimension_numbers<[1], [1], [0], [0], [0, 0, 1, 0], [], []>} : vector<34x8xbf16>, vector<34x8xbf16>, vector<34x34xf32> -> vector<34x34xf32>
    "tpu.trace_stop"() : () -> ()
    %cst_136 = arith.constant 0.353553385 : f32
    %469 = vector.broadcast %cst_136 : f32 to vector<34x34xf32>
    %470 = arith.mulf %468, %469 : vector<34x34xf32>
    %471 = arith.addf %470, %1 : vector<34x34xf32>
    %cst_137 = arith.constant dense<0xFF800000> : vector<34xf32>
    %472 = vector.multi_reduction <maximumf>, %471, %cst_137 [1] : vector<34x34xf32> to vector<34xf32>
    %473 = vector.shape_cast %472 : vector<34xf32> to vector<34x1xf32>
    %474 = vector.broadcast %473 : vector<34x1xf32> to vector<34x34xf32>
    %475 = arith.subf %471, %474 : vector<34x34xf32>
    %476 = math.exp %475 : vector<34x34xf32>
    %cst_138 = arith.constant dense<0.000000e+00> : vector<34xf32>
    %477 = vector.multi_reduction <add>, %476, %cst_138 [1] : vector<34x34xf32> to vector<34xf32>
    %478 = vector.shape_cast %477 : vector<34xf32> to vector<34x1xf32>
    %479 = tpu.reciprocal %478 {approx = true} : vector<34x1xf32> -> vector<34x1xf32>
    %480 = vector.broadcast %479 : vector<34x1xf32> to vector<34x34xf32>
    %481 = arith.mulf %476, %480 : vector<34x34xf32>
    %482 = arith.truncf %481 : vector<34x34xf32> to vector<34x34xbf16>
    %483 = vector.extract_strided_slice %394 {offsets = [0, 96], sizes = [34, 32], strides = [1, 1]} : vector<34x128xf32> to vector<34x32xf32>
    %484 = arith.truncf %483 : vector<34x32xf32> to vector<34x32xbf16>
    %cst_139 = arith.constant dense<0.000000e+00> : vector<34x32xf32>
    %485 = tpu.matmul %482, %484, %cst_139 {dimension_numbers = #tpu.dot_dimension_numbers<[1], [0], [0], [1], [0, 0, 1, 1], [], []>} : vector<34x34xbf16>, vector<34x32xbf16>, vector<34x32xf32> -> vector<34x32xf32>
    %486 = arith.addf %463, %485 : vector<34x32xf32>
    %c106 = arith.constant 106 : index
    %c0_140 = arith.constant 0 : index
    %487 = vector.load %arg3[%c106, %c0_140] : memref<112x128xf32, #tpu.memory_space<vmem>>, vector<1x32xf32>
    %488 = vector.broadcast %487 : vector<1x32xf32> to vector<34x32xf32>
    %489 = arith.addf %486, %488 : vector<34x32xf32>
    %c107 = arith.constant 107 : index
    %c0_141 = arith.constant 0 : index
    %490 = vector.load %arg3[%c107, %c0_141] : memref<112x128xf32, #tpu.memory_space<vmem>>, vector<1x32xf32>
    %c108 = arith.constant 108 : index
    %c0_142 = arith.constant 0 : index
    %491 = vector.load %arg3[%c108, %c0_142] : memref<112x128xf32, #tpu.memory_space<vmem>>, vector<1x32xf32>
    %cst_143 = arith.constant dense<0.000000e+00> : vector<34xf32>
    %492 = vector.multi_reduction <add>, %489, %cst_143 [1] : vector<34x32xf32> to vector<34xf32>
    %493 = vector.shape_cast %492 : vector<34xf32> to vector<34x1xf32>
    %cst_144 = arith.constant 3.200000e+01 : f32
    %494 = vector.broadcast %cst_144 : f32 to vector<34x1xf32>
    %495 = arith.divf %493, %494 : vector<34x1xf32>
    %496 = vector.broadcast %495 : vector<34x1xf32> to vector<34x32xf32>
    %497 = arith.subf %489, %496 : vector<34x32xf32>
    %498 = arith.mulf %497, %497 : vector<34x32xf32>
    %cst_145 = arith.constant dense<0.000000e+00> : vector<34xf32>
    %499 = vector.multi_reduction <add>, %498, %cst_145 [1] : vector<34x32xf32> to vector<34xf32>
    %500 = vector.shape_cast %499 : vector<34xf32> to vector<34x1xf32>
    %cst_146 = arith.constant 3.200000e+01 : f32
    %501 = vector.broadcast %cst_146 : f32 to vector<34x1xf32>
    %502 = arith.divf %500, %501 : vector<34x1xf32>
    %503 = vector.broadcast %495 : vector<34x1xf32> to vector<34x32xf32>
    %504 = arith.subf %489, %503 : vector<34x32xf32>
    %cst_147 = arith.constant 9.99999974E-6 : f32
    %505 = vector.broadcast %cst_147 : f32 to vector<34x1xf32>
    %506 = arith.addf %502, %505 : vector<34x1xf32>
    %507 = math.rsqrt %506 : vector<34x1xf32>
    %508 = vector.broadcast %507 : vector<34x1xf32> to vector<34x32xf32>
    %509 = arith.mulf %504, %508 : vector<34x32xf32>
    %510 = vector.broadcast %490 : vector<1x32xf32> to vector<34x32xf32>
    %511 = arith.mulf %509, %510 : vector<34x32xf32>
    %512 = vector.broadcast %491 : vector<1x32xf32> to vector<34x32xf32>
    %513 = arith.addf %511, %512 : vector<34x32xf32>
    %514 = arith.truncf %513 : vector<34x32xf32> to vector<34x32xbf16>
    %c648 = arith.constant 648 : index
    %c0_148 = arith.constant 0 : index
    %515 = vector.load %arg2[%c648, %c0_148] : memref<840x128xbf16, #tpu.memory_space<vmem>>, vector<32x128xbf16>
    %cst_149 = arith.constant dense<0.000000e+00> : vector<34x128xf32>
    %516 = tpu.matmul %514, %515, %cst_149 {dimension_numbers = #tpu.dot_dimension_numbers<[1], [0], [0], [1], [0, 0, 1, 1], [], []>} : vector<34x32xbf16>, vector<32x128xbf16>, vector<34x128xf32> -> vector<34x128xf32>
    %c109 = arith.constant 109 : index
    %c0_150 = arith.constant 0 : index
    %517 = vector.load %arg3[%c109, %c0_150] : memref<112x128xf32, #tpu.memory_space<vmem>>, vector<1x128xf32>
    %518 = vector.broadcast %517 : vector<1x128xf32> to vector<34x128xf32>
    %519 = arith.addf %516, %518 : vector<34x128xf32>
    %cst_151 = arith.constant 5.000000e-01 : f32
    %520 = vector.broadcast %cst_151 : f32 to vector<34x128xf32>
    %521 = arith.mulf %520, %519 : vector<34x128xf32>
    %cst_152 = arith.constant 4.471500e-02 : f32
    %522 = vector.broadcast %cst_152 : f32 to vector<34x128xf32>
    %523 = arith.mulf %522, %519 : vector<34x128xf32>
    %524 = arith.mulf %523, %519 : vector<34x128xf32>
    %525 = arith.mulf %524, %519 : vector<34x128xf32>
    %526 = arith.addf %519, %525 : vector<34x128xf32>
    %cst_153 = arith.constant 0.797884583 : f32
    %527 = vector.broadcast %cst_153 : f32 to vector<34x128xf32>
    %528 = arith.mulf %527, %526 : vector<34x128xf32>
    %529 = math.tanh %528 : vector<34x128xf32>
    %cst_154 = arith.constant 1.000000e+00 : f32
    %530 = vector.broadcast %cst_154 : f32 to vector<34x128xf32>
    %531 = arith.addf %530, %529 : vector<34x128xf32>
    %532 = arith.mulf %521, %531 : vector<34x128xf32>
    %533 = arith.truncf %532 : vector<34x128xf32> to vector<34x128xbf16>
    %c680 = arith.constant 680 : index
    %c0_155 = arith.constant 0 : index
    %534 = vector.load %arg2[%c680, %c0_155] : memref<840x128xbf16, #tpu.memory_space<vmem>>, vector<128x32xbf16>
    %cst_156 = arith.constant dense<0.000000e+00> : vector<34x32xf32>
    %535 = tpu.matmul %533, %534, %cst_156 {dimension_numbers = #tpu.dot_dimension_numbers<[1], [0], [0], [1], [0, 0, 1, 1], [], []>} : vector<34x128xbf16>, vector<128x32xbf16>, vector<34x32xf32> -> vector<34x32xf32>
    %536 = arith.addf %489, %535 : vector<34x32xf32>
    %c110 = arith.constant 110 : index
    %c0_157 = arith.constant 0 : index
    %537 = vector.load %arg3[%c110, %c0_157] : memref<112x128xf32, #tpu.memory_space<vmem>>, vector<1x32xf32>
    %538 = vector.broadcast %537 : vector<1x32xf32> to vector<34x32xf32>
    %539 = arith.addf %536, %538 : vector<34x32xf32>
    %540 = vector.extract_strided_slice %539 {offsets = [0, 0], sizes = [8, 32], strides = [1, 1]} : vector<34x32xf32> to vector<8x32xf32>
    %c82 = arith.constant 82 : index
    %c0_158 = arith.constant 0 : index
    %541 = vector.load %arg3[%c82, %c0_158] : memref<112x128xf32, #tpu.memory_space<vmem>>, vector<1x32xf32>
    %c83 = arith.constant 83 : index
    %c0_159 = arith.constant 0 : index
    %542 = vector.load %arg3[%c83, %c0_159] : memref<112x128xf32, #tpu.memory_space<vmem>>, vector<1x32xf32>
    %cst_160 = arith.constant dense<0.000000e+00> : vector<8xf32>
    %543 = vector.multi_reduction <add>, %540, %cst_160 [1] : vector<8x32xf32> to vector<8xf32>
    %544 = vector.shape_cast %543 : vector<8xf32> to vector<8x1xf32>
    %cst_161 = arith.constant 3.200000e+01 : f32
    %545 = vector.broadcast %cst_161 : f32 to vector<8x1xf32>
    %546 = arith.divf %544, %545 : vector<8x1xf32>
    %547 = vector.broadcast %546 : vector<8x1xf32> to vector<8x32xf32>
    %548 = arith.subf %540, %547 : vector<8x32xf32>
    %549 = arith.mulf %548, %548 : vector<8x32xf32>
    %cst_162 = arith.constant dense<0.000000e+00> : vector<8xf32>
    %550 = vector.multi_reduction <add>, %549, %cst_162 [1] : vector<8x32xf32> to vector<8xf32>
    %551 = vector.shape_cast %550 : vector<8xf32> to vector<8x1xf32>
    %cst_163 = arith.constant 3.200000e+01 : f32
    %552 = vector.broadcast %cst_163 : f32 to vector<8x1xf32>
    %553 = arith.divf %551, %552 : vector<8x1xf32>
    %554 = vector.broadcast %546 : vector<8x1xf32> to vector<8x32xf32>
    %555 = arith.subf %540, %554 : vector<8x32xf32>
    %cst_164 = arith.constant 9.99999974E-6 : f32
    %556 = vector.broadcast %cst_164 : f32 to vector<8x1xf32>
    %557 = arith.addf %553, %556 : vector<8x1xf32>
    %558 = math.rsqrt %557 : vector<8x1xf32>
    %559 = vector.broadcast %558 : vector<8x1xf32> to vector<8x32xf32>
    %560 = arith.mulf %555, %559 : vector<8x32xf32>
    %561 = vector.broadcast %541 : vector<1x32xf32> to vector<8x32xf32>
    %562 = arith.mulf %560, %561 : vector<8x32xf32>
    %563 = vector.broadcast %542 : vector<1x32xf32> to vector<8x32xf32>
    %564 = arith.addf %562, %563 : vector<8x32xf32>
    %565 = arith.truncf %564 : vector<8x32xf32> to vector<8x32xbf16>
    %c808 = arith.constant 808 : index
    %c0_165 = arith.constant 0 : index
    %566 = vector.load %arg2[%c808, %c0_165] : memref<840x128xbf16, #tpu.memory_space<vmem>>, vector<32x128xbf16>
    %cst_166 = arith.constant dense<0.000000e+00> : vector<8x128xf32>
    %567 = tpu.matmul %565, %566, %cst_166 {dimension_numbers = #tpu.dot_dimension_numbers<[1], [0], [0], [1], [0, 0, 1, 1], [], []>} : vector<8x32xbf16>, vector<32x128xbf16>, vector<8x128xf32> -> vector<8x128xf32>
    %c84 = arith.constant 84 : index
    %c0_167 = arith.constant 0 : index
    %568 = vector.load %arg3[%c84, %c0_167] : memref<112x128xf32, #tpu.memory_space<vmem>>, vector<1x128xf32>
    %569 = vector.broadcast %568 : vector<1x128xf32> to vector<8x128xf32>
    %570 = arith.addf %567, %569 : vector<8x128xf32>
    %c0_168 = arith.constant 0 : index
    %c0_169 = arith.constant 0 : index
    %571 = vector.load %arg4[%c0_168, %c0_169] : memref<8x128xf32, #tpu.memory_space<vmem>>, vector<8x128xf32>
    tpu.vector_store %arg4[%c0_168, %c0_169], %570 {strides = array<i32>} : memref<8x128xf32, #tpu.memory_space<vmem>>, vector<8x128xf32>,
    return
  }
  func.func @transform_0(%arg0: i32) -> (i32, i32) {
    %c0_i32 = arith.constant 0 : i32
    %c0_i32_0 = arith.constant 0 : i32
    %c0_i32_1 = arith.constant 0 : i32
    return %c0_i32, %c0_i32_0 : i32, i32
  }
  func.func @transform_1(%arg0: i32) -> (i32, i32) {
    %c0_i32 = arith.constant 0 : i32
    %c0_i32_0 = arith.constant 0 : i32
    %c0_i32_1 = arith.constant 0 : i32
    return %c0_i32, %c0_i32_0 : i32, i32
  }
  func.func @transform_2(%arg0: i32) -> (i32, i32) {
    %c0_i32 = arith.constant 0 : i32
    %c0_i32_0 = arith.constant 0 : i32
    %c0_i32_1 = arith.constant 0 : i32
    return %c0_i32, %c0_i32_0 : i32, i32
  }
  func.func @transform_3(%arg0: i32) -> (i32, i32) {
    %c0_i32 = arith.constant 0 : i32
    %c0_i32_0 = arith.constant 0 : i32
    %c0_i32_1 = arith.constant 0 : i32
    return %c0_i32, %c0_i32_0 : i32, i32
  }
}

</mosaic_0001>

<bundles_post_ra>
// kernel: vit_pallas.1
= control target key start
LH: loop header
LB: loop body
LE: loop exit
PB: predicated region body
PF: predicated region fallthrough
CT: control target
= control target key end

     0   :  { %8 = vsyncpa [#allocation3], 0  ;;  %s6238_s0 = inlined_call_operand.vmem [shape: f32[34,8], index: 0, kind: input, shape index: {}]   ;;  %s6239_s1 = inlined_call_operand.hbm [shape: bf16[840,128], index: 1, kind: input, shape index: {}]   ;;  %s6240_s2 = inlined_call_operand.hbm [shape: f32[112,128], index: 2, kind: input, shape index: {}]   ;;  %s6241_s3 = inlined_call_operand.vmem [shape: f32[8,128], index: 3, kind: output, shape index: {}]  }
   0x1   :  { %s16_s14 = sshll.u32 %s6239_s1, 4  ;;  %s17_s14 = int_to_ptr.hbm [resolvable:$true] %s16_s14 }
   0x2   :  { %9 = vsyncpa [#allocation5], 0  ;;  %s4738_s15 = smov [#allocation2]   ;;  %s29_s19 = sshll.u32 %s6240_s2, 4  ;;  %s30_s19 = int_to_ptr.hbm [resolvable:$true] %s29_s19 }
   0x3   :  { %s18_s16 = sshll.u32 %s4738_s15, 4  ;;  %s4739_s20 = smov 64   ;;  %s19_s16 = int_to_ptr.vmem [resolvable:$true] %s18_s16 }
   0x4   :  { %s4740_s21 = smov 4   ;;  %s4741_s22 = smov [#allocation4]  }
   0x5   :  { %24 = dma.hbm_to_vmem [thread:$0]  %s17_s14, 6720, %s19_s16, [#allocation3], %s4739_s20, %s4739_s20, %s4740_s21  }
   0x6   :  { %s31_s23 = sshll.u32 %s4741_s22, 4  ;;  %s4742_s24 = smov 128   ;;  %s32_s23 = int_to_ptr.vmem [resolvable:$true] %s31_s23 }
   0x7   :  { %s4743_s1 = smov 8  }
   0x8   :  { %37 = dma.hbm_to_vmem [thread:$0]  %s30_s19, 1792, %s32_s23, [#allocation5], %s4742_s24, %s4742_s24, %s4743_s1  }
   0x9   :  { %4734 = dma.done.wait [#allocation3], 6720  }
   0xa   :  { %4735 = vsyncadd [#allocation3], 4294960576 }
   0xb   :  { %4736 = dma.done.wait [#allocation5], 1792  }
   0xc   :  { %4737 = vsyncadd [#allocation5], 4294965504  ;;  %vm78_vm0 = vcmask 1043456   ;;  %v65_v0 = vld [vmem:[#allocation2] sm:$0xf]  ;;  %v58_v2 = vld [vmem:[%s6238_s0 + $0x8] sm:$0xff] }
   0xd   :  { %v57_v1 = vld [vmem:[%s6238_s0] sm:$0xff]  ;;  %v80_v3 = vsel %vm78_vm0, %v65_v0, 0  ;;  %vm68_vm1 = vcmask 64512   ;;  %v4251_v8 = vld [vmem:[#allocation2 + $0x34] sm:$0xff]  ;;  %v4250_v9 = vld [vmem:[#allocation2 + $0x2c] sm:$0xff]  ;;  %vm209_vm2 = vcmask 261120  }
   0xe   :  { %v62_v4 = vpack.c.bf16 %v58_v2, %v57_v1  ;;  %v61_v5 = vld [vmem:[%s6238_s0 + $0x20] sm:$0x3]  ;;  %89 = vmatpush.bf16.msra.mxu0 %v80_v3  ;;  %4297 = vmatpush.bf16.msra.mxu1 %v80_v3  ;;  %v4249_v10 = vld [vmem:[#allocation2 + $0x24] sm:$0xff]  ;;  %v59_v11 = vld [vmem:[%s6238_s0 + $0x10] sm:$0xff]  ;;  %vm222_vm3 = vcmask 254976   ;;  %v4744_v1 = vmov 32.0  }
   0xf   :  { %v64_v6 = vpack.c.bf16 %v61_v5, %v61_v5  ;;  %v4252_v7 = vld [vmem:[#allocation2 + $0x3c] sm:$0xff]  ;;  %v4247_v15 = vld [vmem:[#allocation2 + $0x14] sm:$0xff]  ;;  %v4246_v16 = vld [vmem:[#allocation2 + $0xc] sm:$0xff]  ;;  %4342 = vrcp.f32 %v4744_v1  ;;  %s4746_s7 = smov 80   ;;  %s4747_s8 = smov 112  }
  0x10   :  { %v60_v12 = vld [vmem:[%s6238_s0 + $0x18] sm:$0xff]  ;;  %v4245_v17 = vld [vmem:[#allocation2 + $0x4] sm:$0xff]  ;;  %v4316_v20 = vld [vmem:[#allocation4 + $0x50] ss:$0 sm:$0xff]  ;;  %s4745_s0 = smov 96   ;;  %s4748_s9 = smov 88  }
  0x11   :  { %3934 = vmatmul.msk.bf16.vlgmr.msra.gmra.mxu0 %vm68_vm1, %v62_v4  ;;  %3936 = vmatmul.msk.bf16.vlgmr.msra.gmra.mxu1 %vm68_vm1, %v64_v6  ;;  %v63_v13 = vpack.c.bf16 %v60_v12, %v59_v11  ;;  %v4248_v14 = vld [vmem:[#allocation2 + $0x1c] sm:$0xff]  ;;  %v4317_v38 = vld [vmem:[#allocation4 + $0x51] ss:$0 sm:$0xff]  ;;  %v47_v39 = vld [vmem:[#allocation4] sm:$0xff]  ;;  %s4749_s10 = smov 120   ;;  %s4750_s11 = smov 72  }
  0x12   :  { %179 = vmatpush.bf16.msrb.mxu1 %v4252_v7  ;;  %v48_v44 = vld [vmem:[#allocation4 + $0x8] sm:$0xff]  ;;  %v49_v49 = vld [vmem:[#allocation4 + $0x10] sm:$0xff]  ;;  %v50_v54 = vld [vmem:[#allocation4 + $0x18] sm:$0xff]  ;;  %s4751_s12 = smov 104   ;;  %s4752_s13 = smov 32  }
  0x13   :  { %v51_v59 = vld [vmem:[#allocation4 + $0x20] sm:$0x3] }
  0x15   :  { %v4343_v2 = vpop.eup %4342 }
  0x16   :  { %180 = vmatpush.bf16.msrb.mxu1 %v4251_v8  ;;  %v227_v3 = vmul.f32 32.0, %v4343_v2  ;;  %vm231_vm4 = vweird.f32 %v4343_v2 }
  0x18   :  { %v228_v4 = vsub.f32 1.0, %v227_v3 }
  0x1a   :  { %181 = vmatpush.bf16.msrb.mxu1 %v4250_v9  ;;  %v229_v5 = vmul.f32 %v4343_v2, %v228_v4  ;;  %v4318_v4 = vld [vmem:[#allocation4 + $0x58] ss:$0 sm:$0xff] }
  0x1c   :  { %v230_v6 = vadd.f32 %v4343_v2, %v229_v5 }
  0x1e   :  { %182 = vmatpush.bf16.msrb.mxu1 %v4249_v10  ;;  %v4819_v7 = vsel %vm231_vm4, %v4343_v2, %v230_v6 }
  0x21   :  { %3935 = vmatmul.msk.bf16.gmra.mxu0 %vm68_vm1, %v63_v13 }
  0x22   :  { %183 = vmatpush.bf16.msrb.mxu1 %v4248_v14 }
  0x26   :  { %184 = vmatpush.bf16.msrb.mxu1 %v4247_v15 }
  0x2a   :  { %185 = vmatpush.bf16.msrb.mxu1 %v4246_v16 }
  0x2e   :  { %186 = vmatpush.bf16.msrb.mxu1 %v4245_v17 }
  0x8e   :  { %v91_v18 = vpop.f32.mrf.mxu0  ;;  %v101_v19 = vpop.f32.mrf.mxu1 }
  0x8f   :  { %v92_v21 = vadd.f32 %v4316_v20, %v91_v18  ;;  %v102_v35 = vadd.f32 %v4316_v20, %v101_v19 }
  0x91   :  { %v105_v25 = vmax.f32 %v92_v21, 0.0  ;;  %v109_v36 = vmax.f32 %v102_v35, 0.0 }
  0x93   :  { %v112_v37 = vpack.c.bf16 %v109_v36, %v109_v36 }
  0x96   :  { %v93_v22 = vpop.f32.mrf.mxu0  ;;  %v103_v23 = vpop.f32.mrf.mxu1 }
  0x97   :  { %v94_v24 = vadd.f32 %v4316_v20, %v93_v22 }
  0x99   :  { %v106_v26 = vmax.f32 %v94_v24, 0.0 }
  0x9b   :  { %v110_v27 = vpack.c.bf16 %v106_v26, %v105_v25 }
  0x9d   :  { %187 = vmatmul.bf16.vlgmr.msrb.gmra.mxu1 %v110_v27 }
  0x9e   :  { %v96_v28 = vpop.f32.mrf.mxu0 }
  0x9f   :  { %v97_v29 = vadd.f32 %v4316_v20, %v96_v28 }
  0xa1   :  { %v107_v32 = vmax.f32 %v97_v29, 0.0 }
  0xa6   :  { %v98_v30 = vpop.f32.mrf.mxu0 }
  0xa7   :  { %v99_v31 = vadd.f32 %v4316_v20, %v98_v30 }
  0xa9   :  { %v108_v33 = vmax.f32 %v99_v31, 0.0 }
  0xab   :  { %v111_v34 = vpack.c.bf16 %v108_v33, %v107_v32  ;;  %v4254_v33 = vld [vmem:[#allocation2 + $0x4c] sm:$0xff] }
  0xac   :  { %374 = vmatpush.bf16.msra.mxu2 %v4254_v33 }
  0xad   :  { %192 = vmatmul.bf16.gmra.mxu1 %v111_v34  ;;  %v4256_v34 = vld [vmem:[#allocation2 + $0x5c] sm:$0xff] }
  0xae   :  { %413 = vmatpush.bf16.msra.mxu3 %v4256_v34 }
  0xbd   :  { %197 = vmatmul.bf16.gmra.mxu1 %v112_v37  ;;  %v4253_v37 = vld [vmem:[#allocation2 + $0x44] sm:$0xff] }
  0xbe   :  { %375 = vmatpush.bf16.msra.mxu2 %v4253_v37 }
 0x11a   :  { %v188_v40 = vpop.f32.mrf.mxu1 }
 0x11b   :  { %v189_v41 = vadd.f32 %v4317_v38, %v188_v40 }
 0x11d   :  { %v4799_v42 = vadd.f32 %v189_v41, %v47_v39 }
 0x11f   :  { %v210_v43 = vsel %vm209_vm2, %v4799_v42, 0.0 }
 0x120   :  { %211 = vadd.xlane.f32.xlu0 %v210_v43 }
 0x122   :  { %v190_v45 = vpop.f32.mrf.mxu1 }
 0x123   :  { %v191_v46 = vadd.f32 %v4317_v38, %v190_v45 }
 0x125   :  { %v4803_v47 = vadd.f32 %v191_v46, %v48_v44 }
 0x127   :  { %v213_v48 = vsel %vm209_vm2, %v4803_v47, 0.0 }
 0x128   :  { %214 = vadd.xlane.f32.xlu0 %v213_v48 }
 0x12a   :  { %v193_v50 = vpop.f32.mrf.mxu1 }
 0x12b   :  { %v194_v51 = vadd.f32 %v4317_v38, %v193_v50 }
 0x12d   :  { %v4807_v52 = vadd.f32 %v194_v51, %v49_v49 }
 0x12f   :  { %v216_v53 = vsel %vm209_vm2, %v4807_v52, 0.0 }
 0x130   :  { %217 = vadd.xlane.f32.xlu1 %v216_v53 }
 0x132   :  { %v195_v55 = vpop.f32.mrf.mxu1 }
 0x133   :  { %v196_v56 = vadd.f32 %v4317_v38, %v195_v55 }
 0x135   :  { %v4811_v57 = vadd.f32 %v196_v56, %v50_v54 }
 0x137   :  { %v219_v58 = vsel %vm209_vm2, %v4811_v57, 0.0 }
 0x138   :  { %220 = vadd.xlane.f32.xlu1 %v219_v58 }
 0x13a   :  { %v198_v60 = vpop.f32.mrf.mxu1 }
 0x13b   :  { %v199_v61 = vadd.f32 %v4317_v38, %v198_v60  ;;  %v4255_v38 = vld [vmem:[#allocation2 + $0x54] sm:$0xff] }
 0x13c   :  { %414 = vmatpush.bf16.msra.mxu3 %v4255_v38 }
 0x13d   :  { %v4815_v62 = vadd.f32 %v199_v61, %v51_v59 }
 0x13f   :  { %v223_v63 = vsel %vm222_vm3, %v4815_v62, 0.0 }
 0x140   :  { %224 = vadd.xlane.f32.xlu2 %v223_v63 }
 0x142   :  { %v200_v0 = vpop.f32.mrf.mxu1 }
 0x193   :  { %v212_v8 = vpop.xlane.xlu0 %211 }
 0x194   :  { %v233_v9 = vmul.f32 %v4819_v7, %v212_v8 }
 0x196   :  { %v4823_v10 = vsub.f32 %v4799_v42, %v233_v9 }
 0x198   :  { %v243_v11 = vmul.f32 %v4823_v10, %v4823_v10 }
 0x19a   :  { %v248_v12 = vsel %vm209_vm2, %v243_v11, 0.0 }
 0x19b   :  { %249 = vadd.xlane.f32.xlu2 %v248_v12  ;;  %v215_v13 = vpop.xlane.xlu0 %214 }
 0x19c   :  { %v234_v14 = vmul.f32 %v4819_v7, %v215_v13  ;;  %v4319_v13 = vld [vmem:[#allocation4 + $0x59] ss:$0 sm:$0xff] }
 0x19e   :  { %v4830_v15 = vsub.f32 %v4803_v47, %v234_v14 }
 0x1a0   :  { %v244_v16 = vmul.f32 %v4830_v15, %v4830_v15 }
 0x1a2   :  { %v251_v17 = vsel %vm209_vm2, %v244_v16, 0.0 }
 0x1a3   :  { %v218_v18 = vpop.xlane.xlu1 %217  ;;  %252 = vadd.xlane.f32.xlu0 %v251_v17 }
 0x1a4   :  { %v235_v19 = vmul.f32 %v4819_v7, %v218_v18 }
 0x1a6   :  { %v4837_v20 = vsub.f32 %v4807_v52, %v235_v19 }
 0x1a8   :  { %v245_v21 = vmul.f32 %v4837_v20, %v4837_v20 }
 0x1aa   :  { %v254_v22 = vsel %vm209_vm2, %v245_v21, 0.0 }
 0x1ab   :  { %255 = vadd.xlane.f32.xlu1 %v254_v22  ;;  %v221_v23 = vpop.xlane.xlu1 %220 }
 0x1ac   :  { %v236_v24 = vmul.f32 %v4819_v7, %v221_v23 }
 0x1ae   :  { %v4844_v25 = vsub.f32 %v4811_v57, %v236_v24 }
 0x1b0   :  { %v246_v26 = vmul.f32 %v4844_v25, %v4844_v25 }
 0x1b2   :  { %v257_v27 = vsel %vm209_vm2, %v246_v26, 0.0 }
 0x1b3   :  { %v225_v28 = vpop.xlane.xlu2 %224  ;;  %258 = vadd.xlane.f32.xlu2 %v257_v27 }
 0x1b4   :  { %v237_v29 = vmul.f32 %v4819_v7, %v225_v28 }
 0x1b6   :  { %v4851_v30 = vsub.f32 %v4815_v62, %v237_v29 }
 0x1b8   :  { %v247_v31 = vmul.f32 %v4851_v30, %v4851_v30 }
 0x1ba   :  { %v260_v32 = vsel %vm222_vm3, %v247_v31, 0.0 }
 0x1bb   :  { %261 = vadd.xlane.f32.xlu0 %v260_v32 }
 0x20e   :  { %v250_v35 = vpop.xlane.xlu2 %249 }
 0x20f   :  { %v263_v36 = vmul.f32 %v250_v35, %v4819_v7 }
 0x211   :  { %v268_v39 = vadd.f32 1e-05, %v263_v36 }
 0x213   :  { %4344 = vrsqrt.f32 %v268_v39  ;;  %vm279_vm6 = vweird.f32 %v268_v39 }
 0x216   :  { %v253_v40 = vpop.xlane.xlu0 %252 }
 0x217   :  { %v264_v41 = vmul.f32 %v253_v40, %v4819_v7 }
 0x219   :  { %v4345_v43 = vpop.eup %4344  ;;  %v269_v44 = vadd.f32 1e-05, %v264_v41 }
 0x21a   :  { %v274_v45 = vmul.f32 %v4345_v43, %v268_v39  ;;  %vm280_vm5 = vweird.f32 %v4345_v43 }
 0x21b   :  { %4346 = vrsqrt.f32 %v269_v44  ;;  %vm281_vm7 = vmor %vm279_vm6, %vm280_vm5  ;;  %vm289_vm9 = vweird.f32 %v269_v44 }
 0x21c   :  { %v275_v46 = vmul.f32 %v4345_v43, %v274_v45 }
 0x21e   :  { %v276_v48 = vmul.f32 0.5, %v275_v46  ;;  %v256_v49 = vpop.xlane.xlu1 %255 }
 0x21f   :  { %v265_v50 = vmul.f32 %v256_v49, %v4819_v7 }
 0x220   :  { %v277_v51 = vsub.f32 1.5, %v276_v48 }
 0x221   :  { %v4347_v53 = vpop.eup %4346  ;;  %v270_v54 = vadd.f32 1e-05, %v265_v50 }
 0x222   :  { %v278_v55 = vmul.f32 %v4345_v43, %v277_v51  ;;  %v284_v56 = vmul.f32 %v4347_v53, %v269_v44  ;;  %vm290_vm8 = vweird.f32 %v4347_v53 }
 0x223   :  { %4348 = vrsqrt.f32 %v270_v54  ;;  %vm291_vm10 = vmor %vm289_vm9, %vm290_vm8  ;;  %vm299_vm12 = vweird.f32 %v270_v54  ;;  %vm493_vm8 = vcmask 277504   ;;  %vm506_vm9 = vcmask 271360  }
 0x224   :  { %v285_v58 = vmul.f32 %v4347_v53, %v284_v56  ;;  %v282_v59 = vsel %vm281_vm7, %v4345_v43, %v278_v55  ;;  %vm565_vm7 = vcmask 1040384  }
 0x225   :  { %v323_v3 = vmul.f32 %v282_v59, %v4823_v10 }
 0x226   :  { %v286_v60 = vmul.f32 0.5, %v285_v58  ;;  %v259_v61 = vpop.xlane.xlu2 %258 }
 0x227   :  { %v266_v63 = vmul.f32 %v259_v61, %v4819_v7  ;;  %v329_v12 = vmul.f32 %v4318_v4, %v323_v3 }
 0x228   :  { %v287_v0 = vsub.f32 1.5, %v286_v60 }
 0x229   :  { %v4349_v1 = vpop.eup %4348  ;;  %v271_v2 = vadd.f32 1e-05, %v266_v63  ;;  %v335_v22 = vadd.f32 %v4319_v13, %v329_v12 }
 0x22a   :  { %v288_v5 = vmul.f32 %v4347_v53, %v287_v0  ;;  %v294_v6 = vmul.f32 %v4349_v1, %v270_v54  ;;  %vm300_vm11 = vweird.f32 %v4349_v1 }
 0x22b   :  { %4350 = vrsqrt.f32 %v271_v2  ;;  %vm301_vm13 = vmor %vm299_vm12, %vm300_vm11  ;;  %vm309_vm15 = vweird.f32 %v271_v2 }
 0x22c   :  { %v292_v8 = vsel %vm291_vm10, %v4347_v53, %v288_v5  ;;  %v295_v9 = vmul.f32 %v4349_v1, %v294_v6 }
 0x22d   :  { %v324_v11 = vmul.f32 %v292_v8, %v4830_v15 }
 0x22e   :  { %v296_v14 = vmul.f32 0.5, %v295_v9  ;;  %v262_v16 = vpop.xlane.xlu0 %261 }
 0x22f   :  { %v267_v17 = vmul.f32 %v262_v16, %v4819_v7  ;;  %v330_v18 = vmul.f32 %v4318_v4, %v324_v11 }
 0x230   :  { %v297_v19 = vsub.f32 1.5, %v296_v14 }
 0x231   :  { %v4351_v21 = vpop.eup %4350  ;;  %v272_v10 = vadd.f32 1e-05, %v267_v17  ;;  %v336_v23 = vadd.f32 %v4319_v13, %v330_v18 }
 0x232   :  { %v298_v24 = vmul.f32 %v4349_v1, %v297_v19  ;;  %v304_v26 = vmul.f32 %v4351_v21, %v271_v2  ;;  %vm310_vm14 = vweird.f32 %v4351_v21 }
 0x233   :  { %4352 = vrsqrt.f32 %v272_v10  ;;  %v340_v27 = vpack.c.bf16 %v336_v23, %v335_v22  ;;  %vm311_vm0 = vmor %vm309_vm15, %vm310_vm14  ;;  %vm319_vm5 = vweird.f32 %v272_v10 }
 0x234   :  { %v305_v28 = vmul.f32 %v4351_v21, %v304_v26  ;;  %v302_v15 = vsel %vm301_vm13, %v4349_v1, %v298_v24 }
 0x235   :  { %3977 = vmatmul.msk.bf16.vlgmr.msra.gmra.mxu2 %vm209_vm2, %v340_v27  ;;  %3988 = vmatmul.msk.bf16.vlgmr.msra.gmra.mxu3 %vm209_vm2, %v340_v27  ;;  %v325_v33 = vmul.f32 %v302_v15, %v4837_v20 }
 0x236   :  { %v306_v29 = vmul.f32 0.5, %v305_v28 }
 0x237   :  { %v331_v39 = vmul.f32 %v4318_v4, %v325_v33 }
 0x238   :  { %v307_v31 = vsub.f32 1.5, %v306_v29 }
 0x239   :  { %v4353_v32 = vpop.eup %4352  ;;  %v337_v44 = vadd.f32 %v4319_v13, %v331_v39 }
 0x23a   :  { %v308_v34 = vmul.f32 %v4351_v21, %v307_v31  ;;  %v314_v35 = vmul.f32 %v4353_v32, %v272_v10  ;;  %vm320_vm4 = vweird.f32 %v4353_v32 }
 0x23b   :  { %vm321_vm6 = vmor %vm319_vm5, %vm320_vm4 }
 0x23c   :  { %v312_v36 = vsel %vm311_vm0, %v4351_v21, %v308_v34  ;;  %v315_v37 = vmul.f32 %v4353_v32, %v314_v35 }
 0x23d   :  { %v326_v38 = vmul.f32 %v312_v36, %v4844_v25 }
 0x23e   :  { %v316_v40 = vmul.f32 0.5, %v315_v37 }
 0x23f   :  { %v332_v41 = vmul.f32 %v4318_v4, %v326_v38 }
 0x240   :  { %v317_v43 = vsub.f32 1.5, %v316_v40 }
 0x241   :  { %v338_v45 = vadd.f32 %v4319_v13, %v332_v41 }
 0x242   :  { %v318_v46 = vmul.f32 %v4353_v32, %v317_v43  ;;  %v4954_v43 = vld [vmem:[#allocation4 + $0x28] sm:$0xff] }
 0x243   :  { %v341_v48 = vpack.c.bf16 %v338_v45, %v337_v44 }
 0x244   :  { %v322_v20 = vsel %vm321_vm6, %v4353_v32, %v318_v46 }
 0x245   :  { %3978 = vmatmul.msk.bf16.gmra.mxu2 %vm209_vm2, %v341_v48  ;;  %3989 = vmatmul.msk.bf16.gmra.mxu3 %vm209_vm2, %v341_v48  ;;  %v327_v49 = vmul.f32 %v322_v20, %v4851_v30 }
 0x247   :  { %v333_v50 = vmul.f32 %v4318_v4, %v327_v49 }
 0x249   :  { %v339_v25 = vadd.f32 %v4319_v13, %v333_v50 }
 0x24b   :  { %v342_v51 = vpack.c.bf16 %v339_v25, %v339_v25 }
 0x255   :  { %3979 = vmatmul.msk.bf16.gmra.mxu2 %vm209_vm2, %v342_v51  ;;  %3990 = vmatmul.msk.bf16.gmra.mxu3 %vm209_vm2, %v342_v51 }
 0x2b8   :  { %v377_v53 = vpop.f32.mrf.mxu2  ;;  %v416_v54 = vpop.f32.mrf.mxu3 }
 0x2c0   :  { %v379_v55 = vpop.f32.mrf.mxu2  ;;  %v418_v56 = vpop.f32.mrf.mxu3 }
 0x2c1   :  { %v4872_v58 = vpack.c.bf16 %v379_v55, %v377_v53  ;;  %v4897_v9 = vpack.c.bf16 %v418_v56, %v416_v54  ;;  %v4963_v54 = vld [vmem:[#allocation4 + $0x30] sm:$0xff] }
 0x2c3   :  { %436 = vrot.lane.b32.xlu0 %v4872_v58, %s4745_s0 }
 0x2c8   :  { %v382_v59 = vpop.f32.mrf.mxu2  ;;  %v421_v60 = vpop.f32.mrf.mxu3 }
 0x2cb   :  { %775 = vrot.lane.b32.xlu0 %v4872_v58, %s4746_s7 }
 0x2d0   :  { %v384_v30 = vpop.f32.mrf.mxu2  ;;  %v423_v61 = vpop.f32.mrf.mxu3 }
 0x2d1   :  { %v4878_v63 = vpack.c.bf16 %v384_v30, %v382_v59  ;;  %v4894_v5 = vpack.c.bf16 %v423_v61, %v421_v60  ;;  %v4967_v59 = vld [vmem:[#allocation4 + $0x40] sm:$0xff] }
 0x2d3   :  { %438 = vrot.lane.b32.xlu2 %v4878_v63, %s4745_s0 }
 0x2d8   :  { %v387_v0 = vpop.f32.mrf.mxu2  ;;  %v426_v1 = vpop.f32.mrf.mxu3 }
 0x2d9   :  { %v4882_v2 = vpack.c.bf16 %v387_v0, %v387_v0  ;;  %v4884_v3 = vpack.c.bf16 %v426_v1, %v426_v1 }
 0x2db   :  { %773 = vrot.lane.b32.xlu0 %v4882_v2, %s4747_s8  ;;  %779 = vrot.lane.b32.xlu2 %v4882_v2, %s4746_s7  ;;  %v567_v4 = vsel %vm565_vm7, %v4884_v3, 0 }
 0x2dc   :  { %440 = vrot.lane.b32.xlu1 %v4882_v2, %s4745_s0  ;;  %574 = vmatpush.bf16.msrb.mxu2 %v567_v4  ;;  %v4974_v4 = vld [vmem:[#allocation4 + $0x48] sm:$0x3] }
 0x2e0   :  { %v389_v6 = vpop.f32.mrf.mxu2  ;;  %v428_v8 = vpop.f32.mrf.mxu3  ;;  %575 = vmatpush.bf16.msrb.mxu2 %v4894_v5 }
 0x2e3   :  { %769 = vrot.lane.b32.xlu2 %v4872_v58, %s4747_s8 }
 0x2e4   :  { %777 = vrot.lane.b32.xlu1 %v4878_v63, %s4746_s7  ;;  %576 = vmatpush.bf16.msrb.mxu2 %v4897_v9 }
 0x2eb   :  { %607 = vrot.lane.b32.xlu2 %v4882_v2, %s4748_s9 }
 0x2ec   :  { %771 = vrot.lane.b32.xlu1 %v4878_v63, %s4747_s8 }
 0x2f3   :  { %603 = vrot.lane.b32.xlu2 %v4872_v58, %s4748_s9 }
 0x2f4   :  { %605 = vrot.lane.b32.xlu1 %v4878_v63, %s4748_s9 }
 0x2fb   :  { %599 = vrot.lane.b32.xlu2 %v4878_v63, %s4749_s10 }
 0x2fc   :  { %597 = vrot.lane.b32.xlu1 %v4872_v58, %s4749_s10 }
 0x304   :  { %601 = vrot.lane.b32.xlu1 %v4882_v2, %s4749_s10 }
 0x30c   :  { %894 = vrot.lane.b32.xlu1 %v4884_v3, %s4739_s20 }
 0x314   :  { %948 = vrot.lane.b32.xlu1 %v4882_v2, %s4750_s11 }
 0x31c   :  { %892 = vrot.lane.b32.xlu1 %v4894_v5, %s4739_s20 }
 0x324   :  { %946 = vrot.lane.b32.xlu1 %v4878_v63, %s4750_s11 }
 0x32c   :  { %944 = vrot.lane.b32.xlu1 %v4872_v58, %s4750_s11 }
 0x32d   :  { %v439_v11 = vpop.permute.xlu2 %438 }
 0x32e   :  { %v455_v21 = vsel %vm68_vm1, %v439_v11, 0 }
 0x334   :  { %938 = vrot.lane.b32.xlu1 %v4872_v58, %s4751_s12 }
 0x335   :  { %v780_v12 = vpop.permute.xlu2 %779  ;;  %v437_v10 = vpop.permute.xlu0 %436 }
 0x336   :  { %v452_v23 = vsel %vm68_vm1, %v437_v10, 0  ;;  %v797_v24 = vsel %vm68_vm1, %v780_v12, 0 }
 0x33d   :  { %v770_v13 = vpop.permute.xlu2 %769  ;;  %v776_v29 = vpop.permute.xlu0 %775 }
 0x33e   :  { %v791_v33 = vsel %vm68_vm1, %v776_v29, 0 }
 0x345   :  { %v608_v14 = vpop.permute.xlu2 %607 }
 0x346   :  { %v625_v16 = vsel %vm68_vm1, %v608_v14, 0 }
 0x347   :  { %632 = vmatpush.bf16.xpose.msrb.mxu3 %v625_v16 }
 0x34d   :  { %v604_v15 = vpop.permute.xlu2 %603  ;;  %v774_v40 = vpop.permute.xlu0 %773 }
 0x34e   :  { %v441_v17 = vpop.permute.xlu1 %440  ;;  %v619_v32 = vsel %vm68_vm1, %v604_v15, 0 }
 0x34f   :  { %v458_v18 = vsel %vm68_vm1, %v441_v17, 0 }
 0x350   :  { %465 = vmatpush.bf16.xpose.msrb.mxu0 %v458_v18 }
 0x355   :  { %v600_v37 = vpop.permute.xlu2 %599 }
 0x356   :  { %v778_v19 = vpop.permute.xlu1 %777 }
 0x357   :  { %v794_v28 = vsel %vm68_vm1, %v778_v19, 0 }
 0x358   :  { %466 = vmatpush.bf16.xpose.msrb.mxu0 %v455_v21 }
 0x35e   :  { %v772_v22 = vpop.permute.xlu1 %771 }
 0x360   :  { %467 = vmatpush.bf16.xpose.msrb.mxu0 %v452_v23 }
 0x366   :  { %v606_v26 = vpop.permute.xlu1 %605 }
 0x367   :  { %3991 = vmatmul.msk.bf16.vlgmr.msrb.gmra.mxu0 %vm68_vm1, %v4872_v58  ;;  %v622_v27 = vsel %vm68_vm1, %v606_v26, 0 }
 0x368   :  { %804 = vmatpush.bf16.xpose.msra.mxu0 %v797_v24  ;;  %633 = vmatpush.bf16.xpose.msrb.mxu3 %v622_v27 }
 0x36e   :  { %v598_v31 = vpop.permute.xlu1 %597 }
 0x370   :  { %805 = vmatpush.bf16.xpose.msra.mxu0 %v794_v28  ;;  %634 = vmatpush.bf16.xpose.msrb.mxu3 %v619_v32 }
 0x376   :  { %v602_v34 = vpop.permute.xlu1 %601 }
 0x377   :  { %3992 = vmatmul.msk.bf16.gmra.mxu0 %vm68_vm1, %v4878_v63  ;;  %3997 = vmatmul.msk.bf16.vlgmr.msrb.gmra.mxu3 %vm68_vm1, %v598_v31 }
 0x378   :  { %806 = vmatpush.bf16.xpose.msra.mxu0 %v791_v33 }
 0x37e   :  { %v895_v35 = vpop.permute.xlu1 %894 }
 0x37f   :  { %v908_v36 = vsel %vm565_vm7, %v895_v35, 0 }
 0x380   :  { %915 = vmatpush.bf16.msra.mxu2 %v908_v36  ;;  %4298 = vmatpush.bf16.msra.mxu3 %v908_v36 }
 0x386   :  { %v4945_v38 = vpop.permute.xlu1 %948 }
 0x387   :  { %3993 = vmatmul.msk.bf16.gmra.mxu0 %vm68_vm1, %v4882_v2  ;;  %3998 = vmatmul.msk.bf16.gmra.mxu3 %vm68_vm1, %v600_v37 }
 0x38e   :  { %v893_v39 = vpop.permute.xlu1 %892 }
 0x38f   :  { %916 = vmatpush.bf16.msra.mxu2 %v893_v39  ;;  %4299 = vmatpush.bf16.msra.mxu3 %v893_v39 }
 0x396   :  { %v947_v28 = vpop.permute.xlu1 %946 }
 0x397   :  { %3999 = vmatmul.msk.bf16.gmra.mxu3 %vm68_vm1, %v602_v34  ;;  %4003 = vmatmul.msk.bf16.vlgmr.msra.gmra.mxu0 %vm68_vm1, %v770_v13 }
 0x39e   :  { %v945_v15 = vpop.permute.xlu1 %944 }
 0x3a6   :  { %v4998_v29 = vpop.permute.xlu1 %938 }
 0x3a7   :  { %4004 = vmatmul.msk.bf16.gmra.mxu0 %vm68_vm1, %v772_v22 }
 0x3b7   :  { %4005 = vmatmul.msk.bf16.gmra.mxu0 %vm68_vm1, %v774_v40  ;;  %v5005_v40 = vld [vmem:[#allocation4 + $0x38] sm:$0xff] }
 0x3e4   :  { %v469_v41 = vpop.f32.mrf.mxu0 }
 0x3e5   :  { %v483_v44 = vmul.f32 0.35355338, %v469_v41 }
 0x3e7   :  { %v4957_v45 = vadd.f32 %v483_v44, %v4954_v43 }
 0x3e9   :  { %v494_v46 = vsel %vm493_vm8, %v4957_v45, -inf }
 0x3ea   :  { %495 = vmax.xlane.f32.xlu1 %v494_v46 }
 0x3ec   :  { %v471_v48 = vpop.f32.mrf.mxu0 }
 0x3ed   :  { %v484_v32 = vmul.f32 0.35355338, %v471_v48 }
 0x3ef   :  { %v5001_v34 = vadd.f32 %v484_v32, %v4963_v54 }
 0x3f1   :  { %v497_v39 = vsel %vm493_vm8, %v5001_v34, -inf }
 0x3f4   :  { %v474_v20 = vpop.f32.mrf.mxu0 }
 0x3f5   :  { %v485_v37 = vmul.f32 0.35355338, %v474_v20 }
 0x3fa   :  { %v4961_v49 = vpop.f32.mrf.mxu3 }
 0x3fc   :  { %v476_v50 = vpop.f32.mrf.mxu0 }
 0x3fd   :  { %v486_v56 = vmul.f32 0.35355338, %v476_v50 }
 0x3ff   :  { %v4970_v30 = vadd.f32 %v486_v56, %v4967_v59 }
 0x401   :  { %v503_v1 = vsel %vm493_vm8, %v4970_v30, -inf }
 0x402   :  { %v638_v25 = vpop.f32.mrf.mxu3 }
 0x403   :  { %v651_v51 = vmul.f32 0.35355338, %v638_v25 }
 0x404   :  { %v479_v53 = vpop.f32.mrf.mxu0 }
 0x405   :  { %v656_v55 = vadd.f32 %v651_v51, %v4963_v54  ;;  %v487_v0 = vmul.f32 0.35355338, %v479_v53 }
 0x407   :  { %v663_v58 = vsel %vm493_vm8, %v656_v55, -inf  ;;  %v4979_v8 = vadd.f32 %v487_v0, %v4974_v4 }
 0x408   :  { %664 = vmax.xlane.f32.xlu1 %v663_v58 }
 0x409   :  { %v507_v12 = vsel %vm506_vm9, %v4979_v8, -inf }
 0x40a   :  { %v641_v60 = vpop.f32.mrf.mxu3 }
 0x40b   :  { %v652_v44 = vmul.f32 0.35355338, %v641_v60 }
 0x40c   :  { %v481_v61 = vpop.f32.mrf.mxu0 }
 0x40d   :  { %v5017_v25 = vadd.f32 %v652_v44, %v5005_v40 }
 0x40f   :  { %v666_v56 = vsel %vm493_vm8, %v5017_v25, -inf }
 0x410   :  { %504 = vmax.xlane.f32.xlu1 %v503_v1 }
 0x412   :  { %v4976_v6 = vpop.f32.mrf.mxu3 }
 0x414   :  { %v4981_v11 = vpop.f32.mrf.mxu0 }
 0x415   :  { %v822_v44 = vmul.f32 0.35355338, %v4981_v11 }
 0x418   :  { %508 = vmax.xlane.f32.xlu1 %v507_v12 }
 0x41a   :  { %v646_v13 = vpop.f32.mrf.mxu3 }
 0x41b   :  { %v654_v53 = vmul.f32 0.35355338, %v646_v13 }
 0x41c   :  { %v810_v14 = vpop.f32.mrf.mxu0 }
 0x41d   :  { %v823_v16 = vmul.f32 0.35355338, %v810_v14  ;;  %v5025_v60 = vadd.f32 %v654_v53, %v4974_v4 }
 0x41f   :  { %v4986_v17 = vadd.f32 %v823_v16, %v4963_v54  ;;  %v672_v61 = vsel %vm506_vm9, %v5025_v60, -inf }
 0x421   :  { %v835_v18 = vsel %vm493_vm8, %v4986_v17, -inf }
 0x422   :  { %v648_v19 = vpop.f32.mrf.mxu3  ;;  %836 = vmax.xlane.f32.xlu1 %v835_v18 }
 0x423   :  { %v966_v19 = vsel %vm68_vm1, %v4945_v38, 0 }
 0x424   :  { %v4990_v21 = vpop.f32.mrf.mxu0 }
 0x42c   :  { %v815_v10 = vpop.f32.mrf.mxu0 }
 0x42d   :  { %v825_v46 = vmul.f32 0.35355338, %v815_v10 }
 0x42f   :  { %v5014_v20 = vadd.f32 %v825_v46, %v4967_v59 }
 0x434   :  { %v818_v22 = vpop.f32.mrf.mxu0 }
 0x435   :  { %v826_v23 = vmul.f32 0.35355338, %v818_v22  ;;  %v963_v22 = vsel %vm68_vm1, %v947_v28, 0  ;;  %v650_v28 = vmul.f32 0.35355338, %v4961_v49 }
 0x437   :  { %v831_v24 = vadd.f32 %v826_v23, %v4974_v4 }
 0x439   :  { %v844_v26 = vsel %vm506_vm9, %v831_v24, -inf }
 0x43a   :  { %845 = vmax.xlane.f32.xlu0 %v844_v26  ;;  %v960_v26 = vsel %vm68_vm1, %v945_v15, 0 }
 0x43c   :  { %v820_v27 = vpop.f32.mrf.mxu0 }
 0x44e   :  { %890 = vrot.lane.b32.xlu0 %v4897_v9, %s4739_s20 }
 0x456   :  { %942 = vrot.lane.b32.xlu0 %v4882_v2, %s4751_s12  ;;  %v490_v2 = vadd.f32 %v485_v37, %v5005_v40 }
 0x458   :  { %v500_v50 = vsel %vm493_vm8, %v490_v2, -inf }
 0x45d   :  { %v496_v31 = vpop.xlane.xlu1 %495 }
 0x45e   :  { %v510_v51 = vsub.f32 %v4957_v45, %v496_v31 }
 0x460   :  { %v515_v58 = vmul.f32 1.442695, %v510_v51 }
 0x47b   :  { %v665_v33 = vpop.xlane.xlu1 %664 }
 0x47c   :  { %v676_v35 = vsub.f32 %v656_v55, %v665_v33  ;;  %v841_v55 = vsel %vm493_vm8, %v5014_v20, -inf  ;;  %v653_v33 = vmul.f32 0.35355338, %v4976_v6 }
 0x47e   :  { %v682_v36 = vmul.f32 1.442695, %v676_v35  ;;  %v5052_v37 = vadd.f32 %v653_v33, %v4967_v59 }
 0x480   :  { %4354 = vpow2.f32 %v682_v36  ;;  %498 = vmax.xlane.f32.xlu0 %v497_v39  ;;  %v669_v49 = vsel %vm493_vm8, %v5052_v37, -inf }
 0x481   :  { %4356 = vpow2.f32 %v515_v58 }
 0x483   :  { %v505_v10 = vpop.xlane.xlu1 %504 }
 0x484   :  { %v513_v23 = vsub.f32 %v4970_v30, %v505_v10  ;;  %v655_v30 = vadd.f32 %v650_v28, %v4954_v43 }
 0x486   :  { %v5008_v41 = vpop.eup %4354  ;;  %v660_v15 = vsel %vm493_vm8, %v655_v30, -inf }
 0x487   :  { %v693_v48 = vsel %vm493_vm8, %v5008_v41, 0.0  ;;  %v5029_v0 = vpop.eup %4356 }
 0x488   :  { %694 = vadd.xlane.f32.xlu1 %v693_v48  ;;  %501 = vmax.xlane.f32.xlu0 %v500_v50  ;;  %v525_v45 = vsel %vm493_vm8, %v5029_v0, 0.0  ;;  %v5059_v48 = vadd.f32 %v822_v44, %v4954_v43 }
 0x490   :  { %842 = vmax.xlane.f32.xlu1 %v841_v55  ;;  %667 = vmax.xlane.f32.xlu0 %v666_v56 }
 0x498   :  { %673 = vmax.xlane.f32.xlu0 %v672_v61 }
 0x4a0   :  { %526 = vadd.xlane.f32.xlu0 %v525_v45 }
 0x4ad   :  { %v846_v1 = vpop.xlane.xlu0 %845 }
 0x4ae   :  { %v851_v12 = vsub.f32 %v831_v24, %v846_v1  ;;  %v521_v24 = vmul.f32 1.442695, %v513_v23 }
 0x4b0   :  { %v860_v13 = vmul.f32 1.442695, %v851_v12 }
 0x4b2   :  { %4358 = vpow2.f32 %v860_v13 }
 0x4b3   :  { %4360 = vpow2.f32 %v521_v24  ;;  %v824_v24 = vmul.f32 0.35355338, %v4990_v21 }
 0x4b4   :  { %725 = vrot.lane.b32.xlu0 %v4884_v3, %s4745_s0 }
 0x4b8   :  { %v4359_v14 = vpop.eup %4358 }
 0x4b9   :  { %v874_v16 = vsel %vm506_vm9, %v4359_v14, 0.0  ;;  %v5043_v27 = vpop.eup %4360 }
 0x4ba   :  { %875 = vadd.xlane.f32.xlu2 %v874_v16  ;;  %v534_v38 = vsel %vm493_vm8, %v5043_v27, 0.0  ;;  %v5075_v16 = vpop.xlane.xlu1 %508 }
 0x4c0   :  { %v891_v18 = vpop.permute.xlu0 %890 }
 0x4c1   :  { %917 = vmatpush.bf16.msra.mxu2 %v891_v18  ;;  %4300 = vmatpush.bf16.msra.mxu3 %v891_v18 }
 0x4c5   :  { %973 = vmatpush.bf16.xpose.msrb.mxu3 %v966_v19 }
 0x4c8   :  { %v943_v31 = vpop.permute.xlu0 %942 }
 0x4cd   :  { %974 = vmatpush.bf16.xpose.msrb.mxu3 %v963_v22  ;;  %v5077_v22 = vpop.xlane.xlu1 %836 }
 0x4d2   :  { %940 = vrot.lane.b32.xlu2 %v4878_v63, %s4751_s12 }
 0x4d5   :  { %975 = vmatpush.bf16.xpose.msrb.mxu3 %v960_v26 }
 0x4de   :  { %535 = vadd.xlane.f32.xlu0 %v534_v38 }
 0x4f3   :  { %v499_v32 = vpop.xlane.xlu0 %498 }
 0x4f4   :  { %v511_v39 = vsub.f32 %v5001_v34, %v499_v32  ;;  %v832_v34 = vsel %vm493_vm8, %v5059_v48, -inf }
 0x4f6   :  { %v517_v46 = vmul.f32 1.442695, %v511_v39 }
 0x4fb   :  { %661 = vmax.xlane.f32.xlu2 %v660_v15  ;;  %v502_v63 = vpop.xlane.xlu0 %501  ;;  %v5084_v26 = vpop.xlane.xlu1 %694 }
 0x4fc   :  { %v512_v35 = vsub.f32 %v490_v2, %v502_v63 }
 0x4fe   :  { %v519_v36 = vmul.f32 1.442695, %v512_v35 }
 0x500   :  { %4362 = vpow2.f32 %v519_v36 }
 0x501   :  { %4364 = vpow2.f32 %v517_v46 }
 0x503   :  { %670 = vmax.xlane.f32.xlu2 %v669_v49  ;;  %v5062_v50 = vpop.xlane.xlu0 %667 }
 0x506   :  { %v4363_v6 = vpop.eup %4362 }
 0x507   :  { %v531_v2 = vsel %vm493_vm8, %v4363_v6, 0.0  ;;  %v4365_v11 = vpop.eup %4364 }
 0x508   :  { %532 = vadd.xlane.f32.xlu1 %v531_v2  ;;  %v528_v51 = vsel %vm493_vm8, %v4365_v11, 0.0 }
 0x50b   :  { %833 = vmax.xlane.f32.xlu2 %v832_v34  ;;  %v5067_v53 = vpop.xlane.xlu0 %673 }
 0x513   :  { %529 = vadd.xlane.f32.xlu2 %v528_v51  ;;  %v527_v55 = vpop.xlane.xlu0 %526 }
 0x526   :  { %v726_v56 = vpop.permute.xlu0 %725 }
 0x527   :  { %v739_v58 = vsel %vm565_vm7, %v726_v56, 0 }
 0x528   :  { %746 = vmatpush.bf16.msra.mxu1 %v739_v58  ;;  %v677_v58 = vsub.f32 %v5017_v25, %v5062_v50 }
 0x52d   :  { %v876_v61 = vpop.xlane.xlu2 %875 }
 0x52e   :  { %4366 = vrcp.f32 %v876_v61 }
 0x534   :  { %v4367_v45 = vpop.eup %4366 }
 0x535   :  { %v886_v1 = vmul.f32 %v4367_v45, %v4359_v14  ;;  %v941_v13 = vpop.permute.xlu2 %940 }
 0x537   :  { %v889_v12 = vpack.c.bf16 %v886_v1, %v886_v1  ;;  %v679_v1 = vsub.f32 %v5025_v60, %v5067_v53  ;;  %v848_v60 = vsub.f32 %v4986_v17, %v5077_v22 }
 0x539   :  { %4008 = vmatmul.msk.bf16.vlgmr.msra.gmra.mxu3 %vm493_vm8, %v889_v12  ;;  %v688_v25 = vmul.f32 1.442695, %v679_v1 }
 0x549   :  { %4009 = vmatmul.msk.bf16.vlgmr.msrb.gmra.mxu3 %vm68_vm1, %v4998_v29 }
 0x551   :  { %v536_v39 = vpop.xlane.xlu0 %535 }
 0x559   :  { %4010 = vmatmul.msk.bf16.gmra.mxu3 %vm68_vm1, %v941_v13 }
 0x569   :  { %4011 = vmatmul.msk.bf16.gmra.mxu3 %vm68_vm1, %v943_v31  ;;  %v5089_v31 = vadd.f32 %v824_v24, %v5005_v40  ;;  %v514_v24 = vsub.f32 %v4979_v8, %v5075_v16 }
 0x56b   :  { %v838_v28 = vsel %vm493_vm8, %v5089_v31, -inf }
 0x56e   :  { %v662_v18 = vpop.xlane.xlu2 %661 }
 0x56f   :  { %v675_v19 = vsub.f32 %v655_v30, %v662_v18  ;;  %v5093_v30 = vpop.xlane.xlu1 %842 }
 0x571   :  { %v680_v10 = vmul.f32 1.442695, %v675_v19 }
 0x573   :  { %4368 = vpow2.f32 %v680_v10 }
 0x574   :  { %4370 = vrcp.f32 %v527_v55 }
 0x576   :  { %v671_v14 = vpop.xlane.xlu2 %670 }
 0x579   :  { %v5079_v23 = vpop.eup %4368 }
 0x57a   :  { %v690_v29 = vsel %vm493_vm8, %v5079_v23, 0.0  ;;  %v4371_v21 = vpop.eup %4370 }
 0x57b   :  { %691 = vadd.xlane.f32.xlu2 %v690_v29  ;;  %v545_v15 = vmul.f32 %v4371_v21, %v5029_v0  ;;  %v533_v35 = vpop.xlane.xlu1 %532  ;;  %v854_v29 = vmul.f32 1.442695, %v848_v60 }
 0x57e   :  { %v5086_v38 = vpop.xlane.xlu2 %833 }
 0x57f   :  { %v847_v17 = vsub.f32 %v5059_v48, %v5086_v38 }
 0x583   :  { %839 = vmax.xlane.f32.xlu2 %v838_v28 }
 0x586   :  { %v530_v32 = vpop.xlane.xlu2 %529 }
 0x587   :  { %4372 = vrcp.f32 %v530_v32  ;;  %v852_v32 = vmul.f32 1.442695, %v847_v17 }
 0x588   :  { %4374 = vrcp.f32 %v533_v35 }
 0x589   :  { %4376 = vrcp.f32 %v536_v39 }
 0x58d   :  { %v4373_v33 = vpop.eup %4372 }
 0x58e   :  { %v546_v63 = vmul.f32 %v4373_v33, %v4365_v11  ;;  %v4375_v44 = vpop.eup %4374 }
 0x58f   :  { %v4377_v49 = vpop.eup %4376  ;;  %v547_v46 = vmul.f32 %v4375_v44, %v4363_v6  ;;  %v684_v6 = vmul.f32 1.442695, %v677_v58 }
 0x590   :  { %v550_v36 = vpack.c.bf16 %v546_v63, %v545_v15  ;;  %v548_v2 = vmul.f32 %v4377_v49, %v5043_v27 }
 0x591   :  { %4378 = vpow2.f32 %v684_v6 }
 0x592   :  { %3994 = vmatmul.msk.bf16.vlgmr.msrb.gmra.mxu2 %vm493_vm8, %v550_v36  ;;  %v551_v34 = vpack.c.bf16 %v548_v2, %v547_v46  ;;  %4380 = vpow2.f32 %v688_v25 }
 0x597   :  { %v5118_v10 = vpop.eup %4378 }
 0x598   :  { %v696_v53 = vsel %vm493_vm8, %v5118_v10, 0.0  ;;  %v5131_v8 = vpop.eup %4380 }
 0x599   :  { %v702_v22 = vsel %vm506_vm9, %v5131_v8, 0.0 }
 0x59b   :  { %723 = vrot.lane.b32.xlu2 %v4894_v5, %s4745_s0 }
 0x5a2   :  { %3995 = vmatmul.msk.bf16.gmra.mxu2 %vm493_vm8, %v551_v34 }
 0x5bc   :  { %v5101_v0 = vpop.f32.mrf.mxu3 }
 0x5c4   :  { %v931_v11 = vpop.f32.mrf.mxu3 }
 0x5cc   :  { %v977_v51 = vpop.f32.mrf.mxu3 }
 0x5cd   :  { %v991_v55 = vmul.f32 0.35355338, %v977_v51 }
 0x5cf   :  { %v5104_v56 = vadd.f32 %v991_v55, %v4954_v43  ;;  %v678_v43 = vsub.f32 %v5052_v37, %v671_v14  ;;  %v523_v14 = vmul.f32 1.442695, %v514_v24 }
 0x5d1   :  { %v1001_v61 = vsel %vm493_vm8, %v5104_v56, -inf  ;;  %v686_v50 = vmul.f32 1.442695, %v678_v43 }
 0x5d2   :  { %1002 = vmax.xlane.f32.xlu1 %v1001_v61 }
 0x5d3   :  { %4382 = vpow2.f32 %v686_v50 }
 0x5d4   :  { %v979_v27 = vpop.f32.mrf.mxu3  ;;  %4384 = vpow2.f32 %v523_v14 }
 0x5d5   :  { %v992_v45 = vmul.f32 0.35355338, %v979_v27  ;;  %4386 = vpow2.f32 %v854_v29 }
 0x5d6   :  { %4388 = vpow2.f32 %v852_v32 }
 0x5d7   :  { %v5113_v12 = vadd.f32 %v992_v45, %v4963_v54 }
 0x5d9   :  { %v1004_v13 = vsel %vm493_vm8, %v5113_v12, -inf  ;;  %v5133_v16 = vpop.eup %4382 }
 0x5da   :  { %1005 = vmax.xlane.f32.xlu0 %v1004_v13  ;;  %v5143_v33 = vpop.eup %4384 }
 0x5db   :  { %v5145_v15 = vpop.eup %4386  ;;  %v537_v48 = vsel %vm506_vm9, %v5143_v33, 0.0 }
 0x5dc   :  { %v982_v18 = vpop.f32.mrf.mxu3  ;;  %v865_v38 = vsel %vm493_vm8, %v5145_v15, 0.0  ;;  %v5151_v36 = vpop.eup %4388 }
 0x5dd   :  { %v993_v19 = vmul.f32 0.35355338, %v982_v18  ;;  %v862_v44 = vsel %vm493_vm8, %v5151_v36, 0.0 }
 0x5df   :  { %v5123_v54 = vadd.f32 %v993_v19, %v5005_v40  ;;  %v699_v40 = vsel %vm493_vm8, %v5133_v16, 0.0 }
 0x5e1   :  { %v1007_v37 = vsel %vm493_vm8, %v5123_v54, -inf }
 0x5e2   :  { %1008 = vmax.xlane.f32.xlu2 %v1007_v37  ;;  %697 = vadd.xlane.f32.xlu0 %v696_v53 }
 0x5e4   :  { %v984_v28 = vpop.f32.mrf.mxu3 }
 0x5e5   :  { %v994_v46 = vmul.f32 0.35355338, %v984_v28 }
 0x5e7   :  { %v5158_v2 = vadd.f32 %v994_v46, %v4967_v59 }
 0x5e9   :  { %v1010_v11 = vsel %vm493_vm8, %v5158_v2, -inf }
 0x5ea   :  { %700 = vadd.xlane.f32.xlu0 %v699_v40  ;;  %703 = vadd.xlane.f32.xlu2 %v702_v22 }
 0x5eb   :  { %721 = vrot.lane.b32.xlu1 %v4897_v9, %s4745_s0 }
 0x5ec   :  { %v987_v21 = vpop.f32.mrf.mxu3 }
 0x5ed   :  { %v995_v34 = vmul.f32 0.35355338, %v987_v21 }
 0x5ee   :  { %v692_v63 = vpop.xlane.xlu2 %691 }
 0x5ef   :  { %v5165_v51 = vadd.f32 %v995_v34, %v4974_v4  ;;  %v850_v4 = vsub.f32 %v5014_v20, %v5093_v30 }
 0x5f1   :  { %v1013_v55 = vsel %vm506_vm9, %v5165_v51, -inf }
 0x5f2   :  { %538 = vadd.xlane.f32.xlu0 %v537_v48  ;;  %866 = vadd.xlane.f32.xlu2 %v865_v38 }
 0x5f4   :  { %v989_v35 = vpop.f32.mrf.mxu3 }
 0x5f6   :  { %v840_v39 = vpop.xlane.xlu2 %839 }
 0x5f7   :  { %v849_v59 = vsub.f32 %v5089_v31, %v840_v39  ;;  %v858_v31 = vmul.f32 1.442695, %v850_v4 }
 0x5fa   :  { %863 = vadd.xlane.f32.xlu0 %v862_v44 }
 0x5fe   :  { %v724_v49 = vpop.permute.xlu2 %723 }
 0x5ff   :  { %747 = vmatpush.bf16.msra.mxu1 %v724_v49 }
 0x60a   :  { %1063 = vrot.lane.b32.xlu2 %v4884_v3, %s4752_s13 }
 0x612   :  { %1059 = vrot.lane.b32.xlu2 %v4897_v9, %s4752_s13  ;;  %v856_v9 = vmul.f32 1.442695, %v849_v59 }
 0x615   :  { %1011 = vmax.xlane.f32.xlu1 %v1010_v11 }
 0x61d   :  { %1014 = vmax.xlane.f32.xlu1 %v1013_v55 }
 0x645   :  { %v1003_v3 = vpop.xlane.xlu1 %1002 }
 0x646   :  { %v1016_v58 = vsub.f32 %v5104_v56, %v1003_v3 }
 0x648   :  { %v1021_v61 = vmul.f32 1.442695, %v1016_v58 }
 0x64a   :  { %4390 = vpow2.f32 %v1021_v61 }
 0x64b   :  { %4392 = vpow2.f32 %v856_v9 }
 0x64c   :  { %4394 = vrcp.f32 %v692_v63 }
 0x64d   :  { %v1006_v6 = vpop.xlane.xlu0 %1005 }
 0x64e   :  { %v1017_v27 = vsub.f32 %v5113_v12, %v1006_v6 }
 0x650   :  { %v5172_v45 = vpop.eup %4390  ;;  %v1023_v1 = vmul.f32 1.442695, %v1017_v27 }
 0x651   :  { %v1031_v43 = vsel %vm493_vm8, %v5172_v45, 0.0  ;;  %v5179_v25 = vpop.eup %4392 }
 0x652   :  { %4396 = vpow2.f32 %v1023_v1  ;;  %1032 = vadd.xlane.f32.xlu1 %v1031_v43  ;;  %v4395_v12 = vpop.eup %4394  ;;  %v868_v20 = vsel %vm493_vm8, %v5179_v25, 0.0  ;;  %v578_v43 = vpop.f32.mrf.mxu2 }
 0x653   :  { %4398 = vrcp.f32 %v5084_v26  ;;  %v710_v26 = vmul.f32 %v4395_v12, %v5079_v23 }
 0x654   :  { %4400 = vpow2.f32 %v858_v31 }
 0x655   :  { %v1009_v56 = vpop.xlane.xlu2 %1008  ;;  %v698_v13 = vpop.xlane.xlu0 %697 }
 0x656   :  { %v1018_v11 = vsub.f32 %v5123_v54, %v1009_v56 }
 0x658   :  { %v5181_v50 = vpop.eup %4396  ;;  %v1025_v58 = vmul.f32 1.442695, %v1018_v11 }
 0x659   :  { %v1034_v30 = vsel %vm493_vm8, %v5181_v50, 0.0  ;;  %v4399_v18 = vpop.eup %4398 }
 0x65a   :  { %869 = vadd.xlane.f32.xlu1 %v868_v20  ;;  %1035 = vadd.xlane.f32.xlu0 %v1034_v30  ;;  %v711_v19 = vmul.f32 %v4399_v18, %v5008_v41  ;;  %v5189_v37 = vpop.eup %4400  ;;  %v580_v56 = vpop.f32.mrf.mxu2  ;;  %v592_v20 = vadd.f32 %v578_v43, %v4799_v42 }
 0x65b   :  { %v871_v29 = vsel %vm493_vm8, %v5189_v37, 0.0 }
 0x65c   :  { %v715_v14 = vpack.c.bf16 %v711_v19, %v710_v26 }
 0x65d   :  { %v722_v24 = vpop.permute.xlu1 %721  ;;  %v704_v60 = vpop.xlane.xlu2 %703 }
 0x65e   :  { %v701_v53 = vpop.xlane.xlu0 %700  ;;  %748 = vmatpush.bf16.msra.mxu1 %v722_v24 }
 0x65f   :  { %4402 = vrcp.f32 %v701_v53 }
 0x660   :  { %4404 = vrcp.f32 %v698_v13 }
 0x661   :  { %4000 = vmatmul.msk.bf16.vlgmr.msra.gmra.mxu1 %vm493_vm8, %v715_v14 }
 0x662   :  { %872 = vadd.xlane.f32.xlu1 %v871_v29 }
 0x665   :  { %v867_v28 = vpop.xlane.xlu2 %866  ;;  %v4403_v23 = vpop.eup %4402 }
 0x666   :  { %v539_v17 = vpop.xlane.xlu0 %538  ;;  %v4405_v41 = vpop.eup %4404  ;;  %v713_v40 = vmul.f32 %v4403_v23, %v5133_v16 }
 0x667   :  { %4406 = vrcp.f32 %v539_v17  ;;  %v712_v21 = vmul.f32 %v4405_v41, %v5118_v10 }
 0x668   :  { %4408 = vrcp.f32 %v704_v60 }
 0x669   :  { %v716_v38 = vpack.c.bf16 %v713_v40, %v712_v21 }
 0x66d   :  { %v4407_v22 = vpop.eup %4406  ;;  %v1064_v32 = vpop.permute.xlu2 %1063 }
 0x66e   :  { %v1077_v63 = vsel %vm565_vm7, %v1064_v32, 0  ;;  %1061 = vrot.lane.b32.xlu0 %v4894_v5, %s4752_s13  ;;  %v549_v48 = vmul.f32 %v4407_v22, %v5143_v33  ;;  %v864_v35 = vpop.xlane.xlu0 %863  ;;  %v4409_v16 = vpop.eup %4408 }
 0x66f   :  { %1084 = vmatpush.bf16.msrb.mxu1 %v1077_v63  ;;  %4410 = vrcp.f32 %v864_v35  ;;  %v714_v49 = vmul.f32 %v4409_v16, %v5131_v8 }
 0x670   :  { %v552_v39 = vpack.c.bf16 %v549_v48, %v549_v48  ;;  %4412 = vrcp.f32 %v867_v28  ;;  %v583_v28 = vpop.f32.mrf.mxu2 }
 0x671   :  { %4001 = vmatmul.msk.bf16.gmra.mxu1 %vm493_vm8, %v716_v38  ;;  %v717_v46 = vpack.c.bf16 %v714_v49, %v714_v49 }
 0x672   :  { %3996 = vmatmul.msk.bf16.gmra.mxu2 %vm493_vm8, %v552_v39 }
 0x675   :  { %v4411_v10 = vpop.eup %4410  ;;  %v1060_v17 = vpop.permute.xlu2 %1059 }
 0x676   :  { %v4413_v44 = vpop.eup %4412  ;;  %v882_v5 = vmul.f32 %v4411_v10, %v5151_v36 }
 0x677   :  { %v883_v33 = vmul.f32 %v4413_v44, %v5145_v15 }
 0x678   :  { %v585_v41 = vpop.f32.mrf.mxu2 }
 0x679   :  { %v887_v34 = vpack.c.bf16 %v883_v33, %v882_v5 }
 0x681   :  { %4002 = vmatmul.msk.bf16.gmra.mxu1 %vm493_vm8, %v717_v46 }
 0x682   :  { %4006 = vmatmul.msk.bf16.vlgmr.msra.gmra.mxu2 %vm493_vm8, %v887_v34 }
 0x688   :  { %v1012_v55 = vpop.xlane.xlu1 %1011 }
 0x689   :  { %v1019_v3 = vsub.f32 %v5158_v2, %v1012_v55  ;;  %v4320_v55 = vld [vmem:[#allocation4 + $0x5a] ss:$0 sm:$0xff] }
 0x68b   :  { %v1027_v59 = vmul.f32 1.442695, %v1019_v3 }
 0x68d   :  { %4414 = vpow2.f32 %v1027_v59  ;;  %v593_v59 = vadd.f32 %v580_v56, %v4803_v47 }
 0x68e   :  { %4416 = vpow2.f32 %v1025_v58 }
 0x690   :  { %v1015_v8 = vpop.xlane.xlu1 %1014 }
 0x691   :  { %v1020_v36 = vsub.f32 %v5165_v51, %v1015_v8 }
 0x693   :  { %v4415_v61 = vpop.eup %4414  ;;  %v1029_v15 = vmul.f32 1.442695, %v1020_v36 }
 0x694   :  { %v4417_v9 = vpop.eup %4416  ;;  %v1040_v6 = vsel %vm493_vm8, %v4415_v61, 0.0 }
 0x695   :  { %4418 = vpow2.f32 %v1029_v15  ;;  %1041 = vadd.xlane.f32.xlu1 %v1040_v6  ;;  %v1037_v27 = vsel %vm493_vm8, %v4417_v9, 0.0 }
 0x698   :  { %1038 = vadd.xlane.f32.xlu0 %v1037_v27 }
 0x69b   :  { %v4419_v54 = vpop.eup %4418 }
 0x69c   :  { %v1043_v2 = vsel %vm506_vm9, %v4419_v54, 0.0 }
 0x69d   :  { %1044 = vadd.xlane.f32.xlu2 %v1043_v2 }
 0x6c5   :  { %v1033_v4 = vpop.xlane.xlu1 %1032 }
 0x6cd   :  { %v870_v1 = vpop.xlane.xlu1 %869  ;;  %v1036_v51 = vpop.xlane.xlu0 %1035 }
 0x6ce   :  { %4420 = vrcp.f32 %v870_v1 }
 0x6d4   :  { %v4421_v13 = vpop.eup %4420 }
 0x6d5   :  { %v873_v31 = vpop.xlane.xlu1 %872  ;;  %v884_v30 = vmul.f32 %v4421_v13, %v5179_v25 }
 0x6d6   :  { %4422 = vrcp.f32 %v873_v31  ;;  %v595_v31 = vadd.f32 %v585_v41, %v4811_v57 }
 0x6d7   :  { %4424 = vrcp.f32 %v1036_v51 }
 0x6d8   :  { %4426 = vrcp.f32 %v1033_v4 }
 0x6dc   :  { %v4423_v12 = vpop.eup %4422 }
 0x6dd   :  { %v885_v18 = vmul.f32 %v4423_v12, %v5189_v37  ;;  %v4425_v19 = vpop.eup %4424  ;;  %v594_v37 = vadd.f32 %v583_v28, %v4807_v52 }
 0x6de   :  { %v750_v26 = vpop.f32.mrf.mxu1  ;;  %v4427_v14 = vpop.eup %4426  ;;  %v1052_v29 = vmul.f32 %v4425_v19, %v5181_v50 }
 0x6df   :  { %v764_v24 = vadd.f32 %v750_v26, %v592_v20  ;;  %v888_v60 = vpack.c.bf16 %v885_v18, %v884_v30  ;;  %v1051_v23 = vmul.f32 %v4427_v14, %v5172_v45 }
 0x6e0   :  { %v1062_v53 = vpop.permute.xlu0 %1061 }
 0x6e1   :  { %4007 = vmatmul.msk.bf16.gmra.mxu2 %vm493_vm8, %v888_v60  ;;  %1085 = vmatpush.bf16.msrb.mxu1 %v1062_v53  ;;  %v1056_v42 = vpack.c.bf16 %v1052_v29, %v1051_v23 }
 0x6e5   :  { %1086 = vmatpush.bf16.msrb.mxu1 %v1060_v17 }
 0x6e6   :  { %v752_v25 = vpop.f32.mrf.mxu1 }
 0x6e8   :  { %4012 = vmatmul.msk.bf16.vlgmr.msrb.gmra.mxu1 %vm493_vm8, %v1056_v42 }
 0x6ee   :  { %v755_v40 = vpop.f32.mrf.mxu1 }
 0x6ef   :  { %v766_v22 = vadd.f32 %v755_v40, %v594_v37 }
 0x6f5   :  { %v588_v32 = vpop.f32.mrf.mxu2 }
 0x6f6   :  { %v757_v21 = vpop.f32.mrf.mxu1  ;;  %v596_v63 = vadd.f32 %v588_v32, %v4815_v62 }
 0x6f7   :  { %v767_v13 = vadd.f32 %v757_v21, %v595_v31  ;;  %v5276_v31 = vld [vmem:[#allocation4 + $0x5b] ss:$0 sm:$0xff] }
 0x6fd   :  { %v590_v48 = vpop.f32.mrf.mxu2 }
 0x6fe   :  { %v760_v50 = vpop.f32.mrf.mxu1 }
 0x6ff   :  { %v768_v38 = vadd.f32 %v760_v50, %v596_v63 }
 0x705   :  { %v919_v34 = vpop.f32.mrf.mxu2 }
 0x706   :  { %v762_v35 = vpop.f32.mrf.mxu1  ;;  %v933_v11 = vadd.f32 %v919_v34, %v764_v24  ;;  %v937_v24 = vadd.f32 %v5101_v0, %v768_v38  ;;  %v4257_v34 = vld [vmem:[#allocation2 + $0x64] sm:$0xff] }
 0x708   :  { %v1042_v39 = vpop.xlane.xlu1 %1041 }
 0x709   :  { %4428 = vrcp.f32 %v1042_v39 }
 0x70b   :  { %v1039_v45 = vpop.xlane.xlu0 %1038 }
 0x70c   :  { %4430 = vrcp.f32 %v1039_v45 }
 0x70d   :  { %v921_v36 = vpop.f32.mrf.mxu2 }
 0x70f   :  { %v4429_v16 = vpop.eup %4428 }
 0x710   :  { %v1054_v49 = vmul.f32 %v4429_v16, %v4415_v61  ;;  %v1045_v52 = vpop.xlane.xlu2 %1044  ;;  %v765_v61 = vadd.f32 %v752_v25, %v593_v59 }
 0x711   :  { %4432 = vrcp.f32 %v1045_v52 }
 0x712   :  { %v4431_v10 = vpop.eup %4430 }
 0x713   :  { %v1053_v44 = vmul.f32 %v4431_v10, %v4417_v9  ;;  %v934_v9 = vadd.f32 %v921_v36, %v765_v61 }
 0x715   :  { %v1057_v5 = vpack.c.bf16 %v1054_v49, %v1053_v44 }
 0x717   :  { %4013 = vmatmul.msk.bf16.gmra.mxu1 %vm493_vm8, %v1057_v5  ;;  %v4433_v33 = vpop.eup %4432 }
 0x718   :  { %v1055_v46 = vmul.f32 %v4433_v33, %v4419_v54  ;;  %v4258_v33 = vld [vmem:[#allocation2 + $0x6c] sm:$0xff] }
 0x719   :  { %1274 = vmatpush.bf16.msrb.mxu0 %v4258_v33 }
 0x71a   :  { %v1058_v62 = vpack.c.bf16 %v1055_v46, %v1055_v46 }
 0x71d   :  { %1275 = vmatpush.bf16.msrb.mxu0 %v4257_v34 }
 0x727   :  { %4014 = vmatmul.msk.bf16.gmra.mxu1 %vm493_vm8, %v1058_v62 }
 0x764   :  { %v924_v4 = vpop.f32.mrf.mxu2 }
 0x765   :  { %v1088_v3 = vpop.f32.mrf.mxu1  ;;  %v935_v1 = vadd.f32 %v924_v4, %v766_v22 }
 0x766   :  { %v1102_v58 = vadd.f32 %v1088_v3, %v933_v11 }
 0x768   :  { %v5225_v8 = vadd.f32 %v4320_v55, %v1102_v58 }
 0x76a   :  { %v1116_v15 = vsel %vm209_vm2, %v5225_v8, 0.0 }
 0x76b   :  { %1117 = vadd.xlane.f32.xlu1 %v1116_v15 }
 0x76c   :  { %v926_v56 = vpop.f32.mrf.mxu2 }
 0x76d   :  { %v1090_v6 = vpop.f32.mrf.mxu1  ;;  %v936_v20 = vadd.f32 %v926_v56, %v767_v13 }
 0x76e   :  { %v1103_v27 = vadd.f32 %v1090_v6, %v934_v9 }
 0x770   :  { %v5229_v54 = vadd.f32 %v4320_v55, %v1103_v27 }
 0x772   :  { %v1119_v2 = vsel %vm209_vm2, %v5229_v54, 0.0 }
 0x773   :  { %1120 = vadd.xlane.f32.xlu1 %v1119_v2 }
 0x794   :  { %v1093_v47 = vpop.f32.mrf.mxu1 }
 0x795   :  { %v1104_v43 = vadd.f32 %v1093_v47, %v935_v1 }
 0x797   :  { %v5234_v51 = vadd.f32 %v4320_v55, %v1104_v43 }
 0x799   :  { %v1122_v12 = vsel %vm209_vm2, %v5234_v51, 0.0 }
 0x79a   :  { %1123 = vadd.xlane.f32.xlu1 %v1122_v12 }
 0x79c   :  { %v1095_v30 = vpop.f32.mrf.mxu1 }
 0x79d   :  { %v1105_v18 = vadd.f32 %v1095_v30, %v936_v20 }
 0x79f   :  { %v5238_v26 = vadd.f32 %v4320_v55, %v1105_v18  ;;  %v4322_v18 = vld [vmem:[#allocation4 + $0x5c] ss:$0 sm:$0xff] }
 0x7a1   :  { %v1125_v19 = vsel %vm209_vm2, %v5238_v26, 0.0 }
 0x7a2   :  { %1126 = vadd.xlane.f32.xlu1 %v1125_v19 }
 0x7a4   :  { %v1098_v57 = vpop.f32.mrf.mxu1 }
 0x7a5   :  { %v1106_v60 = vadd.f32 %v1098_v57, %v937_v24 }
 0x7a7   :  { %v5243_v53 = vadd.f32 %v4320_v55, %v1106_v60 }
 0x7a9   :  { %v1128_v14 = vsel %vm222_vm3, %v5243_v53, 0.0 }
 0x7aa   :  { %1129 = vadd.xlane.f32.xlu2 %v1128_v14 }
 0x7ac   :  { %v1100_v29 = vpop.f32.mrf.mxu1 }
 0x7de   :  { %v1118_v28 = vpop.xlane.xlu1 %1117 }
 0x7df   :  { %v1131_v17 = vmul.f32 %v1118_v28, %v4819_v7 }
 0x7e1   :  { %v1136_v23 = vsub.f32 %v5225_v8, %v1131_v17 }
 0x7e3   :  { %v1141_v42 = vmul.f32 %v1136_v23, %v1136_v23 }
 0x7e5   :  { %v1146_v25 = vsel %vm209_vm2, %v1141_v42, 0.0 }
 0x7e6   :  { %v1121_v37 = vpop.xlane.xlu1 %1120  ;;  %1147 = vadd.xlane.f32.xlu1 %v1146_v25 }
 0x7e7   :  { %v1132_v0 = vmul.f32 %v1121_v37, %v4819_v7 }
 0x7e9   :  { %v1137_v41 = vsub.f32 %v5229_v54, %v1132_v0 }
 0x7eb   :  { %v1142_v40 = vmul.f32 %v1137_v41, %v1137_v41 }
 0x7ed   :  { %v1149_v22 = vsel %vm209_vm2, %v1142_v40, 0.0 }
 0x7ee   :  { %1150 = vadd.xlane.f32.xlu0 %v1149_v22 }
 0x80d   :  { %v1124_v32 = vpop.xlane.xlu1 %1123 }
 0x80e   :  { %v1133_v21 = vmul.f32 %v1124_v32, %v4819_v7 }
 0x810   :  { %v5255_v63 = vsub.f32 %v5234_v51, %v1133_v21 }
 0x812   :  { %v1143_v48 = vmul.f32 %v5255_v63, %v5255_v63 }
 0x814   :  { %v1152_v50 = vsel %vm209_vm2, %v1143_v48, 0.0 }
 0x815   :  { %1153 = vadd.xlane.f32.xlu1 %v1152_v50  ;;  %v1127_v38 = vpop.xlane.xlu1 %1126 }
 0x816   :  { %v1134_v35 = vmul.f32 %v1127_v38, %v4819_v7 }
 0x818   :  { %v5262_v39 = vsub.f32 %v5238_v26, %v1134_v35 }
 0x81a   :  { %v1144_v45 = vmul.f32 %v5262_v39, %v5262_v39 }
 0x81c   :  { %v1155_v16 = vsel %vm209_vm2, %v1144_v45, 0.0 }
 0x81d   :  { %1156 = vadd.xlane.f32.xlu0 %v1155_v16  ;;  %v1130_v10 = vpop.xlane.xlu2 %1129 }
 0x81e   :  { %v1135_v44 = vmul.f32 %v1130_v10, %v4819_v7 }
 0x820   :  { %v5269_v49 = vsub.f32 %v5243_v53, %v1135_v44 }
 0x822   :  { %v1145_v52 = vmul.f32 %v5269_v49, %v5269_v49 }
 0x824   :  { %v1158_v5 = vsel %vm222_vm3, %v1145_v52, 0.0 }
 0x825   :  { %1159 = vadd.xlane.f32.xlu2 %v1158_v5 }
 0x859   :  { %v1148_v46 = vpop.xlane.xlu1 %1147 }
 0x85a   :  { %v1161_v62 = vmul.f32 %v1148_v46, %v4819_v7 }
 0x85c   :  { %v1166_v11 = vadd.f32 1e-05, %v1161_v62 }
 0x85e   :  { %4434 = vrsqrt.f32 %v1166_v11  ;;  %vm1177_vm11 = vweird.f32 %v1166_v11 }
 0x861   :  { %v1151_v55 = vpop.xlane.xlu0 %1150 }
 0x862   :  { %v1162_v3 = vmul.f32 %v1151_v55, %v4819_v7 }
 0x864   :  { %v4435_v58 = vpop.eup %4434  ;;  %v1167_v59 = vadd.f32 1e-05, %v1162_v3 }
 0x865   :  { %v1172_v36 = vmul.f32 %v4435_v58, %v1166_v11  ;;  %vm1178_vm10 = vweird.f32 %v4435_v58 }
 0x866   :  { %4436 = vrsqrt.f32 %v1167_v59  ;;  %vm1179_vm12 = vmor %vm1177_vm11, %vm1178_vm10  ;;  %vm1187_vm14 = vweird.f32 %v1167_v59 }
 0x867   :  { %v1173_v61 = vmul.f32 %v4435_v58, %v1172_v36 }
 0x869   :  { %v1174_v15 = vmul.f32 0.5, %v1173_v61 }
 0x86b   :  { %v1175_v9 = vsub.f32 1.5, %v1174_v15 }
 0x86c   :  { %v4437_v6 = vpop.eup %4436 }
 0x86d   :  { %v1176_v27 = vmul.f32 %v4435_v58, %v1175_v9  ;;  %v1182_v2 = vmul.f32 %v4437_v6, %v1167_v59  ;;  %vm1188_vm13 = vweird.f32 %v4437_v6 }
 0x86e   :  { %vm1189_vm15 = vmor %vm1187_vm14, %vm1188_vm13 }
 0x86f   :  { %v1183_v4 = vmul.f32 %v4437_v6, %v1182_v2  ;;  %v1180_v1 = vsel %vm1179_vm12, %v4435_v58, %v1176_v27  ;;  %v4266_v2 = vld [vmem:[#allocation2 + $0xac] sm:$0xff] }
 0x870   :  { %v1221_v56 = vmul.f32 %v1180_v1, %v1136_v23  ;;  %1403 = vmatpush.bf16.msrb.mxu2 %v4266_v2  ;;  %v4264_v1 = vld [vmem:[#allocation2 + $0x9c] sm:$0xff] }
 0x871   :  { %v1184_v47 = vmul.f32 0.5, %v1183_v4  ;;  %v4265_v4 = vld [vmem:[#allocation2 + $0xa4] sm:$0xff] }
 0x872   :  { %v1227_v20 = vmul.f32 %v5276_v31, %v1221_v56  ;;  %v4261_v56 = vld [vmem:[#allocation2 + $0x84] sm:$0xff] }
 0x873   :  { %v1185_v43 = vsub.f32 1.5, %v1184_v47  ;;  %v4263_v47 = vld [vmem:[#allocation2 + $0x94] sm:$0xff] }
 0x874   :  { %v1233_v24 = vadd.f32 %v4322_v18, %v1227_v20  ;;  %1404 = vmatpush.bf16.msrb.mxu2 %v4265_v4 }
 0x875   :  { %v1186_v13 = vmul.f32 %v4437_v6, %v1185_v43  ;;  %v4262_v43 = vld [vmem:[#allocation2 + $0x8c] sm:$0xff] }
 0x877   :  { %v1190_v12 = vsel %vm1189_vm15, %v4437_v6, %v1186_v13  ;;  %v4260_v13 = vld [vmem:[#allocation2 + $0x7c] sm:$0xff] }
 0x878   :  { %v1222_v30 = vmul.f32 %v1190_v12, %v1137_v41  ;;  %1405 = vmatpush.bf16.msrb.mxu2 %v4264_v1 }
 0x87a   :  { %v1228_v19 = vmul.f32 %v5276_v31, %v1222_v30 }
 0x87c   :  { %v1234_v57 = vadd.f32 %v4322_v18, %v1228_v19  ;;  %1406 = vmatpush.bf16.msrb.mxu2 %v4263_v47 }
 0x87e   :  { %v1238_v60 = vpack.c.bf16 %v1234_v57, %v1233_v24 }
 0x880   :  { %4023 = vmatmul.msk.bf16.vlgmr.msrb.gmra.mxu0 %vm209_vm2, %v1238_v60  ;;  %1407 = vmatpush.bf16.msrb.mxu2 %v4262_v43 }
 0x884   :  { %1408 = vmatpush.bf16.msrb.mxu2 %v4261_v56 }
 0x888   :  { %v1154_v14 = vpop.xlane.xlu1 %1153  ;;  %1409 = vmatpush.bf16.msrb.mxu2 %v4260_v13 }
 0x889   :  { %v1163_v29 = vmul.f32 %v1154_v14, %v4819_v7 }
 0x88b   :  { %v1168_v28 = vadd.f32 1e-05, %v1163_v29 }
 0x88d   :  { %4438 = vrsqrt.f32 %v1168_v28  ;;  %vm1197_vm4 = vweird.f32 %v1168_v28 }
 0x890   :  { %v1157_v17 = vpop.xlane.xlu0 %1156 }
 0x891   :  { %v1164_v23 = vmul.f32 %v1157_v17, %v4819_v7 }
 0x893   :  { %v4439_v42 = vpop.eup %4438  ;;  %v1169_v25 = vadd.f32 1e-05, %v1164_v23 }
 0x894   :  { %v1192_v37 = vmul.f32 %v4439_v42, %v1168_v28  ;;  %vm1198_vm0 = vweird.f32 %v4439_v42 }
 0x895   :  { %4440 = vrsqrt.f32 %v1169_v25  ;;  %vm1199_vm5 = vmor %vm1197_vm4, %vm1198_vm0  ;;  %vm1207_vm10 = vweird.f32 %v1169_v25 }
 0x896   :  { %v1193_v0 = vmul.f32 %v4439_v42, %v1192_v37 }
 0x898   :  { %v1194_v41 = vmul.f32 0.5, %v1193_v0  ;;  %v1160_v40 = vpop.xlane.xlu2 %1159 }
 0x899   :  { %v1165_v22 = vmul.f32 %v1160_v40, %v4819_v7 }
 0x89a   :  { %v1195_v32 = vsub.f32 1.5, %v1194_v41 }
 0x89b   :  { %v4441_v21 = vpop.eup %4440  ;;  %v1170_v48 = vadd.f32 1e-05, %v1165_v22 }
 0x89c   :  { %v1196_v50 = vmul.f32 %v4439_v42, %v1195_v32  ;;  %v1202_v38 = vmul.f32 %v4441_v21, %v1169_v25  ;;  %vm1208_vm6 = vweird.f32 %v4441_v21 }
 0x89d   :  { %4442 = vrsqrt.f32 %v1170_v48  ;;  %vm1209_vm11 = vmor %vm1207_vm10, %vm1208_vm6  ;;  %vm1217_vm13 = vweird.f32 %v1170_v48 }
 0x89e   :  { %v1203_v35 = vmul.f32 %v4441_v21, %v1202_v38  ;;  %v1200_v45 = vsel %vm1199_vm5, %v4439_v42, %v1196_v50 }
 0x89f   :  { %v1223_v52 = vmul.f32 %v1200_v45, %v5255_v63 }
 0x8a0   :  { %v1204_v16 = vmul.f32 0.5, %v1203_v35 }
 0x8a1   :  { %v1229_v11 = vmul.f32 %v5276_v31, %v1223_v52 }
 0x8a2   :  { %v1205_v10 = vsub.f32 1.5, %v1204_v16 }
 0x8a3   :  { %v4443_v44 = vpop.eup %4442  ;;  %v1235_v59 = vadd.f32 %v4322_v18, %v1229_v11 }
 0x8a4   :  { %v1206_v5 = vmul.f32 %v4441_v21, %v1205_v10  ;;  %v1212_v33 = vmul.f32 %v4443_v44, %v1170_v48  ;;  %vm1218_vm12 = vweird.f32 %v4443_v44 }
 0x8a5   :  { %vm1219_vm14 = vmor %vm1217_vm13, %vm1218_vm12 }
 0x8a6   :  { %v1210_v46 = vsel %vm1209_vm11, %v4441_v21, %v1206_v5  ;;  %v1213_v62 = vmul.f32 %v4443_v44, %v1212_v33 }
 0x8a7   :  { %v1224_v34 = vmul.f32 %v1210_v46, %v5262_v39 }
 0x8a8   :  { %v1214_v55 = vmul.f32 0.5, %v1213_v62 }
 0x8a9   :  { %v1230_v3 = vmul.f32 %v5276_v31, %v1224_v34 }
 0x8aa   :  { %v1215_v58 = vsub.f32 1.5, %v1214_v55 }
 0x8ab   :  { %v1236_v36 = vadd.f32 %v4322_v18, %v1230_v3 }
 0x8ac   :  { %v1216_v61 = vmul.f32 %v4443_v44, %v1215_v58 }
 0x8ad   :  { %v1239_v63 = vpack.c.bf16 %v1236_v36, %v1235_v59 }
 0x8ae   :  { %v1220_v15 = vsel %vm1219_vm14, %v4443_v44, %v1216_v61 }
 0x8af   :  { %4024 = vmatmul.msk.bf16.gmra.mxu0 %vm209_vm2, %v1239_v63  ;;  %v1225_v9 = vmul.f32 %v1220_v15, %v5269_v49  ;;  %v4259_v49 = vld [vmem:[#allocation2 + $0x74] sm:$0xff] }
 0x8b0   :  { %1410 = vmatpush.bf16.msrb.mxu2 %v4259_v49 }
 0x8b1   :  { %v1231_v39 = vmul.f32 %v5276_v31, %v1225_v9  ;;  %v4323_v31 = vld [vmem:[#allocation4 + $0x5d] ss:$0 sm:$0xff] }
 0x8b3   :  { %v1237_v6 = vadd.f32 %v4322_v18, %v1231_v39 }
 0x8b5   :  { %v1240_v27 = vpack.c.bf16 %v1237_v6, %v1237_v6 }
 0x8bf   :  { %4025 = vmatmul.msk.bf16.gmra.mxu0 %vm209_vm2, %v1240_v27 }
 0x8fd   :  { %v1277_v12 = vpop.f32.mrf.mxu0 }
 0x8fe   :  { %v1278_v20 = vadd.f32 %v4323_v31, %v1277_v12 }
 0x900   :  { %v1296_v30 = vmul.f32 0.044715, %v1278_v20  ;;  %v1291_v41 = vmul.f32 0.5, %v1278_v20 }
 0x902   :  { %v1301_v18 = vmul.f32 %v1296_v30, %v1278_v20 }
 0x904   :  { %v1306_v19 = vmul.f32 %v1301_v18, %v1278_v20 }
 0x905   :  { %v1279_v24 = vpop.f32.mrf.mxu0 }
 0x906   :  { %v1311_v57 = vadd.f32 %v1306_v19, %v1278_v20  ;;  %v1280_v60 = vadd.f32 %v4323_v31, %v1279_v24  ;;  %v4324_v20 = vld [vmem:[#allocation4 + $0x5e] ss:$0 sm:$0xff] }
 0x908   :  { %v1297_v14 = vmul.f32 0.044715, %v1280_v60  ;;  %v1316_v29 = vmul.f32 0.7978846, %v1311_v57  ;;  %v1292_v40 = vmul.f32 0.5, %v1280_v60 }
 0x90a   :  { %v1302_v28 = vmul.f32 %v1297_v14, %v1280_v60  ;;  %4444 = vtanh.f32 %v1316_v29 }
 0x90c   :  { %v1307_v17 = vmul.f32 %v1302_v28, %v1280_v60 }
 0x90e   :  { %v1312_v23 = vadd.f32 %v1307_v17, %v1280_v60 }
 0x910   :  { %v1317_v42 = vmul.f32 0.7978846, %v1312_v23  ;;  %v4445_v25 = vpop.eup %4444 }
 0x911   :  { %v1326_v37 = vadd.f32 1.0, %v4445_v25 }
 0x912   :  { %4446 = vtanh.f32 %v1317_v42 }
 0x913   :  { %v1331_v32 = vmul.f32 %v1326_v37, %v1291_v41 }
 0x918   :  { %v4447_v0 = vpop.eup %4446 }
 0x919   :  { %v1327_v22 = vadd.f32 1.0, %v4447_v0 }
 0x91b   :  { %v1332_v21 = vmul.f32 %v1327_v22, %v1292_v40 }
 0x91d   :  { %v1336_v48 = vpack.c.bf16 %v1332_v21, %v1331_v32 }
 0x91f   :  { %1411 = vmatmul.bf16.vlgmr.msrb.gmra.mxu2 %v1336_v48 }
 0x92c   :  { %v1282_v50 = vpop.f32.mrf.mxu0 }
 0x92d   :  { %v1283_v38 = vadd.f32 %v4323_v31, %v1282_v50 }
 0x92f   :  { %v1298_v35 = vmul.f32 0.044715, %v1283_v38  ;;  %v1293_v27 = vmul.f32 0.5, %v1283_v38 }
 0x931   :  { %v1303_v45 = vmul.f32 %v1298_v35, %v1283_v38 }
 0x933   :  { %v1308_v16 = vmul.f32 %v1303_v45, %v1283_v38 }
 0x934   :  { %v1284_v10 = vpop.f32.mrf.mxu0 }
 0x935   :  { %v1285_v44 = vadd.f32 %v4323_v31, %v1284_v10  ;;  %v1313_v52 = vadd.f32 %v1308_v16, %v1283_v38 }
 0x937   :  { %v1299_v5 = vmul.f32 0.044715, %v1285_v44  ;;  %v1318_v46 = vmul.f32 0.7978846, %v1313_v52  ;;  %v1294_v2 = vmul.f32 0.5, %v1285_v44 }
 0x939   :  { %v1304_v33 = vmul.f32 %v1299_v5, %v1285_v44  ;;  %4448 = vtanh.f32 %v1318_v46 }
 0x93b   :  { %v1309_v62 = vmul.f32 %v1304_v33, %v1285_v44 }
 0x93c   :  { %v1287_v34 = vpop.f32.mrf.mxu0 }
 0x93d   :  { %v1288_v11 = vadd.f32 %v4323_v31, %v1287_v34  ;;  %v1314_v55 = vadd.f32 %v1309_v62, %v1285_v44 }
 0x93f   :  { %v1319_v3 = vmul.f32 0.7978846, %v1314_v55  ;;  %v1300_v58 = vmul.f32 0.044715, %v1288_v11  ;;  %v4449_v36 = vpop.eup %4448  ;;  %v1295_v49 = vmul.f32 0.5, %v1288_v11 }
 0x940   :  { %v1328_v9 = vadd.f32 1.0, %v4449_v36 }
 0x941   :  { %4450 = vtanh.f32 %v1319_v3  ;;  %v1305_v59 = vmul.f32 %v1300_v58, %v1288_v11 }
 0x942   :  { %v1333_v1 = vmul.f32 %v1328_v9, %v1293_v27  ;;  %v4269_v27 = vld [vmem:[#allocation2 + $0xc4] sm:$0xff] }
 0x943   :  { %v1310_v61 = vmul.f32 %v1305_v59, %v1288_v11 }
 0x944   :  { %v1289_v63 = vpop.f32.mrf.mxu0 }
 0x945   :  { %v1315_v15 = vadd.f32 %v1310_v61, %v1288_v11  ;;  %v4268_v63 = vld [vmem:[#allocation2 + $0xbc] sm:$0xff] }
 0x946   :  { %1596 = vmatpush.bf16.msra.mxu3 %v4268_v63 }
 0x947   :  { %v4451_v39 = vpop.eup %4450  ;;  %v1320_v6 = vmul.f32 0.7978846, %v1315_v15  ;;  %v4270_v15 = vld [vmem:[#allocation2 + $0xcc] sm:$0xff] }
 0x948   :  { %v1329_v4 = vadd.f32 1.0, %v4451_v39  ;;  %1635 = vmatpush.bf16.msra.mxu1 %v4270_v15 }
 0x949   :  { %4452 = vtanh.f32 %v1320_v6  ;;  %v4267_v6 = vld [vmem:[#allocation2 + $0xb4] sm:$0xff] }
 0x94a   :  { %v1334_v47 = vmul.f32 %v1329_v4, %v1294_v2  ;;  %1597 = vmatpush.bf16.msra.mxu3 %v4267_v6 }
 0x94c   :  { %v1337_v43 = vpack.c.bf16 %v1334_v47, %v1333_v1  ;;  %1636 = vmatpush.bf16.msra.mxu1 %v4269_v27 }
 0x94e   :  { %1416 = vmatmul.bf16.gmra.mxu2 %v1337_v43 }
 0x94f   :  { %v4453_v56 = vpop.eup %4452 }
 0x950   :  { %v1330_v13 = vadd.f32 1.0, %v4453_v56 }
 0x952   :  { %v1335_v31 = vmul.f32 %v1330_v13, %v1295_v49 }
 0x954   :  { %v1338_v12 = vpack.c.bf16 %v1335_v31, %v1335_v31 }
 0x95e   :  { %1421 = vmatmul.bf16.gmra.mxu2 %v1338_v12 }
 0x9a2   :  { %v1412_v30 = vpop.f32.mrf.mxu2 }
 0x9a3   :  { %v1426_v18 = vadd.f32 %v1412_v30, %v5225_v8 }
 0x9a5   :  { %v5293_v19 = vadd.f32 %v4324_v20, %v1426_v18 }
 0x9a7   :  { %v1440_v24 = vsel %vm209_vm2, %v5293_v19, 0.0 }
 0x9a8   :  { %1441 = vadd.xlane.f32.xlu1 %v1440_v24 }
 0x9aa   :  { %v1414_v57 = vpop.f32.mrf.mxu2 }
 0x9ab   :  { %v1427_v60 = vadd.f32 %v1414_v57, %v5229_v54 }
 0x9ad   :  { %v5298_v14 = vadd.f32 %v4324_v20, %v1427_v60 }
 0x9af   :  { %v1443_v29 = vsel %vm209_vm2, %v5298_v14, 0.0 }
 0x9b0   :  { %1444 = vadd.xlane.f32.xlu0 %v1443_v29  ;;  %v5346_v29 = vld [vmem:[#allocation4 + $0x60] ss:$0 sm:$0xff] }
 0x9d1   :  { %v1417_v28 = vpop.f32.mrf.mxu2 }
 0x9d2   :  { %v1428_v17 = vadd.f32 %v1417_v28, %v5234_v51 }
 0x9d4   :  { %v5303_v23 = vadd.f32 %v4324_v20, %v1428_v17 }
 0x9d6   :  { %v1446_v8 = vsel %vm209_vm2, %v5303_v23, 0.0 }
 0x9d7   :  { %1447 = vadd.xlane.f32.xlu2 %v1446_v8 }
 0x9d9   :  { %v1419_v42 = vpop.f32.mrf.mxu2 }
 0x9da   :  { %v1429_v25 = vadd.f32 %v1419_v42, %v5238_v26 }
 0x9dc   :  { %v5308_v37 = vadd.f32 %v4324_v20, %v1429_v25 }
 0x9de   :  { %v1449_v54 = vsel %vm209_vm2, %v5308_v37, 0.0 }
 0x9df   :  { %1450 = vadd.xlane.f32.xlu1 %v1449_v54  ;;  %v4326_v54 = vld [vmem:[#allocation4 + $0x61] ss:$0 sm:$0xff] }
 0x9e1   :  { %v1422_v0 = vpop.f32.mrf.mxu2 }
 0x9e2   :  { %v1430_v41 = vadd.f32 %v1422_v0, %v5243_v53 }
 0x9e4   :  { %v5313_v40 = vadd.f32 %v4324_v20, %v1430_v41 }
 0x9e6   :  { %v1452_v51 = vsel %vm222_vm3, %v5313_v40, 0.0 }
 0x9e7   :  { %1453 = vadd.xlane.f32.xlu0 %v1452_v51 }
 0x9e9   :  { %v1424_v22 = vpop.f32.mrf.mxu2 }
 0xa1b   :  { %v1442_v32 = vpop.xlane.xlu1 %1441 }
 0xa1c   :  { %v1455_v21 = vmul.f32 %v1442_v32, %v4819_v7 }
 0xa1e   :  { %v1460_v26 = vsub.f32 %v5293_v19, %v1455_v21 }
 0xa20   :  { %v1465_v48 = vmul.f32 %v1460_v26, %v1460_v26 }
 0xa22   :  { %v1470_v50 = vsel %vm209_vm2, %v1465_v48, 0.0 }
 0xa23   :  { %v1445_v38 = vpop.xlane.xlu0 %1444  ;;  %1471 = vadd.xlane.f32.xlu2 %v1470_v50 }
 0xa24   :  { %v1456_v35 = vmul.f32 %v1445_v38, %v4819_v7 }
 0xa26   :  { %v1461_v53 = vsub.f32 %v5298_v14, %v1456_v35 }
 0xa28   :  { %v1466_v45 = vmul.f32 %v1461_v53, %v1461_v53 }
 0xa2a   :  { %v1473_v16 = vsel %vm209_vm2, %v1466_v45, 0.0 }
 0xa2b   :  { %1474 = vadd.xlane.f32.xlu1 %v1473_v16 }
 0xa4a   :  { %v1448_v10 = vpop.xlane.xlu2 %1447 }
 0xa4b   :  { %v1457_v44 = vmul.f32 %v1448_v10, %v4819_v7 }
 0xa4d   :  { %v5325_v52 = vsub.f32 %v5303_v23, %v1457_v44 }
 0xa4f   :  { %v1467_v5 = vmul.f32 %v5325_v52, %v5325_v52 }
 0xa51   :  { %v1476_v33 = vsel %vm209_vm2, %v1467_v5, 0.0 }
 0xa52   :  { %v1451_v46 = vpop.xlane.xlu1 %1450  ;;  %1477 = vadd.xlane.f32.xlu0 %v1476_v33 }
 0xa53   :  { %v1458_v62 = vmul.f32 %v1451_v46, %v4819_v7 }
 0xa55   :  { %v5332_v34 = vsub.f32 %v5308_v37, %v1458_v62 }
 0xa57   :  { %v1468_v11 = vmul.f32 %v5332_v34, %v5332_v34 }
 0xa59   :  { %v1479_v55 = vsel %vm209_vm2, %v1468_v11, 0.0 }
 0xa5a   :  { %1480 = vadd.xlane.f32.xlu2 %v1479_v55  ;;  %v1454_v3 = vpop.xlane.xlu0 %1453 }
 0xa5b   :  { %v1459_v58 = vmul.f32 %v1454_v3, %v4819_v7 }
 0xa5d   :  { %v5339_v59 = vsub.f32 %v5313_v40, %v1459_v58 }
 0xa5f   :  { %v1469_v36 = vmul.f32 %v5339_v59, %v5339_v59 }
 0xa61   :  { %v1482_v61 = vsel %vm222_vm3, %v1469_v36, 0.0 }
 0xa62   :  { %1483 = vadd.xlane.f32.xlu1 %v1482_v61 }
 0xa96   :  { %v1472_v9 = vpop.xlane.xlu2 %1471 }
 0xa97   :  { %v1485_v39 = vmul.f32 %v1472_v9, %v4819_v7 }
 0xa99   :  { %v1490_v2 = vadd.f32 1e-05, %v1485_v39 }
 0xa9b   :  { %4454 = vrsqrt.f32 %v1490_v2  ;;  %vm1501_vm0 = vweird.f32 %v1490_v2 }
 0xa9e   :  { %v1475_v4 = vpop.xlane.xlu1 %1474 }
 0xa9f   :  { %v1486_v1 = vmul.f32 %v1475_v4, %v4819_v7 }
 0xaa1   :  { %v4455_v47 = vpop.eup %4454  ;;  %v1491_v43 = vadd.f32 1e-05, %v1486_v1 }
 0xaa2   :  { %v1496_v56 = vmul.f32 %v4455_v47, %v1490_v2  ;;  %vm1502_vm15 = vweird.f32 %v4455_v47 }
 0xaa3   :  { %4456 = vrsqrt.f32 %v1491_v43  ;;  %vm1503_vm4 = vmor %vm1501_vm0, %vm1502_vm15  ;;  %vm1511_vm6 = vweird.f32 %v1491_v43 }
 0xaa4   :  { %v1497_v13 = vmul.f32 %v4455_v47, %v1496_v56 }
 0xaa6   :  { %v1498_v49 = vmul.f32 0.5, %v1497_v13 }
 0xaa8   :  { %v1499_v31 = vsub.f32 1.5, %v1498_v49 }
 0xaa9   :  { %v4457_v12 = vpop.eup %4456 }
 0xaaa   :  { %v1500_v20 = vmul.f32 %v4455_v47, %v1499_v31  ;;  %v1506_v30 = vmul.f32 %v4457_v12, %v1491_v43  ;;  %vm1512_vm5 = vweird.f32 %v4457_v12 }
 0xaab   :  { %vm1513_vm10 = vmor %vm1511_vm6, %vm1512_vm5 }
 0xaac   :  { %v1507_v18 = vmul.f32 %v4457_v12, %v1506_v30  ;;  %v1504_v24 = vsel %vm1503_vm4, %v4455_v47, %v1500_v20 }
 0xaad   :  { %v1545_v28 = vmul.f32 %v1504_v24, %v1460_v26 }
 0xaae   :  { %v1508_v57 = vmul.f32 0.5, %v1507_v18 }
 0xaaf   :  { %v1551_v42 = vmul.f32 %v5346_v29, %v1545_v28 }
 0xab0   :  { %v1509_v60 = vsub.f32 1.5, %v1508_v57 }
 0xab1   :  { %v1557_v41 = vadd.f32 %v4326_v54, %v1551_v42 }
 0xab2   :  { %v1510_v17 = vmul.f32 %v4457_v12, %v1509_v60 }
 0xab4   :  { %v1514_v8 = vsel %vm1513_vm10, %v4457_v12, %v1510_v17 }
 0xab5   :  { %v1546_v25 = vmul.f32 %v1514_v8, %v1461_v53 }
 0xab7   :  { %v1552_v0 = vmul.f32 %v5346_v29, %v1546_v25 }
 0xab9   :  { %v1558_v51 = vadd.f32 %v4326_v54, %v1552_v0 }
 0xabb   :  { %v1562_v22 = vpack.c.bf16 %v1558_v51, %v1557_v41 }
 0xabd   :  { %4066 = vmatmul.msk.bf16.vlgmr.msra.gmra.mxu3 %vm209_vm2, %v1562_v22  ;;  %4077 = vmatmul.msk.bf16.vlgmr.msra.gmra.mxu1 %vm209_vm2, %v1562_v22 }
 0xac5   :  { %v1478_v32 = vpop.xlane.xlu0 %1477 }
 0xac6   :  { %v1487_v21 = vmul.f32 %v1478_v32, %v4819_v7 }
 0xac8   :  { %v1492_v26 = vadd.f32 1e-05, %v1487_v21 }
 0xaca   :  { %4458 = vrsqrt.f32 %v1492_v26  ;;  %vm1521_vm12 = vweird.f32 %v1492_v26 }
 0xacd   :  { %v1481_v48 = vpop.xlane.xlu2 %1480 }
 0xace   :  { %v1488_v50 = vmul.f32 %v1481_v48, %v4819_v7 }
 0xad0   :  { %v4459_v38 = vpop.eup %4458  ;;  %v1493_v35 = vadd.f32 1e-05, %v1488_v50 }
 0xad1   :  { %v1516_v53 = vmul.f32 %v4459_v38, %v1492_v26  ;;  %vm1522_vm11 = vweird.f32 %v4459_v38 }
 0xad2   :  { %4460 = vrsqrt.f32 %v1493_v35  ;;  %vm1523_vm13 = vmor %vm1521_vm12, %vm1522_vm11  ;;  %vm1531_vm15 = vweird.f32 %v1493_v35 }
 0xad3   :  { %v1517_v45 = vmul.f32 %v4459_v38, %v1516_v53 }
 0xad5   :  { %v1518_v16 = vmul.f32 0.5, %v1517_v45  ;;  %v1484_v10 = vpop.xlane.xlu1 %1483 }
 0xad6   :  { %v1489_v44 = vmul.f32 %v1484_v10, %v4819_v7 }
 0xad7   :  { %v1519_v5 = vsub.f32 1.5, %v1518_v16 }
 0xad8   :  { %v4461_v33 = vpop.eup %4460  ;;  %v1494_v46 = vadd.f32 1e-05, %v1489_v44 }
 0xad9   :  { %v1520_v62 = vmul.f32 %v4459_v38, %v1519_v5  ;;  %v1526_v11 = vmul.f32 %v4461_v33, %v1493_v35  ;;  %vm1532_vm14 = vweird.f32 %v4461_v33 }
 0xada   :  { %4462 = vrsqrt.f32 %v1494_v46  ;;  %vm1533_vm0 = vmor %vm1531_vm15, %vm1532_vm14  ;;  %vm1541_vm5 = vweird.f32 %v1494_v46 }
 0xadb   :  { %v1527_v55 = vmul.f32 %v4461_v33, %v1526_v11  ;;  %v1524_v3 = vsel %vm1523_vm13, %v4459_v38, %v1520_v62 }
 0xadc   :  { %v1547_v63 = vmul.f32 %v1524_v3, %v5325_v52 }
 0xadd   :  { %v1528_v58 = vmul.f32 0.5, %v1527_v55 }
 0xade   :  { %v1553_v2 = vmul.f32 %v5346_v29, %v1547_v63 }
 0xadf   :  { %v1529_v36 = vsub.f32 1.5, %v1528_v58 }
 0xae0   :  { %v4463_v61 = vpop.eup %4462  ;;  %v1559_v43 = vadd.f32 %v4326_v54, %v1553_v2 }
 0xae1   :  { %v1530_v15 = vmul.f32 %v4461_v33, %v1529_v36  ;;  %v1536_v9 = vmul.f32 %v4463_v61, %v1494_v46  ;;  %vm1542_vm4 = vweird.f32 %v4463_v61 }
 0xae2   :  { %vm1543_vm6 = vmor %vm1541_vm5, %vm1542_vm4 }
 0xae3   :  { %v1534_v39 = vsel %vm1533_vm0, %v4461_v33, %v1530_v15  ;;  %v1537_v6 = vmul.f32 %v4463_v61, %v1536_v9 }
 0xae4   :  { %v1548_v27 = vmul.f32 %v1534_v39, %v5332_v34 }
 0xae5   :  { %v1538_v4 = vmul.f32 0.5, %v1537_v6 }
 0xae6   :  { %v1554_v1 = vmul.f32 %v5346_v29, %v1548_v27 }
 0xae7   :  { %v1539_v47 = vsub.f32 1.5, %v1538_v4 }
 0xae8   :  { %v1560_v56 = vadd.f32 %v4326_v54, %v1554_v1 }
 0xae9   :  { %v1540_v13 = vmul.f32 %v4463_v61, %v1539_v47 }
 0xaea   :  { %v1563_v52 = vpack.c.bf16 %v1560_v56, %v1559_v43 }
 0xaeb   :  { %v1544_v49 = vsel %vm1543_vm6, %v4463_v61, %v1540_v13 }
 0xaec   :  { %v1549_v31 = vmul.f32 %v1544_v49, %v5339_v59  ;;  %4067 = vmatmul.msk.bf16.gmra.mxu3 %vm209_vm2, %v1563_v52  ;;  %4078 = vmatmul.msk.bf16.gmra.mxu1 %vm209_vm2, %v1563_v52 }
 0xaee   :  { %v1555_v34 = vmul.f32 %v5346_v29, %v1549_v31 }
 0xaf0   :  { %v1561_v12 = vadd.f32 %v4326_v54, %v1555_v34 }
 0xaf2   :  { %v1564_v20 = vpack.c.bf16 %v1561_v12, %v1561_v12 }
 0xafc   :  { %4068 = vmatmul.msk.bf16.gmra.mxu3 %vm209_vm2, %v1564_v20  ;;  %4079 = vmatmul.msk.bf16.gmra.mxu1 %vm209_vm2, %v1564_v20 }
 0xb3a   :  { %v1638_v30 = vpop.f32.mrf.mxu1 }
 0xb40   :  { %v1599_v18 = vpop.f32.mrf.mxu3 }
 0xb42   :  { %v1640_v24 = vpop.f32.mrf.mxu1 }
 0xb43   :  { %v5381_v32 = vpack.c.bf16 %v1640_v24, %v1638_v30  ;;  %v5450_v24 = vld [vmem:[#allocation4 + $0x28] sm:$0xff] }
 0xb48   :  { %v1601_v57 = vpop.f32.mrf.mxu3 }
 0xb49   :  { %v1652_v41 = vpack.c.bf16 %v1601_v57, %v1599_v18 }
 0xb69   :  { %v1643_v60 = vpop.f32.mrf.mxu1 }
 0xb6f   :  { %v1604_v28 = vpop.f32.mrf.mxu3 }
 0xb71   :  { %v1645_v17 = vpop.f32.mrf.mxu1 }
 0xb72   :  { %v5373_v54 = vpack.c.bf16 %v1645_v17, %v1643_v60 }
 0xb77   :  { %v1606_v59 = vpop.f32.mrf.mxu3 }
 0xb78   :  { %v5365_v8 = vpack.c.bf16 %v1606_v59, %v1604_v28 }
 0xb79   :  { %v1648_v42 = vpop.f32.mrf.mxu1 }
 0xb7a   :  { %v5367_v25 = vpack.c.bf16 %v1648_v42, %v1648_v42  ;;  %1660 = vrot.lane.b32.xlu1 %v5365_v8, %s4745_s0 }
 0xb7c   :  { %v1786_v29 = vsel %vm565_vm7, %v5367_v25, 0 }
 0xb7d   :  { %1793 = vmatpush.bf16.msra.mxu2 %v1786_v29 }
 0xb7f   :  { %v1609_v0 = vpop.f32.mrf.mxu3 }
 0xb80   :  { %v5375_v51 = vpack.c.bf16 %v1609_v0, %v1609_v0  ;;  %v4677_v0 = vld [vmem:[#allocation4 + $0x30] sm:$0xff] }
 0xb81   :  { %v1650_v22 = vpop.f32.mrf.mxu1  ;;  %1794 = vmatpush.bf16.msra.mxu2 %v5373_v54 }
 0xb82   :  { %1816 = vrot.lane.b32.xlu1 %v1652_v41, %s4749_s10  ;;  %1826 = vrot.lane.b32.xlu2 %v5375_v51, %s4748_s9 }
 0xb83   :  { %1662 = vrot.lane.b32.xlu0 %v5375_v51, %s4745_s0 }
 0xb85   :  { %1795 = vmatpush.bf16.msra.mxu2 %v5381_v32 }
 0xb87   :  { %v1611_v21 = vpop.f32.mrf.mxu3 }
 0xb8a   :  { %2167 = vrot.lane.b32.xlu1 %v5375_v51, %s4750_s11  ;;  %1822 = vrot.lane.b32.xlu2 %v1652_v41, %s4748_s9 }
 0xb8b   :  { %1824 = vrot.lane.b32.xlu0 %v5365_v8, %s4748_s9 }
 0xb92   :  { %2165 = vrot.lane.b32.xlu1 %v5365_v8, %s4750_s11  ;;  %1998 = vrot.lane.b32.xlu2 %v5375_v51, %s4746_s7 }
 0xb93   :  { %1658 = vrot.lane.b32.xlu0 %v1652_v41, %s4745_s0 }
 0xb9a   :  { %1988 = vrot.lane.b32.xlu1 %v1652_v41, %s4747_s8  ;;  %1820 = vrot.lane.b32.xlu2 %v5375_v51, %s4749_s10 }
 0xb9b   :  { %1818 = vrot.lane.b32.xlu0 %v5365_v8, %s4749_s10 }
 0xba2   :  { %2159 = vrot.lane.b32.xlu1 %v5365_v8, %s4751_s12  ;;  %2163 = vrot.lane.b32.xlu2 %v1652_v41, %s4750_s11 }
 0xba3   :  { %1996 = vrot.lane.b32.xlu0 %v5365_v8, %s4746_s7 }
 0xbaa   :  { %1944 = vrot.lane.b32.xlu1 %v5367_v25, %s4745_s0  ;;  %1990 = vrot.lane.b32.xlu2 %v5365_v8, %s4747_s8 }
 0xbab   :  { %1994 = vrot.lane.b32.xlu0 %v1652_v41, %s4746_s7 }
 0xbb2   :  { %1940 = vrot.lane.b32.xlu1 %v5381_v32, %s4745_s0  ;;  %1942 = vrot.lane.b32.xlu2 %v5373_v54, %s4745_s0 }
 0xbb3   :  { %2157 = vrot.lane.b32.xlu0 %v1652_v41, %s4751_s12 }
 0xbba   :  { %2113 = vrot.lane.b32.xlu1 %v5367_v25, %s4739_s20  ;;  %2161 = vrot.lane.b32.xlu2 %v5375_v51, %s4751_s12 }
 0xbbb   :  { %1992 = vrot.lane.b32.xlu0 %v5375_v51, %s4747_s8 }
 0xbdc   :  { %v1827_v26 = vpop.permute.xlu2 %1826 }
 0xbdd   :  { %v1844_v48 = vsel %vm68_vm1, %v1827_v26, 0 }
 0xbde   :  { %1851 = vmatpush.bf16.xpose.msrb.mxu3 %v1844_v48 }
 0xbe4   :  { %v1823_v38 = vpop.permute.xlu2 %1822 }
 0xbe5   :  { %v1838_v3 = vsel %vm68_vm1, %v1823_v38, 0 }
 0xbec   :  { %v1661_v50 = vpop.permute.xlu1 %1660  ;;  %v1999_v16 = vpop.permute.xlu2 %1998 }
 0xbed   :  { %v1677_v5 = vsel %vm68_vm1, %v1661_v50, 0  ;;  %v2016_v58 = vsel %vm68_vm1, %v1999_v16, 0 }
 0xbf4   :  { %v1817_v35 = vpop.permute.xlu1 %1816  ;;  %v1821_v46 = vpop.permute.xlu2 %1820 }
 0xbf5   :  { %v1663_v53 = vpop.permute.xlu0 %1662 }
 0xbf6   :  { %v1680_v45 = vsel %vm68_vm1, %v1663_v53, 0 }
 0xbf7   :  { %1687 = vmatpush.bf16.xpose.msra.mxu0 %v1680_v45 }
 0xbfc   :  { %v2168_v10 = vpop.permute.xlu1 %2167  ;;  %v2164_v15 = vpop.permute.xlu2 %2163 }
 0xbfd   :  { %v1825_v44 = vpop.permute.xlu0 %1824  ;;  %v2185_v36 = vsel %vm68_vm1, %v2168_v10, 0  ;;  %v2179_v2 = vsel %vm68_vm1, %v2164_v15, 0 }
 0xbfe   :  { %v1841_v33 = vsel %vm68_vm1, %v1825_v44, 0 }
 0xbff   :  { %1688 = vmatpush.bf16.xpose.msra.mxu0 %v1677_v5  ;;  %1852 = vmatpush.bf16.xpose.msrb.mxu3 %v1841_v33 }
 0xc04   :  { %v2166_v62 = vpop.permute.xlu1 %2165  ;;  %v1991_v4 = vpop.permute.xlu2 %1990 }
 0xc05   :  { %v1659_v11 = vpop.permute.xlu0 %1658  ;;  %v2182_v9 = vsel %vm68_vm1, %v2166_v62, 0  ;;  %v4679_v62 = vld [vmem:[#allocation4 + $0x40] sm:$0xff] }
 0xc06   :  { %v1674_v55 = vsel %vm68_vm1, %v1659_v11, 0 }
 0xc07   :  { %1689 = vmatpush.bf16.xpose.msra.mxu0 %v1674_v55  ;;  %1853 = vmatpush.bf16.xpose.msrb.mxu3 %v1838_v3 }
 0xc0c   :  { %v1989_v61 = vpop.permute.xlu1 %1988  ;;  %v1943_v13 = vpop.permute.xlu2 %1942 }
 0xc0d   :  { %v1819_v63 = vpop.permute.xlu0 %1818 }
 0xc0e   :  { %4080 = vmatmul.msk.bf16.vlgmr.msra.gmra.mxu0 %vm68_vm1, %v1652_v41  ;;  %4086 = vmatmul.msk.bf16.vlgmr.msrb.gmra.mxu3 %vm68_vm1, %v1817_v35  ;;  %v4678_v35 = vld [vmem:[#allocation4 + $0x38] sm:$0xff] }
 0xc0f   :  { %2023 = vmatpush.bf16.xpose.msrb.mxu0 %v2016_v58  ;;  %2192 = vmatpush.bf16.xpose.msra.mxu3 %v2185_v36 }
 0xc14   :  { %v2160_v39 = vpop.permute.xlu1 %2159  ;;  %v2162_v12 = vpop.permute.xlu2 %2161 }
 0xc15   :  { %v1997_v6 = vpop.permute.xlu0 %1996 }
 0xc16   :  { %v2013_v27 = vsel %vm68_vm1, %v1997_v6, 0 }
 0xc17   :  { %2193 = vmatpush.bf16.xpose.msra.mxu3 %v2182_v9  ;;  %2024 = vmatpush.bf16.xpose.msrb.mxu0 %v2013_v27  ;;  %v5486_v9 = vld [vmem:[#allocation4 + $0x48] sm:$0x3] }
 0xc1c   :  { %v1945_v1 = vpop.permute.xlu1 %1944 }
 0xc1d   :  { %v1958_v47 = vsel %vm565_vm7, %v1945_v1, 0  ;;  %v1995_v43 = vpop.permute.xlu0 %1994 }
 0xc1e   :  { %4081 = vmatmul.msk.bf16.gmra.mxu0 %vm68_vm1, %v5365_v8  ;;  %4087 = vmatmul.msk.bf16.gmra.mxu3 %vm68_vm1, %v1819_v63  ;;  %v2010_v56 = vsel %vm68_vm1, %v1995_v43, 0 }
 0xc1f   :  { %2194 = vmatpush.bf16.xpose.msra.mxu3 %v2179_v2  ;;  %1965 = vmatpush.bf16.msrb.mxu1 %v1958_v47 }
 0xc20   :  { %2025 = vmatpush.bf16.xpose.msrb.mxu0 %v2010_v56 }
 0xc23   :  { %1966 = vmatpush.bf16.msrb.mxu1 %v1943_v13 }
 0xc24   :  { %v1941_v52 = vpop.permute.xlu1 %1940 }
 0xc25   :  { %v2158_v34 = vpop.permute.xlu0 %2157 }
 0xc27   :  { %1967 = vmatpush.bf16.msrb.mxu1 %v1941_v52 }
 0xc2c   :  { %v2114_v49 = vpop.permute.xlu1 %2113 }
 0xc2d   :  { %v2127_v31 = vsel %vm565_vm7, %v2114_v49, 0  ;;  %v1993_v20 = vpop.permute.xlu0 %1992 }
 0xc2e   :  { %4082 = vmatmul.msk.bf16.gmra.mxu0 %vm68_vm1, %v5375_v51  ;;  %4088 = vmatmul.msk.bf16.gmra.mxu3 %vm68_vm1, %v1821_v46 }
 0xc2f   :  { %2134 = vmatpush.bf16.msrb.mxu2 %v2127_v31 }
 0xc3e   :  { %4092 = vmatmul.msk.bf16.vlgmr.msrb.gmra.mxu0 %vm68_vm1, %v1989_v61  ;;  %4098 = vmatmul.msk.bf16.vlgmr.msra.gmra.mxu3 %vm68_vm1, %v2158_v34 }
 0xc4e   :  { %4093 = vmatmul.msk.bf16.gmra.mxu0 %vm68_vm1, %v1991_v4  ;;  %4099 = vmatmul.msk.bf16.gmra.mxu3 %vm68_vm1, %v2160_v39 }
 0xc5e   :  { %4094 = vmatmul.msk.bf16.gmra.mxu0 %vm68_vm1, %v1993_v20  ;;  %4100 = vmatmul.msk.bf16.gmra.mxu3 %vm68_vm1, %v2162_v12 }
 0xc8b   :  { %v1691_v30 = vpop.f32.mrf.mxu0 }
 0xc8c   :  { %v1705_v18 = vmul.f32 0.35355338, %v1691_v30 }
 0xc8e   :  { %v5453_v57 = vadd.f32 %v5450_v24, %v1705_v18 }
 0xc90   :  { %v1715_v60 = vsel %vm493_vm8, %v5453_v57, -inf }
 0xc91   :  { %1716 = vmax.xlane.f32.xlu1 %v1715_v60  ;;  %v1855_v28 = vpop.f32.mrf.mxu3 }
 0xc92   :  { %v1869_v17 = vmul.f32 0.35355338, %v1855_v28 }
 0xc93   :  { %v1693_v59 = vpop.f32.mrf.mxu0 }
 0xc94   :  { %v1706_v8 = vmul.f32 0.35355338, %v1693_v59  ;;  %v5458_v42 = vadd.f32 %v5450_v24, %v1869_v17 }
 0xc96   :  { %v1879_v29 = vsel %vm493_vm8, %v5458_v42, -inf  ;;  %v5462_v41 = vadd.f32 %v4677_v0, %v1706_v8 }
 0xc97   :  { %1880 = vmax.xlane.f32.xlu2 %v1879_v29 }
 0xc98   :  { %v1718_v51 = vsel %vm493_vm8, %v5462_v41, -inf }
 0xc99   :  { %1719 = vmax.xlane.f32.xlu0 %v1718_v51  ;;  %v1857_v22 = vpop.f32.mrf.mxu3 }
 0xc9a   :  { %v1870_v21 = vmul.f32 0.35355338, %v1857_v22 }
 0xc9b   :  { %v1696_v26 = vpop.f32.mrf.mxu0 }
 0xc9c   :  { %v1707_v48 = vmul.f32 0.35355338, %v1696_v26  ;;  %v5466_v50 = vadd.f32 %v4677_v0, %v1870_v21 }
 0xc9e   :  { %v1882_v38 = vsel %vm493_vm8, %v5466_v50, -inf  ;;  %v5470_v53 = vadd.f32 %v4678_v35, %v1707_v48 }
 0xc9f   :  { %1883 = vmax.xlane.f32.xlu1 %v1882_v38 }
 0xca0   :  { %v1721_v45 = vsel %vm493_vm8, %v5470_v53, -inf }
 0xca1   :  { %1722 = vmax.xlane.f32.xlu2 %v1721_v45  ;;  %v1860_v16 = vpop.f32.mrf.mxu3 }
 0xca2   :  { %v1871_v10 = vmul.f32 0.35355338, %v1860_v16 }
 0xca3   :  { %v1698_v44 = vpop.f32.mrf.mxu0 }
 0xca4   :  { %v5474_v5 = vadd.f32 %v4678_v35, %v1871_v10  ;;  %v1708_v33 = vmul.f32 0.35355338, %v1698_v44 }
 0xca6   :  { %v1885_v46 = vsel %vm493_vm8, %v5474_v5, -inf  ;;  %v5478_v11 = vadd.f32 %v4679_v62, %v1708_v33 }
 0xca7   :  { %1886 = vmax.xlane.f32.xlu1 %v1885_v46 }
 0xca8   :  { %v1724_v55 = vsel %vm493_vm8, %v5478_v11, -inf }
 0xca9   :  { %1725 = vmax.xlane.f32.xlu0 %v1724_v55  ;;  %v1862_v3 = vpop.f32.mrf.mxu3 }
 0xcaa   :  { %v1872_v58 = vmul.f32 0.35355338, %v1862_v3 }
 0xcab   :  { %v1701_v36 = vpop.f32.mrf.mxu0 }
 0xcac   :  { %v1709_v61 = vmul.f32 0.35355338, %v1701_v36  ;;  %v5482_v63 = vadd.f32 %v4679_v62, %v1872_v58 }
 0xcae   :  { %v1888_v15 = vsel %vm493_vm8, %v5482_v63, -inf  ;;  %v5489_v39 = vadd.f32 %v5486_v9, %v1709_v61 }
 0xcaf   :  { %1889 = vmax.xlane.f32.xlu2 %v1888_v15 }
 0xcb0   :  { %v1727_v6 = vsel %vm506_vm9, %v5489_v39, -inf }
 0xcb1   :  { %1728 = vmax.xlane.f32.xlu0 %v1727_v6  ;;  %v1865_v27 = vpop.f32.mrf.mxu3 }
 0xcb2   :  { %v1873_v2 = vmul.f32 0.35355338, %v1865_v27 }
 0xcb3   :  { %v1703_v4 = vpop.f32.mrf.mxu0 }
 0xcb4   :  { %v5494_v1 = vadd.f32 %v5486_v9, %v1873_v2 }
 0xcb6   :  { %v1891_v47 = vsel %vm506_vm9, %v5494_v1, -inf }
 0xcb7   :  { %1892 = vmax.xlane.f32.xlu1 %v1891_v47 }
 0xcb9   :  { %v1867_v43 = vpop.f32.mrf.mxu3 }
 0xcbb   :  { %v2027_v56 = vpop.f32.mrf.mxu0 }
 0xcbc   :  { %v2041_v13 = vmul.f32 0.35355338, %v2027_v56 }
 0xcbe   :  { %v5499_v52 = vadd.f32 %v5450_v24, %v2041_v13 }
 0xcc0   :  { %v2051_v49 = vsel %vm493_vm8, %v5499_v52, -inf }
 0xcc1   :  { %2052 = vmax.xlane.f32.xlu2 %v2051_v49  ;;  %v2196_v31 = vpop.f32.mrf.mxu3 }
 0xcc2   :  { %v2210_v34 = vmul.f32 0.35355338, %v2196_v31 }
 0xcc3   :  { %v2029_v12 = vpop.f32.mrf.mxu0 }
 0xcc4   :  { %v5504_v20 = vadd.f32 %v5450_v24, %v2210_v34  ;;  %v2042_v30 = vmul.f32 0.35355338, %v2029_v12 }
 0xcc6   :  { %v2220_v18 = vsel %vm493_vm8, %v5504_v20, -inf  ;;  %v5508_v17 = vadd.f32 %v4677_v0, %v2042_v30 }
 0xcc7   :  { %2221 = vmax.xlane.f32.xlu0 %v2220_v18 }
 0xcc8   :  { %v2054_v51 = vsel %vm493_vm8, %v5508_v17, -inf }
 0xcc9   :  { %v2198_v60 = vpop.f32.mrf.mxu3 }
 0xcca   :  { %v2211_v28 = vmul.f32 0.35355338, %v2198_v60 }
 0xccb   :  { %v2032_v59 = vpop.f32.mrf.mxu0 }
 0xccc   :  { %v2043_v8 = vmul.f32 0.35355338, %v2032_v59  ;;  %v5510_v29 = vadd.f32 %v4677_v0, %v2211_v28 }
 0xcce   :  { %v2223_v24 = vsel %vm493_vm8, %v5510_v29, -inf  ;;  %v5516_v22 = vadd.f32 %v4678_v35, %v2043_v8 }
 0xccf   :  { %2055 = vmax.xlane.f32.xlu0 %v2054_v51  ;;  %2224 = vmax.xlane.f32.xlu1 %v2223_v24 }
 0xcd0   :  { %v2057_v21 = vsel %vm493_vm8, %v5516_v22, -inf }
 0xcd1   :  { %2058 = vmax.xlane.f32.xlu2 %v2057_v21  ;;  %v2201_v26 = vpop.f32.mrf.mxu3 }
 0xcd2   :  { %v2212_v48 = vmul.f32 0.35355338, %v2201_v26 }
 0xcd3   :  { %v2034_v38 = vpop.f32.mrf.mxu0 }
 0xcd4   :  { %v5520_v45 = vadd.f32 %v4678_v35, %v2212_v48  ;;  %v2044_v0 = vmul.f32 0.35355338, %v2034_v38 }
 0xcd6   :  { %v2226_v16 = vsel %vm493_vm8, %v5520_v45, -inf  ;;  %v5524_v33 = vadd.f32 %v4679_v62, %v2044_v0 }
 0xcd7   :  { %2227 = vmax.xlane.f32.xlu0 %v2226_v16 }
 0xcd8   :  { %v2060_v58 = vsel %vm493_vm8, %v5524_v33, -inf }
 0xcd9   :  { %v2203_v10 = vpop.f32.mrf.mxu3 }
 0xcda   :  { %v2213_v44 = vmul.f32 0.35355338, %v2203_v10 }
 0xcdb   :  { %v2037_v46 = vpop.f32.mrf.mxu0 }
 0xcdc   :  { %v5526_v55 = vadd.f32 %v4679_v62, %v2213_v44  ;;  %v2045_v3 = vmul.f32 0.35355338, %v2037_v46 }
 0xcde   :  { %v2229_v35 = vsel %vm493_vm8, %v5526_v55, -inf  ;;  %v5535_v61 = vadd.f32 %v5486_v9, %v2045_v3 }
 0xcdf   :  { %2061 = vmax.xlane.f32.xlu0 %v2060_v58  ;;  %2230 = vmax.xlane.f32.xlu1 %v2229_v35 }
 0xce0   :  { %v2063_v6 = vsel %vm506_vm9, %v5535_v61, -inf }
 0xce1   :  { %v5532_v36 = vpop.f32.mrf.mxu3 }
 0xce3   :  { %v2039_v15 = vpop.f32.mrf.mxu0 }
 0xce7   :  { %2064 = vmax.xlane.f32.xlu0 %v2063_v6 }
 0xce9   :  { %v2208_v62 = vpop.f32.mrf.mxu3 }
 0xcfb   :  { %2109 = vrot.lane.b32.xlu0 %v5381_v32, %s4739_s20 }
 0xd04   :  { %v1717_v27 = vpop.xlane.xlu1 %1716 }
 0xd05   :  { %v1730_v2 = vsub.f32 %v5453_v57, %v1717_v27 }
 0xd07   :  { %v1735_v4 = vmul.f32 1.442695, %v1730_v2 }
 0xd09   :  { %4464 = vpow2.f32 %v1735_v4 }
 0xd0a   :  { %v1881_v47 = vpop.xlane.xlu2 %1880 }
 0xd0b   :  { %v1894_v43 = vsub.f32 %v5458_v42, %v1881_v47 }
 0xd0c   :  { %v1720_v56 = vpop.xlane.xlu0 %1719 }
 0xd0d   :  { %v1899_v13 = vmul.f32 1.442695, %v1894_v43  ;;  %v1731_v49 = vsub.f32 %v5462_v41, %v1720_v56 }
 0xd0f   :  { %v5544_v31 = vpop.eup %4464  ;;  %4466 = vpow2.f32 %v1899_v13  ;;  %v1737_v12 = vmul.f32 1.442695, %v1731_v49 }
 0xd10   :  { %v1745_v34 = vsel %vm493_vm8, %v5544_v31, 0.0 }
 0xd11   :  { %1746 = vadd.xlane.f32.xlu1 %v1745_v34  ;;  %4468 = vpow2.f32 %v1737_v12 }
 0xd12   :  { %v1884_v30 = vpop.xlane.xlu1 %1883 }
 0xd13   :  { %v1895_v57 = vsub.f32 %v5466_v50, %v1884_v30 }
 0xd14   :  { %v1723_v41 = vpop.xlane.xlu2 %1722 }
 0xd15   :  { %v5549_v18 = vpop.eup %4466  ;;  %v1901_v60 = vmul.f32 1.442695, %v1895_v57  ;;  %v1732_v59 = vsub.f32 %v5470_v53, %v1723_v41 }
 0xd16   :  { %v1909_v42 = vsel %vm493_vm8, %v5549_v18, 0.0 }
 0xd17   :  { %1910 = vadd.xlane.f32.xlu2 %v1909_v42  ;;  %v5553_v28 = vpop.eup %4468  ;;  %4470 = vpow2.f32 %v1901_v60  ;;  %v1739_v51 = vmul.f32 1.442695, %v1732_v59 }
 0xd18   :  { %v1748_v8 = vsel %vm493_vm8, %v5553_v28, 0.0 }
 0xd19   :  { %4472 = vpow2.f32 %v1739_v51 }
 0xd1c   :  { %v1726_v50 = vpop.xlane.xlu0 %1725 }
 0xd1d   :  { %v5558_v24 = vpop.eup %4470  ;;  %v1733_v21 = vsub.f32 %v5478_v11, %v1726_v50  ;;  %v1887_v11 = vpop.xlane.xlu1 %1886 }
 0xd1e   :  { %v1912_v26 = vsel %vm493_vm8, %v5558_v24, 0.0  ;;  %v1896_v59 = vsub.f32 %v5474_v5, %v1887_v11 }
 0xd1f   :  { %1749 = vadd.xlane.f32.xlu2 %v1748_v8  ;;  %v1741_v48 = vmul.f32 1.442695, %v1733_v21  ;;  %v5563_v0 = vpop.eup %4472 }
 0xd20   :  { %v1751_v16 = vsel %vm493_vm8, %v5563_v0, 0.0 }
 0xd21   :  { %4474 = vpow2.f32 %v1741_v48 }
 0xd22   :  { %v1890_v38 = vpop.xlane.xlu2 %1889 }
 0xd23   :  { %v1897_v53 = vsub.f32 %v5482_v63, %v1890_v38 }
 0xd24   :  { %v1729_v44 = vpop.xlane.xlu0 %1728 }
 0xd25   :  { %1913 = vadd.xlane.f32.xlu0 %v1912_v26  ;;  %v1905_v10 = vmul.f32 1.442695, %v1897_v53  ;;  %v1734_v3 = vsub.f32 %v5489_v39, %v1729_v44 }
 0xd27   :  { %v5570_v46 = vpop.eup %4474  ;;  %4476 = vpow2.f32 %v1905_v10  ;;  %v1743_v63 = vmul.f32 1.442695, %v1734_v3 }
 0xd29   :  { %4478 = vpow2.f32 %v1743_v63 }
 0xd2a   :  { %2282 = vrot.lane.b32.xlu1 %v5367_v25, %s4752_s13  ;;  %v1754_v25 = vsel %vm493_vm8, %v5570_v46, 0.0  ;;  %v1893_v58 = vpop.xlane.xlu1 %1892 }
 0xd2b   :  { %v1898_v6 = vsub.f32 %v5494_v1, %v1893_v58 }
 0xd2d   :  { %1752 = vadd.xlane.f32.xlu0 %v1751_v16  ;;  %v5579_v35 = vpop.eup %4476  ;;  %v1907_v39 = vmul.f32 1.442695, %v1898_v6 }
 0xd2e   :  { %v1918_v62 = vsel %vm493_vm8, %v5579_v35, 0.0 }
 0xd2f   :  { %v5584_v2 = vpop.eup %4478  ;;  %4480 = vpow2.f32 %v1907_v39 }
 0xd32   :  { %2280 = vrot.lane.b32.xlu1 %v5373_v54, %s4752_s13 }
 0xd34   :  { %v2053_v27 = vpop.xlane.xlu2 %2052 }
 0xd35   :  { %1755 = vadd.xlane.f32.xlu0 %v1754_v25  ;;  %v2066_v47 = vsub.f32 %v5499_v52, %v2053_v27  ;;  %v5589_v13 = vpop.eup %4480 }
 0xd36   :  { %v1921_v12 = vsel %vm506_vm9, %v5589_v13, 0.0 }
 0xd37   :  { %2111 = vrot.lane.b32.xlu2 %v5373_v54, %s4739_s20  ;;  %v1757_v54 = vsel %vm506_vm9, %v5584_v2, 0.0  ;;  %v2071_v43 = vmul.f32 1.442695, %v2066_v47 }
 0xd39   :  { %4482 = vpow2.f32 %v2071_v43 }
 0xd3a   :  { %v2222_v15 = vpop.xlane.xlu0 %2221 }
 0xd3b   :  { %v2235_v34 = vsub.f32 %v5504_v20, %v2222_v15  ;;  %v2214_v20 = vmul.f32 0.35355338, %v5532_v36 }
 0xd3d   :  { %1919 = vadd.xlane.f32.xlu0 %v1918_v62  ;;  %v2240_v52 = vmul.f32 1.442695, %v2235_v34 }
 0xd3f   :  { %v5595_v57 = vpop.eup %4482 }
 0xd42   :  { %v2056_v4 = vpop.xlane.xlu0 %2055  ;;  %v2225_v21 = vpop.xlane.xlu1 %2224 }
 0xd43   :  { %v2067_v41 = vsub.f32 %v5508_v17, %v2056_v4  ;;  %v5608_v17 = vadd.f32 %v5486_v9, %v2214_v20  ;;  %v2236_v38 = vsub.f32 %v5510_v29, %v2225_v21 }
 0xd44   :  { %v2059_v56 = vpop.xlane.xlu2 %2058 }
 0xd45   :  { %1758 = vadd.xlane.f32.xlu0 %v1757_v54  ;;  %v2068_v1 = vsub.f32 %v5516_v22, %v2059_v56  ;;  %v2081_v22 = vsel %vm493_vm8, %v5595_v57, 0.0  ;;  %v2073_v51 = vmul.f32 1.442695, %v2067_v41  ;;  %v2242_v10 = vmul.f32 1.442695, %v2236_v38 }
 0xd46   :  { %v2232_v9 = vsel %vm506_vm9, %v5608_v17, -inf }
 0xd47   :  { %v2075_v30 = vmul.f32 1.442695, %v2068_v1 }
 0xd49   :  { %4484 = vpow2.f32 %v2075_v30 }
 0xd4a   :  { %v2228_v49 = vpop.xlane.xlu0 %2227  ;;  %4486 = vpow2.f32 %v2240_v52 }
 0xd4b   :  { %v2237_v42 = vsub.f32 %v5520_v45, %v2228_v49  ;;  %v1903_v45 = vmul.f32 1.442695, %v1896_v59 }
 0xd4d   :  { %1922 = vadd.xlane.f32.xlu0 %v1921_v12  ;;  %v2244_v8 = vmul.f32 1.442695, %v2237_v42 }
 0xd4f   :  { %v5603_v50 = vpop.eup %4484  ;;  %4488 = vpow2.f32 %v2244_v8 }
 0xd50   :  { %v5605_v26 = vpop.eup %4486  ;;  %4490 = vpow2.f32 %v2073_v51  ;;  %v2087_v5 = vsel %vm493_vm8, %v5603_v50, 0.0 }
 0xd51   :  { %v2250_v53 = vsel %vm493_vm8, %v5605_v26, 0.0  ;;  %4492 = vpow2.f32 %v1903_v45 }
 0xd52   :  { %v2062_v60 = vpop.xlane.xlu0 %2061  ;;  %v2231_v6 = vpop.xlane.xlu1 %2230 }
 0xd55   :  { %2082 = vadd.xlane.f32.xlu0 %v2081_v22  ;;  %v5618_v11 = vpop.eup %4488 }
 0xd56   :  { %v5620_v29 = vpop.eup %4490  ;;  %v2256_v44 = vsel %vm493_vm8, %v5618_v11, 0.0 }
 0xd57   :  { %v5625_v3 = vpop.eup %4492  ;;  %v2084_v25 = vsel %vm493_vm8, %v5620_v29, 0.0 }
 0xd58   :  { %v1915_v58 = vsel %vm493_vm8, %v5625_v3, 0.0 }
 0xd5a   :  { %v2065_v48 = vpop.xlane.xlu0 %2064 }
 0xd5b   :  { %v2070_v36 = vsub.f32 %v5535_v61, %v2065_v48  ;;  %v2069_v61 = vsub.f32 %v5524_v33, %v2062_v60  ;;  %v2238_v33 = vsub.f32 %v5526_v55, %v2231_v6 }
 0xd5c   :  { %2088 = vadd.xlane.f32.xlu1 %v2087_v5 }
 0xd5d   :  { %2251 = vadd.xlane.f32.xlu0 %v2250_v53  ;;  %v2079_v16 = vmul.f32 1.442695, %v2070_v36  ;;  %v2077_v63 = vmul.f32 1.442695, %v2069_v61  ;;  %v2246_v4 = vmul.f32 1.442695, %v2238_v33 }
 0xd5f   :  { %4494 = vpow2.f32 %v2079_v16 }
 0xd60   :  { %2233 = vmax.xlane.f32.xlu2 %v2232_v9  ;;  %4496 = vpow2.f32 %v2242_v10 }
 0xd61   :  { %4498 = vpow2.f32 %v2077_v63 }
 0xd62   :  { %4500 = vpow2.f32 %v2246_v4 }
 0xd64   :  { %2257 = vadd.xlane.f32.xlu1 %v2256_v44 }
 0xd65   :  { %2085 = vadd.xlane.f32.xlu0 %v2084_v25  ;;  %v5631_v15 = vpop.eup %4494 }
 0xd66   :  { %v5633_v62 = vpop.eup %4496  ;;  %v2093_v39 = vsel %vm506_vm9, %v5631_v15, 0.0 }
 0xd67   :  { %v2253_v27 = vsel %vm493_vm8, %v5633_v62, 0.0  ;;  %v5640_v47 = vpop.eup %4498 }
 0xd68   :  { %1916 = vadd.xlane.f32.xlu2 %v1915_v58  ;;  %v2090_v54 = vsel %vm493_vm8, %v5640_v47, 0.0  ;;  %v5644_v43 = vpop.eup %4500 }
 0xd69   :  { %v2259_v55 = vsel %vm493_vm8, %v5644_v43, 0.0 }
 0xd6c   :  { %2094 = vadd.xlane.f32.xlu1 %v2093_v39 }
 0xd6d   :  { %2254 = vadd.xlane.f32.xlu0 %v2253_v27  ;;  %v2110_v49 = vpop.permute.xlu0 %2109 }
 0xd75   :  { %2091 = vadd.xlane.f32.xlu0 %v2090_v54 }
 0xd7d   :  { %2260 = vadd.xlane.f32.xlu0 %v2259_v55 }
 0xd80   :  { %2278 = vrot.lane.b32.xlu2 %v5381_v32, %s4752_s13 }
 0xd84   :  { %v1747_v1 = vpop.xlane.xlu1 %1746 }
 0xd85   :  { %4502 = vrcp.f32 %v1747_v1 }
 0xd8a   :  { %v1911_v56 = vpop.xlane.xlu2 %1910 }
 0xd8b   :  { %v4503_v12 = vpop.eup %4502 }
 0xd8c   :  { %v1765_v42 = vmul.f32 %v4503_v12, %v5544_v31 }
 0xd92   :  { %v1750_v34 = vpop.xlane.xlu2 %1749 }
 0xd93   :  { %4504 = vrcp.f32 %v1750_v34 }
 0xd94   :  { %4506 = vrcp.f32 %v1911_v56 }
 0xd98   :  { %v1914_v30 = vpop.xlane.xlu0 %1913 }
 0xd99   :  { %v4505_v52 = vpop.eup %4504  ;;  %4508 = vrcp.f32 %v1914_v30 }
 0xd9a   :  { %v1766_v60 = vmul.f32 %v4505_v52, %v5553_v28  ;;  %v2112_v41 = vpop.permute.xlu2 %2111  ;;  %v4507_v32 = vpop.eup %4506 }
 0xd9b   :  { %2135 = vmatpush.bf16.msrb.mxu2 %v2112_v41  ;;  %v1929_v51 = vmul.f32 %v4507_v32, %v5549_v18 }
 0xd9c   :  { %v1770_v22 = vpack.c.bf16 %v1766_v60, %v1765_v42  ;;  %v2283_v20 = vpop.permute.xlu1 %2282 }
 0xd9d   :  { %v2296_v59 = vsel %vm565_vm7, %v2283_v20, 0 }
 0xd9e   :  { %4083 = vmatmul.msk.bf16.vlgmr.msra.gmra.mxu2 %vm493_vm8, %v1770_v22  ;;  %2303 = vmatpush.bf16.msra.mxu1 %v2296_v59 }
 0xd9f   :  { %v4509_v8 = vpop.eup %4508  ;;  %2136 = vmatpush.bf16.msrb.mxu2 %v2110_v49 }
 0xda0   :  { %v1930_v21 = vmul.f32 %v4509_v8, %v5558_v24  ;;  %v1753_v45 = vpop.xlane.xlu0 %1752 }
 0xda1   :  { %4510 = vrcp.f32 %v1753_v45 }
 0xda2   :  { %v1934_v31 = vpack.c.bf16 %v1930_v21, %v1929_v51 }
 0xda4   :  { %4089 = vmatmul.msk.bf16.vlgmr.msrb.gmra.mxu1 %vm493_vm8, %v1934_v31  ;;  %v2281_v28 = vpop.permute.xlu1 %2280 }
 0xda5   :  { %2304 = vmatpush.bf16.msra.mxu1 %v2281_v28 }
 0xda7   :  { %v4511_v38 = vpop.eup %4510 }
 0xda8   :  { %v1756_v48 = vpop.xlane.xlu0 %1755  ;;  %v1767_v5 = vmul.f32 %v4511_v38, %v5563_v0 }
 0xda9   :  { %4512 = vrcp.f32 %v1756_v48 }
 0xdaf   :  { %v4513_v36 = vpop.eup %4512 }
 0xdb0   :  { %v1768_v53 = vmul.f32 %v4513_v36, %v5570_v46  ;;  %v1920_v16 = vpop.xlane.xlu0 %1919 }
 0xdb2   :  { %v1771_v10 = vpack.c.bf16 %v1768_v53, %v1767_v5 }
 0xdb4   :  { %4084 = vmatmul.msk.bf16.gmra.mxu2 %vm493_vm8, %v1771_v10 }
 0xdb8   :  { %v1759_v18 = vpop.xlane.xlu0 %1758 }
 0xdb9   :  { %4514 = vrcp.f32 %v1759_v18 }
 0xdbf   :  { %v4515_v24 = vpop.eup %4514 }
 0xdc0   :  { %v1769_v9 = vmul.f32 %v4515_v24, %v5584_v2  ;;  %v1923_v61 = vpop.xlane.xlu0 %1922 }
 0xdc2   :  { %v1772_v44 = vpack.c.bf16 %v1769_v9, %v1769_v9 }
 0xdc4   :  { %4085 = vmatmul.msk.bf16.gmra.mxu2 %vm493_vm8, %v1772_v44 }
 0xdc8   :  { %v2083_v25 = vpop.xlane.xlu0 %2082 }
 0xdc9   :  { %4516 = vrcp.f32 %v2083_v25 }
 0xdcf   :  { %v4517_v39 = vpop.eup %4516  ;;  %v2089_v4 = vpop.xlane.xlu1 %2088 }
 0xdd0   :  { %v2252_v63 = vpop.xlane.xlu0 %2251 }
 0xdd3   :  { %v2234_v58 = vpop.xlane.xlu2 %2233 }
 0xdd4   :  { %v2239_v0 = vsub.f32 %v5608_v17, %v2234_v58  ;;  %v2101_v17 = vmul.f32 %v4517_v39, %v5595_v57 }
 0xdd6   :  { %v2248_v6 = vmul.f32 1.442695, %v2239_v0 }
 0xdd7   :  { %v2258_v41 = vpop.xlane.xlu1 %2257 }
 0xdd8   :  { %4518 = vpow2.f32 %v2248_v6  ;;  %v2086_v46 = vpop.xlane.xlu0 %2085 }
 0xdd9   :  { %4520 = vrcp.f32 %v1920_v16 }
 0xdda   :  { %4522 = vrcp.f32 %v2086_v46 }
 0xddb   :  { %v1917_v33 = vpop.xlane.xlu2 %1916 }
 0xddc   :  { %4524 = vrcp.f32 %v1917_v33 }
 0xddd   :  { %4526 = vrcp.f32 %v2089_v4 }
 0xdde   :  { %v5663_v27 = vpop.eup %4518  ;;  %4528 = vrcp.f32 %v1923_v61 }
 0xddf   :  { %v4521_v2 = vpop.eup %4520  ;;  %v2262_v54 = vsel %vm506_vm9, %v5663_v27, 0.0  ;;  %v2095_v59 = vpop.xlane.xlu1 %2094 }
 0xde0   :  { %v4523_v55 = vpop.eup %4522  ;;  %v2255_v56 = vpop.xlane.xlu0 %2254  ;;  %2263 = vadd.xlane.f32.xlu2 %v2262_v54  ;;  %v1932_v34 = vmul.f32 %v4521_v2, %v5579_v35 }
 0xde1   :  { %v2102_v1 = vmul.f32 %v4523_v55, %v5620_v29 }
 0xde2   :  { %v4525_v49 = vpop.eup %4524 }
 0xde3   :  { %v2106_v12 = vpack.c.bf16 %v2102_v1, %v2101_v17  ;;  %v1931_v30 = vmul.f32 %v4525_v49, %v5625_v3  ;;  %v2279_v52 = vpop.permute.xlu2 %2278  ;;  %v4527_v57 = vpop.eup %4526 }
 0xde4   :  { %2305 = vmatpush.bf16.msra.mxu1 %v2279_v52  ;;  %v4529_v29 = vpop.eup %4528  ;;  %v2103_v35 = vmul.f32 %v4527_v57, %v5603_v50 }
 0xde5   :  { %4095 = vmatmul.msk.bf16.vlgmr.msrb.gmra.mxu2 %vm493_vm8, %v2106_v12  ;;  %v1935_v42 = vpack.c.bf16 %v1932_v34, %v1931_v30  ;;  %v1933_v3 = vmul.f32 %v4529_v29, %v5589_v13 }
 0xde7   :  { %4090 = vmatmul.msk.bf16.gmra.mxu1 %vm493_vm8, %v1935_v42  ;;  %v1936_v8 = vpack.c.bf16 %v1933_v3, %v1933_v3 }
 0xde8   :  { %v2092_v60 = vpop.xlane.xlu0 %2091 }
 0xde9   :  { %4530 = vrcp.f32 %v2092_v60 }
 0xdea   :  { %4532 = vrcp.f32 %v2095_v59 }
 0xdeb   :  { %4534 = vrcp.f32 %v2255_v56 }
 0xdec   :  { %4536 = vrcp.f32 %v2252_v63 }
 0xdef   :  { %v4531_v22 = vpop.eup %4530 }
 0xdf0   :  { %v2104_v20 = vmul.f32 %v4531_v22, %v5640_v47  ;;  %v4533_v51 = vpop.eup %4532  ;;  %v2261_v48 = vpop.xlane.xlu0 %2260 }
 0xdf1   :  { %v4535_v21 = vpop.eup %4534  ;;  %v2105_v45 = vmul.f32 %v4533_v51, %v5631_v15  ;;  %4538 = vrcp.f32 %v2261_v48 }
 0xdf2   :  { %v2107_v32 = vpack.c.bf16 %v2104_v20, %v2103_v35  ;;  %v4537_v31 = vpop.eup %4536  ;;  %v2271_v50 = vmul.f32 %v4535_v21, %v5633_v62  ;;  %4540 = vrcp.f32 %v2258_v41 }
 0xdf3   :  { %v2270_v47 = vmul.f32 %v4537_v31, %v5605_v26  ;;  %v2108_v13 = vpack.c.bf16 %v2105_v45, %v2105_v45 }
 0xdf5   :  { %4096 = vmatmul.msk.bf16.gmra.mxu2 %vm493_vm8, %v2107_v32  ;;  %v2275_v28 = vpack.c.bf16 %v2271_v50, %v2270_v47 }
 0xdf7   :  { %4091 = vmatmul.msk.bf16.gmra.mxu1 %vm493_vm8, %v1936_v8  ;;  %v4539_v38 = vpop.eup %4538 }
 0xdf8   :  { %v4541_v36 = vpop.eup %4540  ;;  %v2273_v5 = vmul.f32 %v4539_v38, %v5644_v43 }
 0xdf9   :  { %v2272_v15 = vmul.f32 %v4541_v36, %v5618_v11 }
 0xdfb   :  { %v2276_v53 = vpack.c.bf16 %v2273_v5, %v2272_v15 }
 0xe05   :  { %4097 = vmatmul.msk.bf16.gmra.mxu2 %vm493_vm8, %v2108_v13 }
 0xe07   :  { %4101 = vmatmul.msk.bf16.vlgmr.msra.gmra.mxu1 %vm493_vm8, %v2275_v28 }
 0xe17   :  { %4102 = vmatmul.msk.bf16.gmra.mxu1 %vm493_vm8, %v2276_v53 }
 0xe21   :  { %v1797_v62 = vpop.f32.mrf.mxu2  ;;  %v1969_v9 = vpop.f32.mrf.mxu1 }
 0xe22   :  { %v1811_v54 = vadd.f32 %v1797_v62, %v5293_v19 }
 0xe24   :  { %v1983_v56 = vadd.f32 %v1969_v9, %v1811_v54 }
 0xe29   :  { %v1799_v26 = vpop.f32.mrf.mxu2  ;;  %v1971_v63 = vpop.f32.mrf.mxu1 }
 0xe2a   :  { %v1812_v49 = vadd.f32 %v1799_v26, %v5298_v14 }
 0xe2c   :  { %v1984_v52 = vadd.f32 %v1971_v63, %v1812_v49 }
 0xe37   :  { %v1802_v16 = vpop.f32.mrf.mxu2 }
 0xe38   :  { %v1813_v57 = vadd.f32 %v1802_v16, %v5303_v23 }
 0xe3f   :  { %v1804_v10 = vpop.f32.mrf.mxu2 }
 0xe40   :  { %v1814_v59 = vadd.f32 %v1804_v10, %v5308_v37 }
 0xe47   :  { %v1807_v18 = vpop.f32.mrf.mxu2 }
 0xe48   :  { %v1815_v46 = vadd.f32 %v1807_v18, %v5313_v40 }
 0xe4f   :  { %v1809_v24 = vpop.f32.mrf.mxu2 }
 0xe53   :  { %v2264_v61 = vpop.xlane.xlu2 %2263 }
 0xe54   :  { %4542 = vrcp.f32 %v2264_v61 }
 0xe5a   :  { %v4543_v44 = vpop.eup %4542 }
 0xe5b   :  { %v2274_v25 = vmul.f32 %v4543_v44, %v5663_v27  ;;  %v4327_v27 = vld [vmem:[#allocation4 + $0x62] ss:$0 sm:$0xff] }
 0xe5d   :  { %v2277_v58 = vpack.c.bf16 %v2274_v25, %v2274_v25 }
 0xe5f   :  { %4103 = vmatmul.msk.bf16.gmra.mxu1 %vm493_vm8, %v2277_v58 }
 0xe64   :  { %v1974_v11 = vpop.f32.mrf.mxu1 }
 0xe65   :  { %v1985_v35 = vadd.f32 %v1974_v11, %v1813_v57 }
 0xe68   :  { %v2138_v43 = vpop.f32.mrf.mxu2 }
 0xe69   :  { %v2152_v17 = vadd.f32 %v2138_v43, %v1983_v56 }
 0xe6c   :  { %v1976_v0 = vpop.f32.mrf.mxu1 }
 0xe6d   :  { %v1986_v51 = vadd.f32 %v1976_v0, %v1814_v59 }
 0xe70   :  { %v2140_v6 = vpop.f32.mrf.mxu2 }
 0xe71   :  { %v2153_v60 = vadd.f32 %v2140_v6, %v1984_v52 }
 0xe74   :  { %v1979_v33 = vpop.f32.mrf.mxu1 }
 0xe75   :  { %v1987_v39 = vadd.f32 %v1979_v33, %v1815_v46  ;;  %v4272_v46 = vld [vmem:[#allocation2 + $0xdc] sm:$0xff] }
 0xe76   :  { %2493 = vmatpush.bf16.msra.mxu0 %v4272_v46 }
 0xe78   :  { %v2143_v2 = vpop.f32.mrf.mxu2 }
 0xe79   :  { %v2154_v20 = vadd.f32 %v2143_v2, %v1985_v35 }
 0xe7c   :  { %v1981_v4 = vpop.f32.mrf.mxu1 }
 0xe7d   :  { %v4271_v4 = vld [vmem:[#allocation2 + $0xd4] sm:$0xff] }
 0xe7e   :  { %2494 = vmatpush.bf16.msra.mxu0 %v4271_v4 }
 0xe80   :  { %v2145_v55 = vpop.f32.mrf.mxu2 }
 0xe81   :  { %v2155_v23 = vadd.f32 %v2145_v55, %v1986_v51 }
 0xe84   :  { %v2307_v1 = vpop.f32.mrf.mxu1 }
 0xe85   :  { %v2321_v34 = vadd.f32 %v2307_v1, %v2152_v17 }
 0xe87   :  { %v5691_v12 = vadd.f32 %v4327_v27, %v2321_v34 }
 0xe88   :  { %v2148_v30 = vpop.f32.mrf.mxu2 }
 0xe89   :  { %v2156_v42 = vadd.f32 %v2148_v30, %v1987_v39  ;;  %v2335_v40 = vsel %vm209_vm2, %v5691_v12, 0.0 }
 0xe8a   :  { %2336 = vadd.xlane.f32.xlu0 %v2335_v40 }
 0xe8c   :  { %v2309_v41 = vpop.f32.mrf.mxu1 }
 0xe8d   :  { %v2322_v19 = vadd.f32 %v2309_v41, %v2153_v60 }
 0xe8f   :  { %v5696_v29 = vadd.f32 %v4327_v27, %v2322_v19 }
 0xe90   :  { %v2150_v22 = vpop.f32.mrf.mxu2 }
 0xe91   :  { %v2338_v14 = vsel %vm209_vm2, %v5696_v29, 0.0 }
 0xe92   :  { %2339 = vadd.xlane.f32.xlu1 %v2338_v14 }
 0xe94   :  { %v2312_v3 = vpop.f32.mrf.mxu1 }
 0xe95   :  { %v2323_v32 = vadd.f32 %v2312_v3, %v2154_v20 }
 0xe97   :  { %v5701_v8 = vadd.f32 %v4327_v27, %v2323_v32 }
 0xe99   :  { %v2341_v21 = vsel %vm209_vm2, %v5701_v8, 0.0 }
 0xe9a   :  { %2342 = vadd.xlane.f32.xlu0 %v2341_v21 }
 0xe9c   :  { %v2314_v45 = vpop.f32.mrf.mxu1 }
 0xe9d   :  { %v2324_v31 = vadd.f32 %v2314_v45, %v2155_v23  ;;  %v5752_v45 = vld [vmem:[#allocation4 + $0x63] ss:$0 sm:$0xff] }
 0xe9f   :  { %v5705_v50 = vadd.f32 %v4327_v27, %v2324_v31 }
 0xea1   :  { %v2344_v47 = vsel %vm209_vm2, %v5705_v50, 0.0 }
 0xea2   :  { %2345 = vadd.xlane.f32.xlu1 %v2344_v47 }
 0xedc   :  { %v2317_v13 = vpop.f32.mrf.mxu1 }
 0xedd   :  { %v2325_v5 = vadd.f32 %v2317_v13, %v2156_v42 }
 0xedf   :  { %v5717_v26 = vadd.f32 %v4327_v27, %v2325_v5 }
 0xee1   :  { %v2347_v24 = vsel %vm222_vm3, %v5717_v26, 0.0 }
 0xee4   :  { %v2319_v28 = vpop.f32.mrf.mxu1 }
 0xefd   :  { %v2337_v48 = vpop.xlane.xlu0 %2336 }
 0xefe   :  { %v2350_v37 = vmul.f32 %v2337_v48, %v4819_v7 }
 0xf00   :  { %v5711_v38 = vsub.f32 %v5691_v12, %v2350_v37 }
 0xf02   :  { %v2360_v36 = vmul.f32 %v5711_v38, %v5711_v38 }
 0xf04   :  { %v2365_v15 = vsel %vm209_vm2, %v2360_v36, 0.0  ;;  %v4329_v36 = vld [vmem:[#allocation4 + $0x64] ss:$0 sm:$0xff] }
 0xf05   :  { %v2340_v53 = vpop.xlane.xlu1 %2339  ;;  %2366 = vadd.xlane.f32.xlu0 %v2365_v15 }
 0xf06   :  { %v2351_v62 = vmul.f32 %v2340_v53, %v4819_v7 }
 0xf08   :  { %v5720_v16 = vsub.f32 %v5696_v29, %v2351_v62 }
 0xf0a   :  { %v2361_v10 = vmul.f32 %v5720_v16, %v5720_v16 }
 0xf0c   :  { %v2368_v18 = vsel %vm209_vm2, %v2361_v10, 0.0 }
 0xf0d   :  { %v2343_v9 = vpop.xlane.xlu0 %2342  ;;  %2369 = vadd.xlane.f32.xlu1 %v2368_v18  ;;  %2348 = vadd.xlane.f32.xlu0 %v2347_v24 }
 0xf0e   :  { %v2352_v61 = vmul.f32 %v2343_v9, %v4819_v7 }
 0xf10   :  { %v5729_v44 = vsub.f32 %v5701_v8, %v2352_v61 }
 0xf12   :  { %v2362_v25 = vmul.f32 %v5729_v44, %v5729_v44 }
 0xf14   :  { %v2371_v63 = vsel %vm209_vm2, %v2362_v25, 0.0 }
 0xf15   :  { %2372 = vadd.xlane.f32.xlu1 %v2371_v63  ;;  %v2346_v58 = vpop.xlane.xlu1 %2345 }
 0xf16   :  { %v2353_v11 = vmul.f32 %v2346_v58, %v4819_v7 }
 0xf18   :  { %v5736_v43 = vsub.f32 %v5705_v50, %v2353_v11 }
 0xf1a   :  { %v2363_v0 = vmul.f32 %v5736_v43, %v5736_v43 }
 0xf1c   :  { %v2374_v6 = vsel %vm209_vm2, %v2363_v0, 0.0 }
 0xf1d   :  { %2375 = vadd.xlane.f32.xlu0 %v2374_v6 }
 0xf78   :  { %v2367_v33 = vpop.xlane.xlu0 %2366 }
 0xf79   :  { %v2380_v39 = vmul.f32 %v2367_v33, %v4819_v7 }
 0xf7b   :  { %v2385_v2 = vadd.f32 1e-05, %v2380_v39 }
 0xf7d   :  { %4544 = vrsqrt.f32 %v2385_v2  ;;  %vm2396_vm11 = vweird.f32 %v2385_v2 }
 0xf80   :  { %v2370_v54 = vpop.xlane.xlu1 %2369  ;;  %v2349_v55 = vpop.xlane.xlu0 %2348 }
 0xf81   :  { %v2381_v56 = vmul.f32 %v2370_v54, %v4819_v7  ;;  %v2354_v17 = vmul.f32 %v2349_v55, %v4819_v7 }
 0xf83   :  { %v4545_v27 = vpop.eup %4544  ;;  %v2386_v1 = vadd.f32 1e-05, %v2381_v56  ;;  %v5745_v49 = vsub.f32 %v5717_v26, %v2354_v17 }
 0xf84   :  { %v2391_v34 = vmul.f32 %v4545_v27, %v2385_v2  ;;  %vm2397_vm10 = vweird.f32 %v4545_v27 }
 0xf85   :  { %4546 = vrsqrt.f32 %v2386_v1  ;;  %v2364_v30 = vmul.f32 %v5745_v49, %v5745_v49  ;;  %vm2398_vm12 = vmor %vm2396_vm11, %vm2397_vm10  ;;  %vm2406_vm14 = vweird.f32 %v2386_v1 }
 0xf86   :  { %v2392_v52 = vmul.f32 %v4545_v27, %v2391_v34 }
 0xf87   :  { %v2377_v42 = vsel %vm222_vm3, %v2364_v30, 0.0 }
 0xf88   :  { %v2393_v40 = vmul.f32 0.5, %v2392_v52  ;;  %v2373_v60 = vpop.xlane.xlu1 %2372  ;;  %2378 = vadd.xlane.f32.xlu1 %v2377_v42  ;;  %v4277_v42 = vld [vmem:[#allocation2 + $0x104] sm:$0xff] }
 0xf89   :  { %v2382_v41 = vmul.f32 %v2373_v60, %v4819_v7 }
 0xf8a   :  { %v2394_v19 = vsub.f32 1.5, %v2393_v40 }
 0xf8b   :  { %v4547_v57 = vpop.eup %4546  ;;  %v2387_v22 = vadd.f32 1e-05, %v2382_v41  ;;  %v4276_v41 = vld [vmem:[#allocation2 + $0xfc] sm:$0xff] }
 0xf8c   :  { %v2395_v35 = vmul.f32 %v4545_v27, %v2394_v19  ;;  %v2401_v14 = vmul.f32 %v4547_v57, %v2386_v1  ;;  %vm2407_vm13 = vweird.f32 %v4547_v57  ;;  %v4279_v1 = vld [vmem:[#allocation2 + $0x114] sm:$0xff] }
 0xf8d   :  { %4548 = vrsqrt.f32 %v2387_v22  ;;  %vm2408_vm15 = vmor %vm2406_vm14, %vm2407_vm13  ;;  %vm2416_vm4 = vweird.f32 %v2387_v22 }
 0xf8e   :  { %v2402_v20 = vmul.f32 %v4547_v57, %v2401_v14  ;;  %v2399_v3 = vsel %vm2398_vm12, %v4545_v27, %v2395_v35  ;;  %v4275_v35 = vld [vmem:[#allocation2 + $0xf4] sm:$0xff] }
 0xf8f   :  { %v2440_v31 = vmul.f32 %v2399_v3, %v5711_v38  ;;  %v4274_v3 = vld [vmem:[#allocation2 + $0xec] sm:$0xff] }
 0xf90   :  { %v2403_v32 = vmul.f32 0.5, %v2402_v20  ;;  %v2376_v59 = vpop.xlane.xlu0 %2375 }
 0xf91   :  { %v2383_v51 = vmul.f32 %v2376_v59, %v4819_v7  ;;  %v2446_v5 = vmul.f32 %v5752_v45, %v2440_v31  ;;  %v4330_v59 = vld [vmem:[#allocation4 + $0x65] ss:$0 sm:$0xff] }
 0xf92   :  { %v2404_v21 = vsub.f32 1.5, %v2403_v32 }
 0xf93   :  { %v4549_v23 = vpop.eup %4548  ;;  %v2388_v47 = vadd.f32 1e-05, %v2383_v51  ;;  %v2452_v24 = vadd.f32 %v4329_v36, %v2446_v5  ;;  %v4273_v51 = vld [vmem:[#allocation2 + $0xe4] sm:$0xff] }
 0xf94   :  { %v2405_v13 = vmul.f32 %v4547_v57, %v2404_v21  ;;  %v2411_v28 = vmul.f32 %v4549_v23, %v2387_v22  ;;  %vm2417_vm0 = vweird.f32 %v4549_v23 }
 0xf95   :  { %4550 = vrsqrt.f32 %v2388_v47  ;;  %vm2418_vm5 = vmor %vm2416_vm4, %vm2417_vm0  ;;  %vm2426_vm10 = vweird.f32 %v2388_v47 }
 0xf96   :  { %v2409_v48 = vsel %vm2408_vm15, %v4547_v57, %v2405_v13  ;;  %v2412_v37 = vmul.f32 %v4549_v23, %v2411_v28 }
 0xf97   :  { %v2441_v15 = vmul.f32 %v2409_v48, %v5720_v16 }
 0xf98   :  { %v2413_v53 = vmul.f32 0.5, %v2412_v37 }
 0xf99   :  { %v2447_v62 = vmul.f32 %v5752_v45, %v2441_v15 }
 0xf9a   :  { %v2414_v10 = vsub.f32 1.5, %v2413_v53 }
 0xf9b   :  { %v4551_v18 = vpop.eup %4550  ;;  %v2453_v38 = vadd.f32 %v4329_v36, %v2447_v62 }
 0xf9c   :  { %v2415_v9 = vmul.f32 %v4549_v23, %v2414_v10  ;;  %v2421_v61 = vmul.f32 %v4551_v18, %v2388_v47  ;;  %vm2427_vm6 = vweird.f32 %v4551_v18 }
 0xf9d   :  { %v2457_v25 = vpack.c.bf16 %v2453_v38, %v2452_v24  ;;  %vm2428_vm11 = vmor %vm2426_vm10, %vm2427_vm6 }
 0xf9e   :  { %v2422_v63 = vmul.f32 %v4551_v18, %v2421_v61  ;;  %v2419_v58 = vsel %vm2418_vm5, %v4549_v23, %v2415_v9 }
 0xf9f   :  { %4112 = vmatmul.msk.bf16.vlgmr.msra.gmra.mxu0 %vm209_vm2, %v2457_v25  ;;  %v2442_v16 = vmul.f32 %v2419_v58, %v5729_v44  ;;  %v4280_v44 = vld [vmem:[#allocation2 + $0x11c] sm:$0xff] }
 0xfa0   :  { %v2423_v11 = vmul.f32 0.5, %v2422_v63  ;;  %2622 = vmatpush.bf16.msra.mxu2 %v4280_v44 }
 0xfa1   :  { %v2448_v39 = vmul.f32 %v5752_v45, %v2442_v16 }
 0xfa2   :  { %v2424_v0 = vsub.f32 1.5, %v2423_v11 }
 0xfa3   :  { %v2454_v4 = vadd.f32 %v4329_v36, %v2448_v39 }
 0xfa4   :  { %v2425_v6 = vmul.f32 %v4551_v18, %v2424_v0  ;;  %2623 = vmatpush.bf16.msra.mxu2 %v4279_v1 }
 0xfa6   :  { %v2429_v46 = vsel %vm2428_vm11, %v4551_v18, %v2425_v6 }
 0xfa7   :  { %v2443_v33 = vmul.f32 %v2429_v46, %v5736_v43  ;;  %v4278_v43 = vld [vmem:[#allocation2 + $0x10c] sm:$0xff] }
 0xfa8   :  { %2624 = vmatpush.bf16.msra.mxu2 %v4278_v43 }
 0xfa9   :  { %v2449_v2 = vmul.f32 %v5752_v45, %v2443_v33 }
 0xfab   :  { %v2455_v54 = vadd.f32 %v4329_v36, %v2449_v2 }
 0xfac   :  { %2625 = vmatpush.bf16.msra.mxu2 %v4277_v42 }
 0xfad   :  { %v2458_v55 = vpack.c.bf16 %v2455_v54, %v2454_v4 }
 0xfaf   :  { %4113 = vmatmul.msk.bf16.gmra.mxu0 %vm209_vm2, %v2458_v55 }
 0xfb0   :  { %2626 = vmatpush.bf16.msra.mxu2 %v4276_v41 }
 0xfb4   :  { %2627 = vmatpush.bf16.msra.mxu2 %v4275_v35 }
 0xfb8   :  { %2628 = vmatpush.bf16.msra.mxu2 %v4274_v3 }
 0xfbc   :  { %2629 = vmatpush.bf16.msra.mxu2 %v4273_v51 }
 0xffb   :  { %v2379_v56 = vpop.xlane.xlu1 %2378 }
 0xffc   :  { %v2384_v17 = vmul.f32 %v2379_v56, %v4819_v7 }
 0xffe   :  { %v2389_v27 = vadd.f32 1e-05, %v2384_v17 }
0x1000   :  { %4552 = vrsqrt.f32 %v2389_v27  ;;  %vm2436_vm13 = vweird.f32 %v2389_v27 }
0x1006   :  { %v4553_v34 = vpop.eup %4552 }
0x1007   :  { %v2431_v30 = vmul.f32 %v4553_v34, %v2389_v27  ;;  %vm2437_vm12 = vweird.f32 %v4553_v34 }
0x1008   :  { %vm2438_vm14 = vmor %vm2436_vm13, %vm2437_vm12 }
0x1009   :  { %v2432_v52 = vmul.f32 %v4553_v34, %v2431_v30 }
0x100b   :  { %v2433_v40 = vmul.f32 0.5, %v2432_v52 }
0x100d   :  { %v2434_v60 = vsub.f32 1.5, %v2433_v40 }
0x100f   :  { %v2435_v19 = vmul.f32 %v4553_v34, %v2434_v60 }
0x1011   :  { %v2439_v57 = vsel %vm2438_vm14, %v4553_v34, %v2435_v19 }
0x1012   :  { %v2444_v22 = vmul.f32 %v2439_v57, %v5745_v49 }
0x1014   :  { %v2450_v14 = vmul.f32 %v5752_v45, %v2444_v22 }
0x1016   :  { %v2456_v20 = vadd.f32 %v4329_v36, %v2450_v14 }
0x1018   :  { %v2459_v32 = vpack.c.bf16 %v2456_v20, %v2456_v20 }
0x101a   :  { %4114 = vmatmul.msk.bf16.gmra.mxu0 %vm209_vm2, %v2459_v32 }
0x101c   :  { %v2496_v21 = vpop.f32.mrf.mxu0 }
0x101d   :  { %v2497_v23 = vadd.f32 %v4330_v59, %v2496_v21 }
0x101f   :  { %v2515_v31 = vmul.f32 0.044715, %v2497_v23  ;;  %v2510_v16 = vmul.f32 0.5, %v2497_v23 }
0x1021   :  { %v2520_v47 = vmul.f32 %v2515_v31, %v2497_v23  ;;  %v4331_v31 = vld [vmem:[#allocation4 + $0x66] ss:$0 sm:$0xff] }
0x1023   :  { %v2525_v13 = vmul.f32 %v2520_v47, %v2497_v23 }
0x1024   :  { %v2498_v28 = vpop.f32.mrf.mxu0 }
0x1025   :  { %v2530_v49 = vadd.f32 %v2525_v13, %v2497_v23  ;;  %v2499_v48 = vadd.f32 %v4330_v59, %v2498_v28 }
0x1027   :  { %v2516_v37 = vmul.f32 0.044715, %v2499_v48  ;;  %v2535_v45 = vmul.f32 0.7978846, %v2530_v49  ;;  %v2511_v6 = vmul.f32 0.5, %v2499_v48 }
0x1029   :  { %v2521_v5 = vmul.f32 %v2516_v37, %v2499_v48  ;;  %4554 = vtanh.f32 %v2535_v45 }
0x102b   :  { %v2526_v36 = vmul.f32 %v2521_v5, %v2499_v48 }
0x102c   :  { %v2501_v15 = vpop.f32.mrf.mxu0 }
0x102d   :  { %v2531_v53 = vadd.f32 %v2526_v36, %v2499_v48  ;;  %v2502_v62 = vadd.f32 %v4330_v59, %v2501_v15 }
0x102f   :  { %v2536_v10 = vmul.f32 0.7978846, %v2531_v53  ;;  %v2517_v18 = vmul.f32 0.044715, %v2502_v62  ;;  %v4555_v38 = vpop.eup %4554  ;;  %v2512_v34 = vmul.f32 0.5, %v2502_v62 }
0x1030   :  { %v2545_v58 = vadd.f32 1.0, %v4555_v38 }
0x1031   :  { %4556 = vtanh.f32 %v2536_v10  ;;  %v2522_v24 = vmul.f32 %v2517_v18, %v2502_v62 }
0x1032   :  { %v2550_v2 = vmul.f32 %v2545_v58, %v2510_v16 }
0x1033   :  { %v2527_v9 = vmul.f32 %v2522_v24, %v2502_v62 }
0x1034   :  { %v2503_v61 = vpop.f32.mrf.mxu0 }
0x1035   :  { %v2504_v25 = vadd.f32 %v4330_v59, %v2503_v61  ;;  %v2532_v63 = vadd.f32 %v2527_v9, %v2502_v62 }
0x1037   :  { %v4557_v11 = vpop.eup %4556  ;;  %v2518_v0 = vmul.f32 0.044715, %v2504_v25  ;;  %v2537_v39 = vmul.f32 0.7978846, %v2532_v63  ;;  %v2513_v43 = vmul.f32 0.5, %v2504_v25 }
0x1038   :  { %v2546_v46 = vadd.f32 1.0, %v4557_v11 }
0x1039   :  { %v2523_v33 = vmul.f32 %v2518_v0, %v2504_v25  ;;  %4558 = vtanh.f32 %v2537_v39 }
0x103a   :  { %v2551_v4 = vmul.f32 %v2546_v46, %v2511_v6 }
0x103b   :  { %v2528_v54 = vmul.f32 %v2523_v33, %v2504_v25 }
0x103c   :  { %v2555_v55 = vpack.c.bf16 %v2551_v4, %v2550_v2 }
0x103d   :  { %v2533_v56 = vadd.f32 %v2528_v54, %v2504_v25 }
0x103e   :  { %2630 = vmatmul.bf16.vlgmr.msra.gmra.mxu2 %v2555_v55 }
0x103f   :  { %v2538_v17 = vmul.f32 0.7978846, %v2533_v56  ;;  %v4559_v27 = vpop.eup %4558 }
0x1040   :  { %v2547_v44 = vadd.f32 1.0, %v4559_v27 }
0x1041   :  { %4560 = vtanh.f32 %v2538_v17 }
0x1042   :  { %v2552_v52 = vmul.f32 %v2547_v44, %v2512_v34 }
0x1047   :  { %v4561_v1 = vpop.eup %4560 }
0x1048   :  { %v2548_v30 = vadd.f32 1.0, %v4561_v1 }
0x104a   :  { %v2553_v42 = vmul.f32 %v2548_v30, %v2513_v43 }
0x104c   :  { %v2556_v40 = vpack.c.bf16 %v2553_v42, %v2552_v52  ;;  %v4282_v52 = vld [vmem:[#allocation2 + $0x12c] sm:$0xff]  ;;  %v4284_v42 = vld [vmem:[#allocation2 + $0x13c] sm:$0xff] }
0x104d   :  { %2815 = vmatpush.bf16.msrb.mxu3 %v4282_v52  ;;  %2854 = vmatpush.bf16.msrb.mxu1 %v4284_v42 }
0x104e   :  { %2635 = vmatmul.bf16.gmra.mxu2 %v2556_v40 }
0x1097   :  { %v2506_v60 = vpop.f32.mrf.mxu0 }
0x1098   :  { %v2507_v41 = vadd.f32 %v4330_v59, %v2506_v60 }
0x109a   :  { %v2519_v19 = vmul.f32 0.044715, %v2507_v41  ;;  %v2514_v32 = vmul.f32 0.5, %v2507_v41 }
0x109c   :  { %v2524_v57 = vmul.f32 %v2519_v19, %v2507_v41  ;;  %v4281_v19 = vld [vmem:[#allocation2 + $0x124] sm:$0xff] }
0x109d   :  { %2816 = vmatpush.bf16.msrb.mxu3 %v4281_v19 }
0x109e   :  { %v2529_v22 = vmul.f32 %v2524_v57, %v2507_v41  ;;  %v4283_v57 = vld [vmem:[#allocation2 + $0x134] sm:$0xff] }
0x109f   :  { %v2508_v35 = vpop.f32.mrf.mxu0  ;;  %2855 = vmatpush.bf16.msrb.mxu1 %v4283_v57 }
0x10a0   :  { %v2534_v14 = vadd.f32 %v2529_v22, %v2507_v41 }
0x10a2   :  { %v2539_v20 = vmul.f32 0.7978846, %v2534_v14 }
0x10a4   :  { %4562 = vtanh.f32 %v2539_v20 }
0x10aa   :  { %v4563_v3 = vpop.eup %4562 }
0x10ab   :  { %v2549_v51 = vadd.f32 1.0, %v4563_v3 }
0x10ad   :  { %v2554_v21 = vmul.f32 %v2549_v51, %v2514_v32 }
0x10af   :  { %v2557_v23 = vpack.c.bf16 %v2554_v21, %v2554_v21 }
0x10b1   :  { %2640 = vmatmul.bf16.gmra.mxu2 %v2557_v23 }
0x10c1   :  { %v2631_v47 = vpop.f32.mrf.mxu2 }
0x10c2   :  { %v2645_v13 = vadd.f32 %v2631_v47, %v5691_v12 }
0x10c4   :  { %v5769_v28 = vadd.f32 %v4331_v31, %v2645_v13 }
0x10c6   :  { %v2659_v59 = vsel %vm209_vm2, %v5769_v28, 0.0 }
0x10c7   :  { %2660 = vadd.xlane.f32.xlu2 %v2659_v59 }
0x10c9   :  { %v2633_v49 = vpop.f32.mrf.mxu2 }
0x10ca   :  { %v2646_v48 = vadd.f32 %v2633_v49, %v5696_v29 }
0x10cc   :  { %v5774_v37 = vadd.f32 %v4331_v31, %v2646_v48 }
0x10ce   :  { %v2662_v45 = vsel %vm209_vm2, %v5774_v37, 0.0 }
0x10cf   :  { %2663 = vadd.xlane.f32.xlu0 %v2662_v45 }
0x10d1   :  { %v2636_v5 = vpop.f32.mrf.mxu2 }
0x10d2   :  { %v2647_v36 = vadd.f32 %v2636_v5, %v5701_v8 }
0x10d4   :  { %v5779_v15 = vadd.f32 %v4331_v31, %v2647_v36 }
0x10d6   :  { %v2665_v12 = vsel %vm209_vm2, %v5779_v15, 0.0 }
0x10d7   :  { %2666 = vadd.xlane.f32.xlu1 %v2665_v12 }
0x10d9   :  { %v2638_v53 = vpop.f32.mrf.mxu2 }
0x10da   :  { %v2648_v62 = vadd.f32 %v2638_v53, %v5705_v50 }
0x10dc   :  { %v5784_v10 = vadd.f32 %v4331_v31, %v2648_v62 }
0x10de   :  { %v2668_v29 = vsel %vm209_vm2, %v5784_v10, 0.0 }
0x10df   :  { %2669 = vadd.xlane.f32.xlu2 %v2668_v29  ;;  %v4332_v29 = vld [vmem:[#allocation4 + $0x68] ss:$0 sm:$0xff] }
0x1134   :  { %v2641_v18 = vpop.f32.mrf.mxu2 }
0x1135   :  { %v2649_v24 = vadd.f32 %v2641_v18, %v5717_v26 }
0x1137   :  { %v5789_v38 = vadd.f32 %v4331_v31, %v2649_v24 }
0x1139   :  { %v2671_v8 = vsel %vm222_vm3, %v5789_v38, 0.0 }
0x113a   :  { %v2661_v9 = vpop.xlane.xlu2 %2660  ;;  %2672 = vadd.xlane.f32.xlu0 %v2671_v8 }
0x113b   :  { %v2674_v61 = vmul.f32 %v2661_v9, %v4819_v7 }
0x113c   :  { %v2643_v25 = vpop.f32.mrf.mxu2 }
0x113d   :  { %v5795_v50 = vsub.f32 %v5769_v28, %v2674_v61 }
0x113f   :  { %v2684_v63 = vmul.f32 %v5795_v50, %v5795_v50 }
0x1141   :  { %v2689_v58 = vsel %vm209_vm2, %v2684_v63, 0.0  ;;  %v4333_v63 = vld [vmem:[#allocation4 + $0x69] ss:$0 sm:$0xff] }
0x1142   :  { %v2664_v11 = vpop.xlane.xlu0 %2663  ;;  %2690 = vadd.xlane.f32.xlu1 %v2689_v58 }
0x1143   :  { %v2675_v26 = vmul.f32 %v2664_v11, %v4819_v7 }
0x1145   :  { %v5802_v0 = vsub.f32 %v5774_v37, %v2675_v26 }
0x1147   :  { %v2685_v16 = vmul.f32 %v5802_v0, %v5802_v0 }
0x1149   :  { %v2692_v6 = vsel %vm209_vm2, %v2685_v16, 0.0 }
0x114a   :  { %v2667_v46 = vpop.xlane.xlu1 %2666  ;;  %2693 = vadd.xlane.f32.xlu2 %v2692_v6 }
0x114b   :  { %v2676_v33 = vmul.f32 %v2667_v46, %v4819_v7 }
0x114d   :  { %v5809_v39 = vsub.f32 %v5779_v15, %v2676_v33 }
0x114f   :  { %v2686_v2 = vmul.f32 %v5809_v39, %v5809_v39 }
0x1151   :  { %v2695_v4 = vsel %vm209_vm2, %v2686_v2, 0.0 }
0x1152   :  { %v2670_v54 = vpop.xlane.xlu2 %2669  ;;  %2696 = vadd.xlane.f32.xlu0 %v2695_v4 }
0x1153   :  { %v2677_v55 = vmul.f32 %v2670_v54, %v4819_v7 }
0x1155   :  { %v5816_v56 = vsub.f32 %v5784_v10, %v2677_v55 }
0x1157   :  { %v2687_v17 = vmul.f32 %v5816_v56, %v5816_v56 }
0x1159   :  { %v2698_v27 = vsel %vm209_vm2, %v2687_v17, 0.0 }
0x115a   :  { %2699 = vadd.xlane.f32.xlu1 %v2698_v27 }
0x11ad   :  { %v2673_v44 = vpop.xlane.xlu0 %2672 }
0x11ae   :  { %v2678_v1 = vmul.f32 %v2673_v44, %v4819_v7 }
0x11b0   :  { %v5823_v34 = vsub.f32 %v5789_v38, %v2678_v1 }
0x11b2   :  { %v2688_v43 = vmul.f32 %v5823_v34, %v5823_v34 }
0x11b4   :  { %v2701_v30 = vsel %vm222_vm3, %v2688_v43, 0.0 }
0x11b5   :  { %v2691_v40 = vpop.xlane.xlu1 %2690  ;;  %2702 = vadd.xlane.f32.xlu2 %v2701_v30 }
0x11b6   :  { %v2704_v60 = vmul.f32 %v2691_v40, %v4819_v7 }
0x11b8   :  { %v2709_v41 = vadd.f32 1e-05, %v2704_v60 }
0x11ba   :  { %4564 = vrsqrt.f32 %v2709_v41  ;;  %vm2720_vm0 = vweird.f32 %v2709_v41 }
0x11bd   :  { %v2694_v22 = vpop.xlane.xlu2 %2693 }
0x11be   :  { %v2705_v35 = vmul.f32 %v2694_v22, %v4819_v7 }
0x11c0   :  { %v4565_v14 = vpop.eup %4564  ;;  %v2710_v20 = vadd.f32 1e-05, %v2705_v35 }
0x11c1   :  { %v2715_v3 = vmul.f32 %v4565_v14, %v2709_v41  ;;  %vm2721_vm15 = vweird.f32 %v4565_v14 }
0x11c2   :  { %4566 = vrsqrt.f32 %v2710_v20  ;;  %vm2722_vm4 = vmor %vm2720_vm0, %vm2721_vm15  ;;  %vm2730_vm6 = vweird.f32 %v2710_v20 }
0x11c3   :  { %v2716_v32 = vmul.f32 %v4565_v14, %v2715_v3 }
0x11c5   :  { %v2717_v51 = vmul.f32 0.5, %v2716_v32  ;;  %v2697_v21 = vpop.xlane.xlu0 %2696 }
0x11c6   :  { %v2706_v23 = vmul.f32 %v2697_v21, %v4819_v7 }
0x11c7   :  { %v2718_v31 = vsub.f32 1.5, %v2717_v51 }
0x11c8   :  { %v4567_v47 = vpop.eup %4566  ;;  %v2711_v13 = vadd.f32 1e-05, %v2706_v23 }
0x11c9   :  { %v2719_v59 = vmul.f32 %v4565_v14, %v2718_v31  ;;  %v2725_v49 = vmul.f32 %v4567_v47, %v2710_v20  ;;  %vm2731_vm5 = vweird.f32 %v4567_v47 }
0x11ca   :  { %4568 = vrsqrt.f32 %v2711_v13  ;;  %vm2732_vm10 = vmor %vm2730_vm6, %vm2731_vm5  ;;  %vm2740_vm12 = vweird.f32 %v2711_v13 }
0x11cb   :  { %v2726_v48 = vmul.f32 %v4567_v47, %v2725_v49  ;;  %v2723_v45 = vsel %vm2722_vm4, %v4565_v14, %v2719_v59 }
0x11cc   :  { %v2764_v18 = vmul.f32 %v2723_v45, %v5795_v50 }
0x11cd   :  { %v2727_v5 = vmul.f32 0.5, %v2726_v48  ;;  %v2700_v36 = vpop.xlane.xlu1 %2699 }
0x11ce   :  { %v2707_v12 = vmul.f32 %v2700_v36, %v4819_v7  ;;  %v2770_v58 = vmul.f32 %v4332_v29, %v2764_v18 }
0x11cf   :  { %v2728_v53 = vsub.f32 1.5, %v2727_v5 }
0x11d0   :  { %v4569_v62 = vpop.eup %4568  ;;  %v2712_v24 = vadd.f32 1e-05, %v2707_v12  ;;  %v2776_v33 = vadd.f32 %v4333_v63, %v2770_v58 }
0x11d1   :  { %v2729_v8 = vmul.f32 %v4567_v47, %v2728_v53  ;;  %v2735_v9 = vmul.f32 %v4569_v62, %v2711_v13  ;;  %vm2741_vm11 = vweird.f32 %v4569_v62 }
0x11d2   :  { %4570 = vrsqrt.f32 %v2712_v24  ;;  %vm2742_vm13 = vmor %vm2740_vm12, %vm2741_vm11  ;;  %vm2750_vm15 = vweird.f32 %v2712_v24 }
0x11d3   :  { %v2733_v61 = vsel %vm2732_vm10, %v4567_v47, %v2729_v8  ;;  %v2736_v25 = vmul.f32 %v4569_v62, %v2735_v9 }
0x11d4   :  { %v2765_v11 = vmul.f32 %v2733_v61, %v5802_v0 }
0x11d5   :  { %v2737_v26 = vmul.f32 0.5, %v2736_v25 }
0x11d6   :  { %v2771_v16 = vmul.f32 %v4332_v29, %v2765_v11 }
0x11d7   :  { %v2738_v6 = vsub.f32 1.5, %v2737_v26 }
0x11d8   :  { %v4571_v46 = vpop.eup %4570  ;;  %v2777_v2 = vadd.f32 %v4333_v63, %v2771_v16 }
0x11d9   :  { %v2739_v4 = vmul.f32 %v4569_v62, %v2738_v6  ;;  %v2745_v50 = vmul.f32 %v4571_v46, %v2712_v24  ;;  %vm2751_vm14 = vweird.f32 %v4571_v46 }
0x11da   :  { %v2781_v54 = vpack.c.bf16 %v2777_v2, %v2776_v33  ;;  %vm2752_vm0 = vmor %vm2750_vm15, %vm2751_vm14 }
0x11db   :  { %v2746_v55 = vmul.f32 %v4571_v46, %v2745_v50  ;;  %v2743_v17 = vsel %vm2742_vm13, %v4569_v62, %v2739_v4 }
0x11dc   :  { %4155 = vmatmul.msk.bf16.vlgmr.msrb.gmra.mxu3 %vm209_vm2, %v2781_v54  ;;  %4166 = vmatmul.msk.bf16.vlgmr.msrb.gmra.mxu1 %vm209_vm2, %v2781_v54  ;;  %v2766_v44 = vmul.f32 %v2743_v17, %v5809_v39 }
0x11dd   :  { %v2747_v27 = vmul.f32 0.5, %v2746_v55 }
0x11de   :  { %v2772_v52 = vmul.f32 %v4332_v29, %v2766_v44 }
0x11df   :  { %v2748_v0 = vsub.f32 1.5, %v2747_v27 }
0x11e0   :  { %v2778_v40 = vadd.f32 %v4333_v63, %v2772_v52 }
0x11e1   :  { %v2749_v1 = vmul.f32 %v4571_v46, %v2748_v0 }
0x11e3   :  { %v2753_v43 = vsel %vm2752_vm0, %v4571_v46, %v2749_v1 }
0x11e4   :  { %v2767_v30 = vmul.f32 %v2753_v43, %v5816_v56 }
0x11e6   :  { %v2773_v42 = vmul.f32 %v4332_v29, %v2767_v30 }
0x11e8   :  { %v2779_v60 = vadd.f32 %v4333_v63, %v2773_v42 }
0x11ea   :  { %v2782_v41 = vpack.c.bf16 %v2779_v60, %v2778_v40 }
0x11ec   :  { %4156 = vmatmul.msk.bf16.gmra.mxu3 %vm209_vm2, %v2782_v41  ;;  %4167 = vmatmul.msk.bf16.gmra.mxu1 %vm209_vm2, %v2782_v41 }
0x1228   :  { %v2703_v19 = vpop.xlane.xlu2 %2702 }
0x1229   :  { %v2708_v57 = vmul.f32 %v2703_v19, %v4819_v7 }
0x122b   :  { %v2713_v22 = vadd.f32 1e-05, %v2708_v57 }
0x122d   :  { %4572 = vrsqrt.f32 %v2713_v22  ;;  %vm2760_vm5 = vweird.f32 %v2713_v22 }
0x1233   :  { %v4573_v39 = vpop.eup %4572 }
0x1234   :  { %v2755_v35 = vmul.f32 %v4573_v39, %v2713_v22  ;;  %vm2761_vm4 = vweird.f32 %v4573_v39 }
0x1235   :  { %vm2762_vm6 = vmor %vm2760_vm5, %vm2761_vm4 }
0x1236   :  { %v2756_v14 = vmul.f32 %v4573_v39, %v2755_v35 }
0x1238   :  { %v2757_v20 = vmul.f32 0.5, %v2756_v14 }
0x123a   :  { %v2758_v3 = vsub.f32 1.5, %v2757_v20 }
0x123c   :  { %v2759_v56 = vmul.f32 %v4573_v39, %v2758_v3 }
0x123e   :  { %v2763_v32 = vsel %vm2762_vm6, %v4573_v39, %v2759_v56 }
0x123f   :  { %v2768_v51 = vmul.f32 %v2763_v32, %v5823_v34 }
0x1241   :  { %v2774_v21 = vmul.f32 %v4332_v29, %v2768_v51 }
0x1243   :  { %v2780_v23 = vadd.f32 %v4333_v63, %v2774_v21 }
0x1245   :  { %v2783_v31 = vpack.c.bf16 %v2780_v23, %v2780_v23 }
0x1247   :  { %4157 = vmatmul.msk.bf16.gmra.mxu3 %vm209_vm2, %v2783_v31  ;;  %4168 = vmatmul.msk.bf16.gmra.mxu1 %vm209_vm2, %v2783_v31  ;;  %v5929_v31 = vld [vmem:[#allocation4 + $0x28] sm:$0xff] }
0x1259   :  { %v2857_v34 = vpop.f32.mrf.mxu1 }
0x125f   :  { %v2818_v47 = vpop.f32.mrf.mxu3 }
0x1261   :  { %v2859_v5 = vpop.f32.mrf.mxu1 }
0x1262   :  { %v5865_v61 = vpack.c.bf16 %v2859_v5, %v2857_v34 }
0x1267   :  { %v2820_v13 = vpop.f32.mrf.mxu3 }
0x1268   :  { %v5848_v45 = vpack.c.bf16 %v2820_v13, %v2818_v47 }
0x1269   :  { %v2862_v36 = vpop.f32.mrf.mxu1 }
0x126f   :  { %v2823_v59 = vpop.f32.mrf.mxu3 }
0x1271   :  { %v2864_v12 = vpop.f32.mrf.mxu1 }
0x1272   :  { %v5856_v18 = vpack.c.bf16 %v2864_v12, %v2862_v36  ;;  %v4682_v36 = vld [vmem:[#allocation4 + $0x30] sm:$0xff] }
0x1277   :  { %v2825_v49 = vpop.f32.mrf.mxu3 }
0x1278   :  { %v5844_v48 = vpack.c.bf16 %v2825_v49, %v2823_v59 }
0x127a   :  { %2879 = vrot.lane.b32.xlu2 %v5844_v48, %s4745_s0 }
0x1282   :  { %3035 = vrot.lane.b32.xlu2 %v5848_v45, %s4749_s10 }
0x12c4   :  { %v2867_v53 = vpop.f32.mrf.mxu1 }
0x12c5   :  { %v5852_v62 = vpack.c.bf16 %v2867_v53, %v2867_v53 }
0x12c7   :  { %v3005_v29 = vsel %vm565_vm7, %v5852_v62, 0 }
0x12c8   :  { %3012 = vmatpush.bf16.msrb.mxu2 %v3005_v29 }
0x12ca   :  { %v2828_v24 = vpop.f32.mrf.mxu3 }
0x12cb   :  { %v5858_v8 = vpack.c.bf16 %v2828_v24, %v2828_v24 }
0x12cc   :  { %v2869_v9 = vpop.f32.mrf.mxu1  ;;  %3013 = vmatpush.bf16.msrb.mxu2 %v5856_v18 }
0x12cd   :  { %3386 = vrot.lane.b32.xlu2 %v5858_v8, %s4750_s11  ;;  %3045 = vrot.lane.b32.xlu1 %v5858_v8, %s4748_s9 }
0x12ce   :  { %2881 = vrot.lane.b32.xlu0 %v5858_v8, %s4745_s0 }
0x12d0   :  { %3014 = vmatpush.bf16.msrb.mxu2 %v5865_v61 }
0x12d2   :  { %v2830_v25 = vpop.f32.mrf.mxu3 }
0x12d4   :  { %v2880_v63 = vpop.permute.xlu2 %2879 }
0x12d5   :  { %3384 = vrot.lane.b32.xlu2 %v5844_v48, %s4750_s11  ;;  %3041 = vrot.lane.b32.xlu1 %v5848_v45, %s4748_s9  ;;  %v2896_v17 = vsel %vm68_vm1, %v2880_v63, 0 }
0x12d6   :  { %3043 = vrot.lane.b32.xlu0 %v5844_v48, %s4748_s9 }
0x12dc   :  { %v3036_v58 = vpop.permute.xlu2 %3035 }
0x12dd   :  { %3207 = vrot.lane.b32.xlu2 %v5848_v45, %s4747_s8  ;;  %3217 = vrot.lane.b32.xlu1 %v5858_v8, %s4746_s7 }
0x12de   :  { %2877 = vrot.lane.b32.xlu0 %v5848_v45, %s4745_s0 }
0x12e5   :  { %3332 = vrot.lane.b32.xlu2 %v5852_v62, %s4739_s20  ;;  %3039 = vrot.lane.b32.xlu1 %v5858_v8, %s4749_s10 }
0x12e6   :  { %3037 = vrot.lane.b32.xlu0 %v5844_v48, %s4749_s10 }
0x12ed   :  { %3382 = vrot.lane.b32.xlu1 %v5848_v45, %s4750_s11 }
0x12ee   :  { %3215 = vrot.lane.b32.xlu0 %v5844_v48, %s4746_s7 }
0x12f5   :  { %3161 = vrot.lane.b32.xlu1 %v5856_v18, %s4745_s0 }
0x12f6   :  { %3213 = vrot.lane.b32.xlu0 %v5848_v45, %s4746_s7 }
0x12fd   :  { %3330 = vrot.lane.b32.xlu1 %v5856_v18, %s4739_s20 }
0x12fe   :  { %3376 = vrot.lane.b32.xlu0 %v5848_v45, %s4751_s12 }
0x1306   :  { %3163 = vrot.lane.b32.xlu0 %v5852_v62, %s4745_s0 }
0x130e   :  { %3159 = vrot.lane.b32.xlu0 %v5865_v61, %s4745_s0 }
0x1327   :  { %v3387_v11 = vpop.permute.xlu2 %3386 }
0x1328   :  { %v3404_v52 = vsel %vm68_vm1, %v3387_v11, 0  ;;  %v5947_v11 = vld [vmem:[#allocation4 + $0x38] sm:$0xff] }
0x132f   :  { %v3385_v26 = vpop.permute.xlu2 %3384 }
0x1330   :  { %v3401_v60 = vsel %vm68_vm1, %v3385_v26, 0 }
0x1337   :  { %v3208_v16 = vpop.permute.xlu2 %3207 }
0x133f   :  { %v3333_v6 = vpop.permute.xlu2 %3332  ;;  %v3046_v46 = vpop.permute.xlu1 %3045 }
0x1340   :  { %v3346_v33 = vsel %vm565_vm7, %v3333_v6, 0  ;;  %v3063_v2 = vsel %vm68_vm1, %v3046_v46, 0  ;;  %v2882_v4 = vpop.permute.xlu0 %2881 }
0x1341   :  { %v2899_v50 = vsel %vm68_vm1, %v2882_v4, 0  ;;  %3070 = vmatpush.bf16.xpose.msra.mxu3 %v3063_v2  ;;  %3353 = vmatpush.bf16.msra.mxu2 %v3346_v33 }
0x1342   :  { %2906 = vmatpush.bf16.xpose.msrb.mxu0 %v2899_v50 }
0x1347   :  { %v3042_v54 = vpop.permute.xlu1 %3041 }
0x1348   :  { %v3044_v55 = vpop.permute.xlu0 %3043  ;;  %v3057_v43 = vsel %vm68_vm1, %v3042_v54, 0  ;;  %v5959_v54 = vld [vmem:[#allocation4 + $0x40] sm:$0xff] }
0x1349   :  { %v3060_v27 = vsel %vm68_vm1, %v3044_v55, 0 }
0x134a   :  { %2907 = vmatpush.bf16.xpose.msrb.mxu0 %v2896_v17  ;;  %3071 = vmatpush.bf16.xpose.msra.mxu3 %v3060_v27 }
0x134f   :  { %v3218_v0 = vpop.permute.xlu1 %3217 }
0x1350   :  { %v3235_v44 = vsel %vm68_vm1, %v3218_v0, 0  ;;  %v2878_v1 = vpop.permute.xlu0 %2877 }
0x1351   :  { %v2893_v30 = vsel %vm68_vm1, %v2878_v1, 0 }
0x1352   :  { %2908 = vmatpush.bf16.xpose.msrb.mxu0 %v2893_v30  ;;  %3072 = vmatpush.bf16.xpose.msra.mxu3 %v3057_v43 }
0x1357   :  { %v3040_v42 = vpop.permute.xlu1 %3039 }
0x1358   :  { %v3038_v40 = vpop.permute.xlu0 %3037 }
0x1359   :  { %4169 = vmatmul.msk.bf16.vlgmr.msrb.gmra.mxu0 %vm68_vm1, %v5848_v45  ;;  %4175 = vmatmul.msk.bf16.vlgmr.msra.gmra.mxu3 %vm68_vm1, %v3036_v58 }
0x135a   :  { %3242 = vmatpush.bf16.xpose.msra.mxu0 %v3235_v44  ;;  %3411 = vmatpush.bf16.xpose.msrb.mxu3 %v3404_v52  ;;  %v5971_v52 = vld [vmem:[#allocation4 + $0x48] sm:$0x3] }
0x135f   :  { %v3383_v41 = vpop.permute.xlu1 %3382 }
0x1360   :  { %v3398_v19 = vsel %vm68_vm1, %v3383_v41, 0  ;;  %v3216_v57 = vpop.permute.xlu0 %3215 }
0x1361   :  { %v3232_v22 = vsel %vm68_vm1, %v3216_v57, 0 }
0x1362   :  { %3412 = vmatpush.bf16.xpose.msrb.mxu3 %v3401_v60  ;;  %3243 = vmatpush.bf16.xpose.msra.mxu0 %v3232_v22 }
0x1367   :  { %v3162_v39 = vpop.permute.xlu1 %3161 }
0x1368   :  { %v3214_v35 = vpop.permute.xlu0 %3213 }
0x1369   :  { %v3229_v14 = vsel %vm68_vm1, %v3214_v35, 0  ;;  %4170 = vmatmul.msk.bf16.gmra.mxu0 %vm68_vm1, %v5844_v48  ;;  %4176 = vmatmul.msk.bf16.gmra.mxu3 %vm68_vm1, %v3038_v40 }
0x136a   :  { %3413 = vmatpush.bf16.xpose.msrb.mxu3 %v3398_v19  ;;  %3244 = vmatpush.bf16.xpose.msra.mxu0 %v3229_v14 }
0x136f   :  { %v3331_v20 = vpop.permute.xlu1 %3330 }
0x1370   :  { %v3377_v3 = vpop.permute.xlu0 %3376  ;;  %3354 = vmatpush.bf16.msra.mxu2 %v3331_v20 }
0x1378   :  { %v3164_v56 = vpop.permute.xlu0 %3163 }
0x1379   :  { %v3177_v32 = vsel %vm565_vm7, %v3164_v56, 0  ;;  %4171 = vmatmul.msk.bf16.gmra.mxu0 %vm68_vm1, %v5858_v8  ;;  %4177 = vmatmul.msk.bf16.gmra.mxu3 %vm68_vm1, %v3040_v42 }
0x137a   :  { %3184 = vmatpush.bf16.msra.mxu1 %v3177_v32 }
0x137e   :  { %3185 = vmatpush.bf16.msra.mxu1 %v3162_v39 }
0x1380   :  { %v3160_v51 = vpop.permute.xlu0 %3159 }
0x1382   :  { %3186 = vmatpush.bf16.msra.mxu1 %v3160_v51 }
0x1389   :  { %4181 = vmatmul.msk.bf16.vlgmr.msra.gmra.mxu0 %vm68_vm1, %v3208_v16  ;;  %4187 = vmatmul.msk.bf16.vlgmr.msrb.gmra.mxu3 %vm68_vm1, %v3377_v3 }
0x13d6   :  { %v2910_v21 = vpop.f32.mrf.mxu0 }
0x13d7   :  { %v2924_v23 = vmul.f32 0.35355338, %v2910_v21 }
0x13d9   :  { %v5932_v47 = vadd.f32 %v5929_v31, %v2924_v23 }
0x13db   :  { %v2934_v13 = vsel %vm493_vm8, %v5932_v47, -inf }
0x13dc   :  { %2935 = vmax.xlane.f32.xlu1 %v2934_v13  ;;  %v3074_v59 = vpop.f32.mrf.mxu3 }
0x13dd   :  { %v3088_v49 = vmul.f32 0.35355338, %v3074_v59 }
0x13de   :  { %v2912_v45 = vpop.f32.mrf.mxu0 }
0x13df   :  { %v5937_v34 = vadd.f32 %v5929_v31, %v3088_v49  ;;  %v2925_v5 = vmul.f32 0.35355338, %v2912_v45 }
0x13e1   :  { %v5939_v12 = vadd.f32 %v4682_v36, %v2925_v5  ;;  %v3098_v53 = vsel %vm493_vm8, %v5937_v34, -inf }
0x13e2   :  { %3099 = vmax.xlane.f32.xlu0 %v3098_v53 }
0x13e3   :  { %v2937_v29 = vsel %vm493_vm8, %v5939_v12, -inf }
0x13e4   :  { %2938 = vmax.xlane.f32.xlu2 %v2937_v29  ;;  %v3076_v24 = vpop.f32.mrf.mxu3 }
0x13e5   :  { %v3089_v9 = vmul.f32 0.35355338, %v3076_v24 }
0x13e6   :  { %v2915_v25 = vpop.f32.mrf.mxu0 }
0x13e7   :  { %v5945_v63 = vadd.f32 %v4682_v36, %v3089_v9  ;;  %v2926_v58 = vmul.f32 0.35355338, %v2915_v25 }
0x13e9   :  { %v5950_v26 = vadd.f32 %v5947_v11, %v2926_v58  ;;  %v3101_v6 = vsel %vm493_vm8, %v5945_v63, -inf }
0x13eb   :  { %v2940_v16 = vsel %vm493_vm8, %v5950_v26, -inf }
0x13ec   :  { %2941 = vmax.xlane.f32.xlu1 %v2940_v16  ;;  %3102 = vmax.xlane.f32.xlu2 %v3101_v6  ;;  %v3079_v46 = vpop.f32.mrf.mxu3 }
0x13ed   :  { %v3090_v33 = vmul.f32 0.35355338, %v3079_v46 }
0x13ee   :  { %v2917_v2 = vpop.f32.mrf.mxu0 }
0x13ef   :  { %v5957_v4 = vadd.f32 %v5947_v11, %v3090_v33  ;;  %v2927_v50 = vmul.f32 0.35355338, %v2917_v2 }
0x13f1   :  { %v5962_v55 = vadd.f32 %v5959_v54, %v2927_v50  ;;  %v3104_v17 = vsel %vm493_vm8, %v5957_v4, -inf }
0x13f2   :  { %3105 = vmax.xlane.f32.xlu0 %v3104_v17 }
0x13f3   :  { %v2943_v27 = vsel %vm493_vm8, %v5962_v55, -inf }
0x13f4   :  { %2944 = vmax.xlane.f32.xlu2 %v2943_v27  ;;  %v3081_v0 = vpop.f32.mrf.mxu3 }
0x13f5   :  { %v3091_v44 = vmul.f32 0.35355338, %v3081_v0 }
0x13f6   :  { %v2920_v1 = vpop.f32.mrf.mxu0 }
0x13f7   :  { %v5969_v43 = vadd.f32 %v5959_v54, %v3091_v44  ;;  %v2928_v30 = vmul.f32 0.35355338, %v2920_v1 }
0x13f9   :  { %v5974_v42 = vadd.f32 %v5971_v52, %v2928_v30  ;;  %v3107_v40 = vsel %vm493_vm8, %v5969_v43, -inf }
0x13fa   :  { %3108 = vmax.xlane.f32.xlu1 %v3107_v40 }
0x13fb   :  { %v2946_v60 = vsel %vm506_vm9, %v5974_v42, -inf }
0x13fc   :  { %2947 = vmax.xlane.f32.xlu2 %v2946_v60  ;;  %v3084_v41 = vpop.f32.mrf.mxu3 }
0x13fd   :  { %v3092_v19 = vmul.f32 0.35355338, %v3084_v41 }
0x13fe   :  { %v2922_v57 = vpop.f32.mrf.mxu0 }
0x13ff   :  { %v5981_v22 = vadd.f32 %v5971_v52, %v3092_v19 }
0x1401   :  { %v3110_v39 = vsel %vm506_vm9, %v5981_v22, -inf }
0x1402   :  { %3111 = vmax.xlane.f32.xlu0 %v3110_v39 }
0x1404   :  { %v3086_v35 = vpop.f32.mrf.mxu3 }
0x1406   :  { %v3246_v14 = vpop.f32.mrf.mxu0 }
0x1407   :  { %v3260_v20 = vmul.f32 0.35355338, %v3246_v14 }
0x1409   :  { %v5986_v3 = vadd.f32 %v5929_v31, %v3260_v20 }
0x140b   :  { %v3270_v56 = vsel %vm493_vm8, %v5986_v3, -inf }
0x140c   :  { %3271 = vmax.xlane.f32.xlu1 %v3270_v56  ;;  %v3415_v32 = vpop.f32.mrf.mxu3 }
0x140d   :  { %v3429_v51 = vmul.f32 0.35355338, %v3415_v32 }
0x140e   :  { %v3248_v21 = vpop.f32.mrf.mxu0 }
0x140f   :  { %v5991_v23 = vadd.f32 %v5929_v31, %v3429_v51  ;;  %v3261_v13 = vmul.f32 0.35355338, %v3248_v21 }
0x1411   :  { %v3439_v59 = vsel %vm493_vm8, %v5991_v23, -inf  ;;  %v5995_v45 = vadd.f32 %v4682_v36, %v3261_v13 }
0x1412   :  { %3440 = vmax.xlane.f32.xlu2 %v3439_v59 }
0x1413   :  { %v3273_v29 = vsel %vm493_vm8, %v5995_v45, -inf }
0x1414   :  { %v3417_v49 = vpop.f32.mrf.mxu3 }
0x1415   :  { %v3430_v5 = vmul.f32 0.35355338, %v3417_v49 }
0x1417   :  { %v5997_v53 = vadd.f32 %v4682_v36, %v3430_v5 }
0x1419   :  { %v3442_v24 = vsel %vm493_vm8, %v5997_v53, -inf }
0x141a   :  { %3274 = vmax.xlane.f32.xlu2 %v3273_v29  ;;  %3443 = vmax.xlane.f32.xlu0 %v3442_v24 }
0x144f   :  { %v2936_v31 = vpop.xlane.xlu1 %2935 }
0x1450   :  { %v2949_v9 = vsub.f32 %v5932_v47, %v2936_v31 }
0x1452   :  { %v2954_v25 = vmul.f32 1.442695, %v2949_v9 }
0x1454   :  { %4574 = vpow2.f32 %v2954_v25 }
0x1455   :  { %v3100_v58 = vpop.xlane.xlu0 %3099 }
0x1456   :  { %v3113_v16 = vsub.f32 %v5937_v34, %v3100_v58 }
0x1457   :  { %v2939_v6 = vpop.xlane.xlu2 %2938 }
0x1458   :  { %v3118_v46 = vmul.f32 1.442695, %v3113_v16  ;;  %v2950_v36 = vsub.f32 %v5939_v12, %v2939_v6 }
0x145a   :  { %v6006_v33 = vpop.eup %4574  ;;  %4576 = vpow2.f32 %v3118_v46  ;;  %v2956_v50 = vmul.f32 1.442695, %v2950_v36 }
0x145b   :  { %v2964_v2 = vsel %vm493_vm8, %v6006_v33, 0.0 }
0x145c   :  { %2965 = vadd.xlane.f32.xlu0 %v2964_v2  ;;  %4578 = vpow2.f32 %v2956_v50 }
0x145f   :  { %v3103_v17 = vpop.xlane.xlu2 %3102  ;;  %v2942_v47 = vpop.xlane.xlu1 %2941 }
0x1460   :  { %v6010_v27 = vpop.eup %4576  ;;  %v3114_v0 = vsub.f32 %v5945_v63, %v3103_v17  ;;  %v2951_v12 = vsub.f32 %v5950_v26, %v2942_v47 }
0x1461   :  { %v3128_v34 = vsel %vm493_vm8, %v6010_v27, 0.0 }
0x1462   :  { %v3120_v44 = vmul.f32 1.442695, %v3114_v0  ;;  %3129 = vadd.xlane.f32.xlu1 %v3128_v34  ;;  %v6016_v1 = vpop.eup %4578  ;;  %v2958_v30 = vmul.f32 1.442695, %v2951_v12 }
0x1463   :  { %v2967_v41 = vsel %vm493_vm8, %v6016_v1, 0.0 }
0x1464   :  { %4580 = vpow2.f32 %v3120_v44 }
0x1465   :  { %v3106_v60 = vpop.xlane.xlu0 %3105  ;;  %4582 = vpow2.f32 %v2958_v30 }
0x1466   :  { %v3115_v63 = vsub.f32 %v5957_v4, %v3106_v60 }
0x1467   :  { %v2945_v40 = vpop.xlane.xlu2 %2944 }
0x1468   :  { %v3122_v35 = vmul.f32 1.442695, %v3115_v63  ;;  %v2952_v21 = vsub.f32 %v5962_v55, %v2945_v40 }
0x146a   :  { %2968 = vadd.xlane.f32.xlu1 %v2967_v41  ;;  %v6020_v19 = vpop.eup %4580  ;;  %v2960_v13 = vmul.f32 1.442695, %v2952_v21 }
0x146b   :  { %v3131_v57 = vsel %vm493_vm8, %v6020_v19, 0.0  ;;  %v6027_v32 = vpop.eup %4582 }
0x146c   :  { %3132 = vadd.xlane.f32.xlu2 %v3131_v57  ;;  %v2970_v4 = vsel %vm493_vm8, %v6027_v32, 0.0 }
0x146d   :  { %v3109_v26 = vpop.xlane.xlu1 %3108 }
0x146e   :  { %v3116_v39 = vsub.f32 %v5969_v43, %v3109_v26 }
0x146f   :  { %v2948_v14 = vpop.xlane.xlu2 %2947 }
0x1470   :  { %v3124_v20 = vmul.f32 1.442695, %v3116_v39  ;;  %v2953_v56 = vsub.f32 %v5974_v42, %v2948_v14 }
0x1472   :  { %4584 = vpow2.f32 %v3124_v20  ;;  %v2962_v51 = vmul.f32 1.442695, %v2953_v56 }
0x1473   :  { %4586 = vpow2.f32 %v3122_v35 }
0x1474   :  { %4588 = vpow2.f32 %v2962_v51  ;;  %2971 = vadd.xlane.f32.xlu2 %v2970_v4 }
0x1475   :  { %v3112_v43 = vpop.xlane.xlu0 %3111  ;;  %4590 = vpow2.f32 %v2960_v13 }
0x1476   :  { %v3117_v55 = vsub.f32 %v5981_v22, %v3112_v43 }
0x1478   :  { %v6032_v59 = vpop.eup %4584  ;;  %v3126_v31 = vmul.f32 1.442695, %v3117_v55 }
0x1479   :  { %v6034_v49 = vpop.eup %4586  ;;  %v3137_v42 = vsel %vm493_vm8, %v6032_v59, 0.0 }
0x147a   :  { %v6038_v5 = vpop.eup %4588  ;;  %3138 = vadd.xlane.f32.xlu1 %v3137_v42  ;;  %v3134_v24 = vsel %vm493_vm8, %v6034_v49, 0.0  ;;  %4592 = vpow2.f32 %v3126_v31 }
0x147b   :  { %v2976_v29 = vsel %vm506_vm9, %v6038_v5, 0.0  ;;  %v6045_v25 = vpop.eup %4590 }
0x147c   :  { %2977 = vadd.xlane.f32.xlu0 %v2976_v29  ;;  %3135 = vadd.xlane.f32.xlu2 %v3134_v24  ;;  %v2973_v16 = vsel %vm493_vm8, %v6045_v25, 0.0 }
0x147f   :  { %v3272_v9 = vpop.xlane.xlu1 %3271 }
0x1480   :  { %v3285_v58 = vsub.f32 %v5986_v3, %v3272_v9  ;;  %v6050_v46 = vpop.eup %4592 }
0x1481   :  { %v3140_v2 = vsel %vm506_vm9, %v6050_v46, 0.0 }
0x1482   :  { %v3290_v6 = vmul.f32 1.442695, %v3285_v58 }
0x1484   :  { %2974 = vadd.xlane.f32.xlu2 %v2973_v16  ;;  %4594 = vpow2.f32 %v3290_v6 }
0x1485   :  { %v3441_v22 = vpop.xlane.xlu2 %3440 }
0x1486   :  { %v3454_v36 = vsub.f32 %v5991_v23, %v3441_v22 }
0x1488   :  { %v3459_v50 = vmul.f32 1.442695, %v3454_v36 }
0x148a   :  { %v6057_v3 = vpop.eup %4594  ;;  %4596 = vpow2.f32 %v3459_v50 }
0x148b   :  { %v3300_v23 = vsel %vm493_vm8, %v6057_v3, 0.0 }
0x148c   :  { %3141 = vadd.xlane.f32.xlu2 %v3140_v2 }
0x148d   :  { %v3275_v17 = vpop.xlane.xlu2 %3274 }
0x148e   :  { %v3286_v47 = vsub.f32 %v5995_v45, %v3275_v17  ;;  %v3444_v45 = vpop.xlane.xlu0 %3443 }
0x148f   :  { %v3455_v30 = vsub.f32 %v5997_v53, %v3444_v45 }
0x1490   :  { %3209 = vrot.lane.b32.xlu0 %v5844_v48, %s4747_s8  ;;  %v3292_v0 = vmul.f32 1.442695, %v3286_v47  ;;  %v6064_v34 = vpop.eup %4596 }
0x1491   :  { %v3469_v44 = vsel %vm493_vm8, %v6064_v34, 0.0  ;;  %v3461_v40 = vmul.f32 1.442695, %v3455_v30 }
0x1492   :  { %4598 = vpow2.f32 %v3292_v0 }
0x1493   :  { %3501 = vrot.lane.b32.xlu1 %v5852_v62, %s4752_s13  ;;  %4600 = vpow2.f32 %v3461_v40 }
0x1494   :  { %3301 = vadd.xlane.f32.xlu2 %v3300_v23 }
0x1498   :  { %v6070_v12 = vpop.eup %4598 }
0x1499   :  { %v3303_v62 = vsel %vm493_vm8, %v6070_v12, 0.0  ;;  %v6081_v60 = vpop.eup %4600 }
0x149b   :  { %3328 = vrot.lane.b32.xlu1 %v5865_v61, %s4739_s20 }
0x149c   :  { %3470 = vadd.xlane.f32.xlu2 %v3469_v44 }
0x14a3   :  { %3378 = vrot.lane.b32.xlu1 %v5844_v48, %s4751_s12  ;;  %v3472_v48 = vsel %vm493_vm8, %v6081_v60, 0.0 }
0x14a4   :  { %3304 = vadd.xlane.f32.xlu2 %v3303_v62 }
0x14ab   :  { %3499 = vrot.lane.b32.xlu1 %v5856_v18, %s4752_s13 }
0x14b3   :  { %3211 = vrot.lane.b32.xlu1 %v5858_v8, %s4747_s8 }
0x14ba   :  { %3473 = vadd.xlane.f32.xlu0 %v3472_v48 }
0x14bc   :  { %3497 = vrot.lane.b32.xlu2 %v5865_v61, %s4752_s13 }
0x14ce   :  { %3380 = vrot.lane.b32.xlu0 %v5858_v8, %s4751_s12 }
0x14cf   :  { %v2966_v41 = vpop.xlane.xlu0 %2965 }
0x14d0   :  { %4602 = vrcp.f32 %v2966_v41 }
0x14d5   :  { %v3130_v53 = vpop.xlane.xlu1 %3129 }
0x14d6   :  { %v4603_v57 = vpop.eup %4602 }
0x14d7   :  { %v2984_v35 = vmul.f32 %v4603_v57, %v6006_v33 }
0x14dd   :  { %v2969_v18 = vpop.xlane.xlu1 %2968 }
0x14de   :  { %4604 = vrcp.f32 %v2969_v18 }
0x14df   :  { %4606 = vrcp.f32 %v3130_v53  ;;  %v3133_v63 = vpop.xlane.xlu2 %3132 }
0x14e0   :  { %4608 = vrcp.f32 %v3133_v63 }
0x14e4   :  { %v4605_v26 = vpop.eup %4604 }
0x14e5   :  { %v4607_v39 = vpop.eup %4606  ;;  %v2985_v14 = vmul.f32 %v4605_v26, %v6016_v1 }
0x14e6   :  { %v4609_v20 = vpop.eup %4608  ;;  %v3148_v56 = vmul.f32 %v4607_v39, %v6010_v27 }
0x14e7   :  { %v2989_v61 = vpack.c.bf16 %v2985_v14, %v2984_v35  ;;  %v3149_v8 = vmul.f32 %v4609_v20, %v6020_v19  ;;  %v2972_v51 = vpop.xlane.xlu2 %2971 }
0x14e9   :  { %4172 = vmatmul.msk.bf16.vlgmr.msrb.gmra.mxu2 %vm493_vm8, %v2989_v61  ;;  %v3153_v21 = vpack.c.bf16 %v3149_v8, %v3148_v56 }
0x14eb   :  { %4178 = vmatmul.msk.bf16.vlgmr.msra.gmra.mxu1 %vm493_vm8, %v3153_v21 }
0x14ed   :  { %v3139_v4 = vpop.xlane.xlu1 %3138 }
0x14ee   :  { %4610 = vrcp.f32 %v3139_v4 }
0x14ef   :  { %v3136_v13 = vpop.xlane.xlu2 %3135  ;;  %v2978_v19 = vpop.xlane.xlu0 %2977 }
0x14f0   :  { %4612 = vrcp.f32 %v3136_v13 }
0x14f1   :  { %4614 = vrcp.f32 %v2972_v51 }
0x14f4   :  { %v4611_v43 = vpop.eup %4610 }
0x14f5   :  { %v3151_v1 = vmul.f32 %v4611_v43, %v6032_v59 }
0x14f6   :  { %v4613_v33 = vpop.eup %4612 }
0x14f7   :  { %v3150_v42 = vmul.f32 %v4613_v33, %v6034_v49  ;;  %v2975_v27 = vpop.xlane.xlu2 %2974  ;;  %v4615_v29 = vpop.eup %4614 }
0x14f8   :  { %4616 = vrcp.f32 %v2975_v27  ;;  %v2986_v31 = vmul.f32 %v4615_v29, %v6027_v32 }
0x14f9   :  { %v3154_v55 = vpack.c.bf16 %v3151_v1, %v3150_v42 }
0x14fb   :  { %4179 = vmatmul.msk.bf16.gmra.mxu1 %vm493_vm8, %v3154_v55 }
0x14fe   :  { %v4617_v24 = vpop.eup %4616 }
0x14ff   :  { %v2987_v9 = vmul.f32 %v4617_v24, %v6045_v25  ;;  %v3142_v58 = vpop.xlane.xlu2 %3141 }
0x1500   :  { %4618 = vrcp.f32 %v3142_v58 }
0x1501   :  { %v2990_v22 = vpack.c.bf16 %v2987_v9, %v2986_v31  ;;  %4620 = vrcp.f32 %v2978_v19 }
0x1502   :  { %v3210_v16 = vpop.permute.xlu0 %3209 }
0x1503   :  { %4182 = vmatmul.msk.bf16.gmra.mxu0 %vm68_vm1, %v3210_v16  ;;  %4173 = vmatmul.msk.bf16.gmra.mxu2 %vm493_vm8, %v2990_v22 }
0x1505   :  { %v3502_v59 = vpop.permute.xlu1 %3501 }
0x1506   :  { %v3515_v49 = vsel %vm565_vm7, %v3502_v59, 0  ;;  %v4619_v6 = vpop.eup %4618 }
0x1507   :  { %3522 = vmatpush.bf16.msrb.mxu1 %v3515_v49  ;;  %v3152_v36 = vmul.f32 %v4619_v6, %v6050_v46  ;;  %v3302_v2 = vpop.xlane.xlu2 %3301  ;;  %v4621_v50 = vpop.eup %4620 }
0x1508   :  { %v2988_v17 = vmul.f32 %v4621_v50, %v6038_v5  ;;  %4622 = vrcp.f32 %v3302_v2 }
0x1509   :  { %v3155_v32 = vpack.c.bf16 %v3152_v36, %v3152_v36 }
0x150a   :  { %v2991_v23 = vpack.c.bf16 %v2988_v17, %v2988_v17 }
0x150b   :  { %4180 = vmatmul.msk.bf16.gmra.mxu1 %vm493_vm8, %v3155_v32 }
0x150d   :  { %v3329_v25 = vpop.permute.xlu1 %3328 }
0x150e   :  { %3355 = vmatpush.bf16.msra.mxu2 %v3329_v25  ;;  %v4623_v46 = vpop.eup %4622 }
0x150f   :  { %v3471_v47 = vpop.xlane.xlu2 %3470  ;;  %v3320_v30 = vmul.f32 %v4623_v46, %v6057_v3 }
0x1513   :  { %4174 = vmatmul.msk.bf16.gmra.mxu2 %vm493_vm8, %v2991_v23  ;;  %v6137_v23 = vld [vmem:[#allocation4 + $0x6a] ss:$0 sm:$0xff] }
0x1515   :  { %v3379_v0 = vpop.permute.xlu1 %3378 }
0x1516   :  { %4188 = vmatmul.msk.bf16.gmra.mxu3 %vm68_vm1, %v3379_v0 }
0x1517   :  { %v3305_v44 = vpop.xlane.xlu2 %3304 }
0x1518   :  { %4624 = vrcp.f32 %v3305_v44 }
0x1519   :  { %4626 = vrcp.f32 %v3471_v47 }
0x151d   :  { %v3500_v62 = vpop.permute.xlu1 %3499 }
0x151e   :  { %3523 = vmatpush.bf16.msrb.mxu1 %v3500_v62  ;;  %v4625_v45 = vpop.eup %4624 }
0x151f   :  { %v3321_v40 = vmul.f32 %v4625_v45, %v6070_v12  ;;  %v3498_v5 = vpop.permute.xlu2 %3497  ;;  %v4627_v18 = vpop.eup %4626 }
0x1520   :  { %v3489_v57 = vmul.f32 %v4627_v18, %v6064_v34 }
0x1521   :  { %v3325_v48 = vpack.c.bf16 %v3321_v40, %v3320_v30 }
0x1522   :  { %3524 = vmatpush.bf16.msrb.mxu1 %v3498_v5 }
0x1523   :  { %4184 = vmatmul.msk.bf16.vlgmr.msra.gmra.mxu2 %vm493_vm8, %v3325_v48 }
0x1525   :  { %v3212_v53 = vpop.permute.xlu1 %3211 }
0x1526   :  { %4183 = vmatmul.msk.bf16.gmra.mxu0 %vm68_vm1, %v3212_v53 }
0x152d   :  { %v3474_v41 = vpop.xlane.xlu0 %3473 }
0x152e   :  { %4628 = vrcp.f32 %v3474_v41 }
0x1534   :  { %v4629_v63 = vpop.eup %4628 }
0x1535   :  { %v3490_v26 = vmul.f32 %v4629_v63, %v6081_v60 }
0x1537   :  { %v3494_v3 = vpack.c.bf16 %v3490_v26, %v3489_v57 }
0x1539   :  { %4190 = vmatmul.msk.bf16.vlgmr.msrb.gmra.mxu1 %vm493_vm8, %v3494_v3 }
0x1540   :  { %v3381_v12 = vpop.permute.xlu0 %3380 }
0x1541   :  { %4189 = vmatmul.msk.bf16.gmra.mxu3 %vm68_vm1, %v3381_v12 }
0x1568   :  { %v3188_v39 = vpop.f32.mrf.mxu1 }
0x156c   :  { %v3016_v14 = vpop.f32.mrf.mxu2 }
0x1570   :  { %v3190_v35 = vpop.f32.mrf.mxu1 }
0x1574   :  { %v3018_v61 = vpop.f32.mrf.mxu2 }
0x1575   :  { %v3031_v0 = vadd.f32 %v3018_v61, %v5774_v37 }
0x1577   :  { %v3203_v45 = vadd.f32 %v3190_v35, %v3031_v0 }
0x1578   :  { %v3193_v20 = vpop.f32.mrf.mxu1 }
0x1580   :  { %v3251_v56 = vpop.f32.mrf.mxu0  ;;  %v3195_v8 = vpop.f32.mrf.mxu1 }
0x1581   :  { %v3262_v51 = vmul.f32 0.35355338, %v3251_v56 }
0x1583   :  { %v6117_v21 = vadd.f32 %v5947_v11, %v3262_v51 }
0x1585   :  { %v3276_v34 = vsel %vm493_vm8, %v6117_v21, -inf }
0x1586   :  { %3277 = vmax.xlane.f32.xlu1 %v3276_v34  ;;  %v3021_v60 = vpop.f32.mrf.mxu2 }
0x1587   :  { %v3032_v4 = vadd.f32 %v3021_v60, %v5779_v15 }
0x1588   :  { %v3253_v13 = vpop.f32.mrf.mxu0  ;;  %v3198_v43 = vpop.f32.mrf.mxu1 }
0x1589   :  { %v3263_v33 = vmul.f32 0.35355338, %v3253_v13  ;;  %v6122_v1 = vadd.f32 %v3193_v20, %v3032_v4 }
0x158b   :  { %v3268_v42 = vadd.f32 %v5959_v54, %v3263_v33 }
0x158d   :  { %v3279_v27 = vsel %vm493_vm8, %v3268_v42, -inf }
0x158e   :  { %3280 = vmax.xlane.f32.xlu2 %v3279_v27  ;;  %v3023_v19 = vpop.f32.mrf.mxu2 }
0x158f   :  { %v3033_v55 = vadd.f32 %v3023_v19, %v5784_v10 }
0x1590   :  { %v3200_v29 = vpop.f32.mrf.mxu1 }
0x1591   :  { %v6127_v24 = vadd.f32 %v3195_v8, %v3033_v55 }
0x1596   :  { %v3026_v31 = vpop.f32.mrf.mxu2 }
0x1597   :  { %v3034_v9 = vadd.f32 %v3026_v31, %v5789_v38  ;;  %v3030_v38 = vadd.f32 %v3016_v14, %v5769_v28 }
0x1599   :  { %v3420_v15 = vpop.f32.mrf.mxu3  ;;  %v6130_v16 = vadd.f32 %v3198_v43, %v3034_v9  ;;  %v3202_v17 = vadd.f32 %v3188_v39, %v3030_v38 }
0x159a   :  { %v3431_v58 = vmul.f32 0.35355338, %v3420_v15 }
0x159c   :  { %v3436_v22 = vadd.f32 %v5947_v11, %v3431_v58 }
0x159e   :  { %v3445_v59 = vsel %vm493_vm8, %v3436_v22, -inf  ;;  %v3028_v49 = vpop.f32.mrf.mxu2 }
0x159f   :  { %3446 = vmax.xlane.f32.xlu0 %v3445_v59 }
0x15a1   :  { %v3422_v6 = vpop.f32.mrf.mxu3 }
0x15a2   :  { %v3432_v36 = vmul.f32 0.35355338, %v3422_v6 }
0x15a3   :  { %v3256_v2 = vpop.f32.mrf.mxu0 }
0x15a4   :  { %v3437_v10 = vadd.f32 %v5959_v54, %v3432_v36  ;;  %v3264_v54 = vmul.f32 0.35355338, %v3256_v2 }
0x15a6   :  { %v3448_v32 = vsel %vm493_vm8, %v3437_v10, -inf  ;;  %v3357_v25 = vpop.f32.mrf.mxu2  ;;  %v3269_v5 = vadd.f32 %v5971_v52, %v3264_v54 }
0x15a7   :  { %3449 = vmax.xlane.f32.xlu1 %v3448_v32  ;;  %v3371_v47 = vadd.f32 %v3357_v25, %v3202_v17 }
0x15a8   :  { %v3282_v37 = vsel %vm506_vm9, %v3269_v5, -inf }
0x15ab   :  { %v3258_v50 = vpop.f32.mrf.mxu0 }
0x15ae   :  { %v3359_v62 = vpop.f32.mrf.mxu2 }
0x15af   :  { %v3372_v28 = vadd.f32 %v3359_v62, %v3203_v45 }
0x15b6   :  { %v3526_v11 = vpop.f32.mrf.mxu1 }
0x15b7   :  { %v3540_v44 = vadd.f32 %v3526_v11, %v3371_v47 }
0x15b9   :  { %v6141_v46 = vadd.f32 %v6137_v23, %v3540_v44 }
0x15bb   :  { %v3554_v30 = vsel %vm209_vm2, %v6141_v46, 0.0 }
0x15bc   :  { %3555 = vadd.xlane.f32.xlu1 %v3554_v30 }
0x15be   :  { %v3528_v40 = vpop.f32.mrf.mxu1 }
0x15bf   :  { %v3541_v48 = vadd.f32 %v3528_v40, %v3372_v28  ;;  %v4286_v40 = vld [vmem:[#allocation2 + $0x14c] sm:$0xff] }
0x15c0   :  { %3712 = vmatpush.bf16.msrb.mxu0 %v4286_v40 }
0x15c1   :  { %v3548_v53 = vadd.f32 %v6137_v23, %v3541_v48 }
0x15c3   :  { %v3557_v41 = vsel %vm209_vm2, %v3548_v53, 0.0 }
0x15c4   :  { %v3425_v18 = vpop.f32.mrf.mxu3  ;;  %3283 = vmax.xlane.f32.xlu1 %v3282_v37  ;;  %3558 = vadd.xlane.f32.xlu2 %v3557_v41  ;;  %v4285_v37 = vld [vmem:[#allocation2 + $0x144] sm:$0xff] }
0x15c5   :  { %v3433_v63 = vmul.f32 0.35355338, %v3425_v18  ;;  %3713 = vmatpush.bf16.msrb.mxu0 %v4285_v37 }
0x15c7   :  { %v3438_v57 = vadd.f32 %v5971_v52, %v3433_v63 }
0x15c9   :  { %v3451_v26 = vsel %vm506_vm9, %v3438_v57, -inf }
0x15cc   :  { %v3427_v3 = vpop.f32.mrf.mxu3  ;;  %3452 = vmax.xlane.f32.xlu2 %v3451_v26 }
0x15f9   :  { %v3278_v12 = vpop.xlane.xlu1 %3277 }
0x15fa   :  { %v3287_v39 = vsub.f32 %v6117_v21, %v3278_v12 }
0x15fc   :  { %v3294_v35 = vmul.f32 1.442695, %v3287_v39 }
0x15fe   :  { %4630 = vpow2.f32 %v3294_v35 }
0x1601   :  { %v3281_v14 = vpop.xlane.xlu2 %3280 }
0x1602   :  { %v3288_v20 = vsub.f32 %v3268_v42, %v3281_v14 }
0x1604   :  { %v4631_v61 = vpop.eup %4630  ;;  %v3296_v56 = vmul.f32 1.442695, %v3288_v20 }
0x1605   :  { %v3306_v8 = vsel %vm493_vm8, %v4631_v61, 0.0 }
0x1606   :  { %4632 = vpow2.f32 %v3296_v56  ;;  %3307 = vadd.xlane.f32.xlu0 %v3306_v8 }
0x160c   :  { %v4633_v51 = vpop.eup %4632 }
0x160d   :  { %v3309_v52 = vsel %vm493_vm8, %v4633_v51, 0.0 }
0x160e   :  { %3310 = vadd.xlane.f32.xlu1 %v3309_v52 }
0x1612   :  { %v3447_v34 = vpop.xlane.xlu0 %3446 }
0x1613   :  { %v3456_v60 = vsub.f32 %v3436_v22, %v3447_v34 }
0x1615   :  { %v3463_v4 = vmul.f32 1.442695, %v3456_v60 }
0x1617   :  { %4634 = vpow2.f32 %v3463_v4 }
0x161a   :  { %v3450_v43 = vpop.xlane.xlu1 %3449 }
0x161b   :  { %v3457_v33 = vsub.f32 %v3437_v10, %v3450_v43 }
0x161d   :  { %v6154_v13 = vpop.eup %4634  ;;  %v3465_v19 = vmul.f32 1.442695, %v3457_v33 }
0x161e   :  { %v3475_v21 = vsel %vm493_vm8, %v6154_v13, 0.0 }
0x161f   :  { %3476 = vadd.xlane.f32.xlu1 %v3475_v21  ;;  %4636 = vpow2.f32 %v3465_v19 }
0x1625   :  { %v4637_v6 = vpop.eup %4636 }
0x1626   :  { %v3478_v2 = vsel %vm493_vm8, %v4637_v6, 0.0 }
0x162f   :  { %v3556_v42 = vpop.xlane.xlu1 %3555 }
0x1630   :  { %v3569_v27 = vmul.f32 %v3556_v42, %v4819_v7 }
0x1632   :  { %v6160_v55 = vsub.f32 %v6141_v46, %v3569_v27 }
0x1634   :  { %v3579_v29 = vmul.f32 %v6160_v55, %v6160_v55 }
0x1636   :  { %v3584_v31 = vsel %vm209_vm2, %v3579_v29, 0.0 }
0x1637   :  { %v3284_v9 = vpop.xlane.xlu1 %3283  ;;  %3585 = vadd.xlane.f32.xlu2 %v3584_v31  ;;  %v3559_v15 = vpop.xlane.xlu2 %3558  ;;  %v6182_v31 = vld [vmem:[#allocation4 + $0x6b] ss:$0 sm:$0xff] }
0x1638   :  { %v3289_v58 = vsub.f32 %v3269_v5, %v3284_v9  ;;  %v3570_v22 = vmul.f32 %v3559_v15, %v4819_v7 }
0x163a   :  { %v3298_v59 = vmul.f32 1.442695, %v3289_v58  ;;  %v6166_v49 = vsub.f32 %v3548_v53, %v3570_v22 }
0x163c   :  { %v3580_v36 = vmul.f32 %v6166_v49, %v6166_v49  ;;  %4638 = vpow2.f32 %v3298_v59 }
0x163e   :  { %v3587_v10 = vsel %vm209_vm2, %v3580_v36, 0.0 }
0x163f   :  { %3479 = vadd.xlane.f32.xlu2 %v3478_v2  ;;  %3588 = vadd.xlane.f32.xlu0 %v3587_v10  ;;  %v3453_v32 = vpop.xlane.xlu2 %3452 }
0x1640   :  { %v3458_v50 = vsub.f32 %v3438_v57, %v3453_v32 }
0x1642   :  { %v3467_v38 = vmul.f32 1.442695, %v3458_v50  ;;  %v4639_v25 = vpop.eup %4638 }
0x1643   :  { %v3312_v17 = vsel %vm506_vm9, %v4639_v25, 0.0 }
0x1644   :  { %4640 = vpow2.f32 %v3467_v38 }
0x1647   :  { %3313 = vadd.xlane.f32.xlu0 %v3312_v17  ;;  %v4293_v17 = vld [vmem:[#allocation2 + $0x184] sm:$0xff] }
0x164a   :  { %v6173_v47 = vpop.eup %4640 }
0x164b   :  { %v3481_v11 = vsel %vm506_vm9, %v6173_v47, 0.0 }
0x164c   :  { %3482 = vadd.xlane.f32.xlu1 %v3481_v11  ;;  %v4292_v11 = vld [vmem:[#allocation2 + $0x17c] sm:$0xff] }
0x1679   :  { %v3308_v0 = vpop.xlane.xlu0 %3307 }
0x167a   :  { %4642 = vrcp.f32 %v3308_v0 }
0x1680   :  { %v4643_v62 = vpop.eup %4642 }
0x1681   :  { %v3311_v44 = vpop.xlane.xlu1 %3310  ;;  %v3322_v45 = vmul.f32 %v4643_v62, %v4631_v61  ;;  %v4291_v62 = vld [vmem:[#allocation2 + $0x174] sm:$0xff] }
0x1682   :  { %4644 = vrcp.f32 %v3311_v44 }
0x1688   :  { %v4645_v54 = vpop.eup %4644 }
0x1689   :  { %v3323_v30 = vmul.f32 %v4645_v54, %v4633_v51 }
0x168b   :  { %v3326_v28 = vpack.c.bf16 %v3323_v30, %v3322_v45 }
0x168d   :  { %4185 = vmatmul.msk.bf16.gmra.mxu2 %vm493_vm8, %v3326_v28  ;;  %v4290_v28 = vld [vmem:[#allocation2 + $0x16c] sm:$0xff] }
0x1692   :  { %v3477_v41 = vpop.xlane.xlu1 %3476 }
0x16aa   :  { %v3586_v5 = vpop.xlane.xlu2 %3585 }
0x16ab   :  { %v3599_v48 = vmul.f32 %v3586_v5, %v4819_v7 }
0x16ad   :  { %v3604_v53 = vadd.f32 1e-05, %v3599_v48 }
0x16af   :  { %4646 = vrsqrt.f32 %v3604_v53  ;;  %vm3615_vm7 = vweird.f32 %v3604_v53 }
0x16b0   :  { %4648 = vrcp.f32 %v3477_v41  ;;  %v4288_v41 = vld [vmem:[#allocation2 + $0x15c] sm:$0xff] }
0x16b2   :  { %v3589_v18 = vpop.xlane.xlu0 %3588  ;;  %v3480_v63 = vpop.xlane.xlu2 %3479 }
0x16b3   :  { %v3600_v57 = vmul.f32 %v3589_v18, %v4819_v7  ;;  %4650 = vrcp.f32 %v3480_v63 }
0x16b5   :  { %v4647_v26 = vpop.eup %4646  ;;  %v3605_v3 = vadd.f32 1e-05, %v3600_v57  ;;  %v4287_v57 = vld [vmem:[#allocation2 + $0x154] sm:$0xff] }
0x16b6   :  { %v3610_v12 = vmul.f32 %v4647_v26, %v3604_v53  ;;  %v4649_v39 = vpop.eup %4648  ;;  %vm3616_vm1 = vweird.f32 %v4647_v26  ;;  %v4289_v53 = vld [vmem:[#allocation2 + $0x164] sm:$0xff] }
0x16b7   :  { %4652 = vrsqrt.f32 %v3605_v3  ;;  %v3491_v20 = vmul.f32 %v4649_v39, %v6154_v13  ;;  %vm3617_vm9 = vmor %vm3615_vm7, %vm3616_vm1  ;;  %vm3625_vm11 = vweird.f32 %v3605_v3 }
0x16b8   :  { %v3611_v35 = vmul.f32 %v4647_v26, %v3610_v12 }
0x16b9   :  { %v4651_v14 = vpop.eup %4650 }
0x16ba   :  { %v3612_v61 = vmul.f32 0.5, %v3611_v35  ;;  %v3492_v56 = vmul.f32 %v4651_v14, %v4637_v6  ;;  %v3314_v8 = vpop.xlane.xlu0 %3313  ;;  %v6187_v6 = vld [vmem:[#allocation4 + $0x6c] ss:$0 sm:$0xff] }
0x16bb   :  { %4654 = vrcp.f32 %v3314_v8 }
0x16bc   :  { %v3613_v51 = vsub.f32 1.5, %v3612_v61  ;;  %v3495_v52 = vpack.c.bf16 %v3492_v56, %v3491_v20 }
0x16bd   :  { %v4653_v34 = vpop.eup %4652 }
0x16be   :  { %v3614_v60 = vmul.f32 %v4647_v26, %v3613_v51  ;;  %v3620_v4 = vmul.f32 %v4653_v34, %v3605_v3  ;;  %4191 = vmatmul.msk.bf16.gmra.mxu1 %vm493_vm8, %v3495_v52  ;;  %vm3626_vm10 = vweird.f32 %v4653_v34  ;;  %v6203_v3 = vld [vmem:[#allocation4 + $0x6d] ss:$0 sm:$0xff] }
0x16bf   :  { %v3483_v21 = vpop.xlane.xlu1 %3482  ;;  %vm3627_vm12 = vmor %vm3625_vm11, %vm3626_vm10 }
0x16c0   :  { %v3621_v43 = vmul.f32 %v4653_v34, %v3620_v4  ;;  %4656 = vrcp.f32 %v3483_v21  ;;  %v3618_v42 = vsel %vm3617_vm9, %v4647_v26, %v3614_v60 }
0x16c1   :  { %v4655_v33 = vpop.eup %4654  ;;  %v3659_v9 = vmul.f32 %v3618_v42, %v6160_v55 }
0x16c2   :  { %v3622_v13 = vmul.f32 0.5, %v3621_v43  ;;  %v3324_v27 = vmul.f32 %v4655_v33, %v4639_v25  ;;  %v4294_v25 = vld [vmem:[#allocation2 + $0x18c] sm:$0xff] }
0x16c3   :  { %v3665_v36 = vmul.f32 %v6182_v31, %v3659_v9  ;;  %3841 = vmatpush.bf16.msrb.mxu2 %v4294_v25 }
0x16c4   :  { %v3623_v19 = vsub.f32 1.5, %v3622_v13  ;;  %v3327_v29 = vpack.c.bf16 %v3324_v27, %v3324_v27 }
0x16c5   :  { %v3671_v55 = vadd.f32 %v6187_v6, %v3665_v36 }
0x16c6   :  { %v4657_v15 = vpop.eup %4656  ;;  %v3624_v58 = vmul.f32 %v4653_v34, %v3623_v19  ;;  %4186 = vmatmul.msk.bf16.gmra.mxu2 %vm493_vm8, %v3327_v29 }
0x16c7   :  { %v3493_v59 = vmul.f32 %v4657_v15, %v6173_v47  ;;  %3842 = vmatpush.bf16.msrb.mxu2 %v4293_v17 }
0x16c8   :  { %v3628_v22 = vsel %vm3627_vm12, %v4653_v34, %v3624_v58 }
0x16c9   :  { %v3660_v2 = vmul.f32 %v3628_v22, %v6166_v49  ;;  %v3496_v32 = vpack.c.bf16 %v3493_v59, %v3493_v59 }
0x16cb   :  { %v3666_v10 = vmul.f32 %v6182_v31, %v3660_v2  ;;  %3843 = vmatpush.bf16.msrb.mxu2 %v4292_v11 }
0x16cd   :  { %v3672_v50 = vadd.f32 %v6187_v6, %v3666_v10 }
0x16ce   :  { %4192 = vmatmul.msk.bf16.gmra.mxu1 %vm493_vm8, %v3496_v32 }
0x16cf   :  { %v3676_v38 = vpack.c.bf16 %v3672_v50, %v3671_v55  ;;  %3844 = vmatpush.bf16.msrb.mxu2 %v4291_v62  ;;  %v4338_v62 = vld [vmem:[#allocation4 + $0x6e] ss:$0 sm:$0xff] }
0x16d1   :  { %4201 = vmatmul.msk.bf16.vlgmr.msrb.gmra.mxu0 %vm209_vm2, %v3676_v38 }
0x16d3   :  { %3845 = vmatpush.bf16.msrb.mxu2 %v4290_v28 }
0x16d7   :  { %3846 = vmatpush.bf16.msrb.mxu2 %v4289_v53 }
0x16db   :  { %3847 = vmatpush.bf16.msrb.mxu2 %v4288_v41 }
0x16df   :  { %3848 = vmatpush.bf16.msrb.mxu2 %v4287_v57 }
0x1710   :  { %v3362_v47 = vpop.f32.mrf.mxu2 }
0x1711   :  { %v3373_v49 = vadd.f32 %v3362_v47, %v6122_v1 }
0x1718   :  { %v3364_v45 = vpop.f32.mrf.mxu2 }
0x1719   :  { %v3374_v40 = vadd.f32 %v3364_v45, %v6127_v24 }
0x173b   :  { %v3531_v0 = vpop.f32.mrf.mxu1 }
0x173c   :  { %v3542_v44 = vadd.f32 %v3531_v0, %v3373_v49 }
0x173e   :  { %v3549_v54 = vadd.f32 %v6137_v23, %v3542_v44 }
0x1740   :  { %v3560_v30 = vsel %vm209_vm2, %v3549_v54, 0.0 }
0x1741   :  { %3561 = vadd.xlane.f32.xlu2 %v3560_v30 }
0x1743   :  { %v3533_v5 = vpop.f32.mrf.mxu1 }
0x1744   :  { %v3543_v48 = vadd.f32 %v3533_v5, %v3374_v40 }
0x1746   :  { %v3550_v1 = vadd.f32 %v6137_v23, %v3543_v48 }
0x1748   :  { %v3563_v37 = vsel %vm209_vm2, %v3550_v1, 0.0 }
0x1749   :  { %3564 = vadd.xlane.f32.xlu0 %v3563_v37  ;;  %v3367_v18 = vpop.f32.mrf.mxu2 }
0x174a   :  { %v3375_v63 = vadd.f32 %v3367_v18, %v6130_v16 }
0x174b   :  { %v3536_v26 = vpop.f32.mrf.mxu1 }
0x174c   :  { %v3544_v24 = vadd.f32 %v3536_v26, %v3375_v63 }
0x174e   :  { %v3551_v12 = vadd.f32 %v6137_v23, %v3544_v24  ;;  %v3715_v39 = vpop.f32.mrf.mxu0 }
0x174f   :  { %v3716_v35 = vadd.f32 %v6203_v3, %v3715_v39 }
0x1750   :  { %v3566_v14 = vsel %vm222_vm3, %v3551_v12, 0.0 }
0x1751   :  { %v3734_v20 = vmul.f32 0.044715, %v3716_v35  ;;  %3567 = vadd.xlane.f32.xlu1 %v3566_v14  ;;  %v3369_v61 = vpop.f32.mrf.mxu2  ;;  %v3729_v19 = vmul.f32 0.5, %v3716_v35 }
0x1753   :  { %v3739_v56 = vmul.f32 %v3734_v20, %v3716_v35  ;;  %v3538_v8 = vpop.f32.mrf.mxu1 }
0x1755   :  { %v3744_v16 = vmul.f32 %v3739_v56, %v3716_v35 }
0x1756   :  { %v3717_v51 = vpop.f32.mrf.mxu0 }
0x1757   :  { %v3749_v52 = vadd.f32 %v3744_v16, %v3716_v35  ;;  %v3718_v34 = vadd.f32 %v6203_v3, %v3717_v51 }
0x1759   :  { %v3735_v60 = vmul.f32 0.044715, %v3718_v34  ;;  %v3754_v4 = vmul.f32 0.7978846, %v3749_v52  ;;  %v3730_v29 = vmul.f32 0.5, %v3718_v34 }
0x175b   :  { %v3740_v21 = vmul.f32 %v3735_v60, %v3718_v34  ;;  %4658 = vtanh.f32 %v3754_v4 }
0x175d   :  { %v3745_v23 = vmul.f32 %v3740_v21, %v3718_v34 }
0x175f   :  { %v3750_v43 = vadd.f32 %v3745_v23, %v3718_v34 }
0x1761   :  { %v3755_v33 = vmul.f32 0.7978846, %v3750_v43  ;;  %v4659_v42 = vpop.eup %4658 }
0x1762   :  { %v3764_v13 = vadd.f32 1.0, %v4659_v42 }
0x1763   :  { %4660 = vtanh.f32 %v3755_v33 }
0x1764   :  { %v3769_v15 = vmul.f32 %v3764_v13, %v3729_v19 }
0x1769   :  { %v4661_v27 = vpop.eup %4660 }
0x176a   :  { %v3765_v9 = vadd.f32 1.0, %v4661_v27 }
0x176c   :  { %v3770_v58 = vmul.f32 %v3765_v9, %v3730_v29 }
0x176e   :  { %v3774_v22 = vpack.c.bf16 %v3770_v58, %v3769_v15 }
0x1770   :  { %3849 = vmatmul.bf16.vlgmr.msrb.gmra.mxu2 %v3774_v22 }
0x17b4   :  { %v3562_v59 = vpop.xlane.xlu2 %3561 }
0x17b5   :  { %v3571_v36 = vmul.f32 %v3562_v59, %v4819_v7 }
0x17b7   :  { %v3576_v2 = vsub.f32 %v3549_v54, %v3571_v36 }
0x17b9   :  { %v3581_v10 = vmul.f32 %v3576_v2, %v3576_v2 }
0x17bb   :  { %v3590_v32 = vsel %vm209_vm2, %v3581_v10, 0.0 }
0x17bc   :  { %3591 = vadd.xlane.f32.xlu2 %v3590_v32  ;;  %v3565_v55 = vpop.xlane.xlu0 %3564 }
0x17bd   :  { %v3572_v50 = vmul.f32 %v3565_v55, %v4819_v7 }
0x17bf   :  { %v3577_v38 = vsub.f32 %v3550_v1, %v3572_v50 }
0x17c1   :  { %v3582_v25 = vmul.f32 %v3577_v38, %v3577_v38 }
0x17c3   :  { %v3593_v17 = vsel %vm209_vm2, %v3582_v25, 0.0 }
0x17c4   :  { %3594 = vadd.xlane.f32.xlu0 %v3593_v17  ;;  %v3568_v47 = vpop.xlane.xlu1 %3567 }
0x17c5   :  { %v3573_v11 = vmul.f32 %v3568_v47, %v4819_v7 }
0x17c7   :  { %v3578_v49 = vsub.f32 %v3551_v12, %v3573_v11 }
0x17c9   :  { %v3583_v0 = vmul.f32 %v3578_v49, %v3578_v49 }
0x17cb   :  { %v3596_v44 = vsel %vm222_vm3, %v3583_v0, 0.0 }
0x17cc   :  { %3597 = vadd.xlane.f32.xlu1 %v3596_v44  ;;  %v4296_v44 = vld [vmem:[#allocation2 + $0x19c] sm:$0xff] }
0x17cd   :  { %3920 = vmatpush.bf16.msra.mxu3 %v4296_v44 }
0x17f3   :  { %v3850_v54 = vpop.f32.mrf.mxu2 }
0x17f4   :  { %v3860_v45 = vadd.f32 %v3850_v54, %v6141_v46 }
0x17f6   :  { %v3863_v30 = vadd.f32 %v4338_v62, %v3860_v45 }
0x17f8   :  { %v3866_v28 = vsel %vm209_vm2, %v3863_v30, 0.0 }
0x17f9   :  { %3867 = vadd.xlane.f32.xlu2 %v3866_v28 }
0x17fb   :  { %v3852_v40 = vpop.f32.mrf.mxu2 }
0x182f   :  { %v3592_v5 = vpop.xlane.xlu2 %3591 }
0x1830   :  { %v3601_v48 = vmul.f32 %v3592_v5, %v4819_v7 }
0x1832   :  { %v3606_v53 = vadd.f32 1e-05, %v3601_v48 }
0x1834   :  { %4662 = vrsqrt.f32 %v3606_v53  ;;  %vm3635_vm8 = vweird.f32 %v3606_v53 }
0x1837   :  { %v3595_v1 = vpop.xlane.xlu0 %3594 }
0x1838   :  { %v3602_v37 = vmul.f32 %v3595_v1, %v4819_v7 }
0x183a   :  { %v4663_v41 = vpop.eup %4662  ;;  %v3607_v18 = vadd.f32 1e-05, %v3602_v37 }
0x183b   :  { %v3630_v63 = vmul.f32 %v4663_v41, %v3606_v53  ;;  %vm3636_vm3 = vweird.f32 %v4663_v41 }
0x183c   :  { %4664 = vrsqrt.f32 %v3607_v18  ;;  %vm3637_vm13 = vmor %vm3635_vm8, %vm3636_vm3  ;;  %vm3645_vm15 = vweird.f32 %v3607_v18 }
0x183d   :  { %v3631_v57 = vmul.f32 %v4663_v41, %v3630_v63 }
0x183f   :  { %v3632_v26 = vmul.f32 0.5, %v3631_v57  ;;  %v3598_v46 = vpop.xlane.xlu1 %3597 }
0x1840   :  { %v3603_v24 = vmul.f32 %v3598_v46, %v4819_v7 }
0x1841   :  { %v3633_v12 = vsub.f32 1.5, %v3632_v26 }
0x1842   :  { %v4665_v39 = vpop.eup %4664  ;;  %v3608_v35 = vadd.f32 1e-05, %v3603_v24 }
0x1843   :  { %v3634_v14 = vmul.f32 %v4663_v41, %v3633_v12  ;;  %v3640_v20 = vmul.f32 %v4665_v39, %v3607_v18  ;;  %vm3646_vm14 = vweird.f32 %v4665_v39 }
0x1844   :  { %4666 = vrsqrt.f32 %v3608_v35  ;;  %vm3647_vm0 = vmor %vm3645_vm15, %vm3646_vm14  ;;  %vm3655_vm5 = vweird.f32 %v3608_v35 }
0x1845   :  { %v3641_v61 = vmul.f32 %v4665_v39, %v3640_v20  ;;  %v3638_v56 = vsel %vm3637_vm13, %v4663_v41, %v3634_v14 }
0x1846   :  { %v3661_v52 = vmul.f32 %v3638_v56, %v3576_v2 }
0x1847   :  { %v3642_v8 = vmul.f32 0.5, %v3641_v61 }
0x1848   :  { %v3667_v43 = vmul.f32 %v6182_v31, %v3661_v52 }
0x1849   :  { %v3643_v16 = vsub.f32 1.5, %v3642_v8 }
0x184a   :  { %v4667_v51 = vpop.eup %4666  ;;  %v3673_v27 = vadd.f32 %v6187_v6, %v3667_v43 }
0x184b   :  { %v3644_v34 = vmul.f32 %v4665_v39, %v3643_v16  ;;  %v3650_v60 = vmul.f32 %v4667_v51, %v3608_v35  ;;  %vm3656_vm4 = vweird.f32 %v4667_v51 }
0x184c   :  { %vm3657_vm6 = vmor %vm3655_vm5, %vm3656_vm4 }
0x184d   :  { %v3648_v4 = vsel %vm3647_vm0, %v4665_v39, %v3644_v34  ;;  %v3651_v21 = vmul.f32 %v4667_v51, %v3650_v60 }
0x184e   :  { %v3662_v23 = vmul.f32 %v3648_v4, %v3577_v38 }
0x184f   :  { %v3652_v33 = vmul.f32 0.5, %v3651_v21  ;;  %v4339_v21 = vld [vmem:[#allocation4 + $0x52] ss:$0 sm:$0xff] }
0x1850   :  { %v3668_v42 = vmul.f32 %v6182_v31, %v3662_v23 }
0x1851   :  { %v3653_v13 = vsub.f32 1.5, %v3652_v33  ;;  %v4340_v33 = vld [vmem:[#allocation4 + $0x53] ss:$0 sm:$0xff] }
0x1852   :  { %v3674_v19 = vadd.f32 %v6187_v6, %v3668_v42 }
0x1853   :  { %v3654_v29 = vmul.f32 %v4667_v51, %v3653_v13 }
0x1854   :  { %v3677_v9 = vpack.c.bf16 %v3674_v19, %v3673_v27 }
0x1855   :  { %v3658_v15 = vsel %vm3657_vm6, %v4667_v51, %v3654_v29 }
0x1856   :  { %4202 = vmatmul.msk.bf16.gmra.mxu0 %vm209_vm2, %v3677_v9  ;;  %v3663_v58 = vmul.f32 %v3658_v15, %v3578_v49 }
0x1858   :  { %v3669_v22 = vmul.f32 %v6182_v31, %v3663_v58 }
0x185a   :  { %v3675_v59 = vadd.f32 %v6187_v6, %v3669_v22  ;;  %v4341_v22 = vld [vmem:[#allocation4 + $0x54] ss:$0 sm:$0xff] }
0x185c   :  { %v3678_v36 = vpack.c.bf16 %v3675_v59, %v3675_v59 }
0x1866   :  { %4203 = vmatmul.msk.bf16.gmra.mxu0 %vm209_vm2, %v3678_v36 }
0x186c   :  { %v3868_v2 = vpop.xlane.xlu2 %3867 }
0x186d   :  { %v3869_v10 = vmul.f32 %v3868_v2, %v4819_v7 }
0x186f   :  { %v3870_v32 = vsub.f32 %v3863_v30, %v3869_v10  ;;  %v4295_v30 = vld [vmem:[#allocation2 + $0x194] sm:$0xff] }
0x1870   :  { %3921 = vmatpush.bf16.msra.mxu3 %v4295_v30 }
0x1871   :  { %v3871_v55 = vmul.f32 %v3870_v32, %v3870_v32 }
0x1873   :  { %v3872_v50 = vsel %vm209_vm2, %v3871_v55, 0.0 }
0x1874   :  { %3873 = vadd.xlane.f32.xlu0 %v3872_v50 }
0x18d3   :  { %v3720_v38 = vpop.f32.mrf.mxu0 }
0x18d4   :  { %v3721_v25 = vadd.f32 %v6203_v3, %v3720_v38 }
0x18d6   :  { %v3736_v17 = vmul.f32 0.044715, %v3721_v25 }
0x18d8   :  { %v3741_v47 = vmul.f32 %v3736_v17, %v3721_v25 }
0x18da   :  { %v3746_v11 = vmul.f32 %v3741_v47, %v3721_v25 }
0x18db   :  { %v3722_v31 = vpop.f32.mrf.mxu0 }
0x18dc   :  { %v3723_v6 = vadd.f32 %v6203_v3, %v3722_v31  ;;  %v3751_v49 = vadd.f32 %v3746_v11, %v3721_v25 }
0x18de   :  { %v3737_v0 = vmul.f32 0.044715, %v3723_v6  ;;  %v3756_v54 = vmul.f32 0.7978846, %v3751_v49  ;;  %v3732_v35 = vmul.f32 0.5, %v3723_v6 }
0x18e0   :  { %v3742_v62 = vmul.f32 %v3737_v0, %v3723_v6  ;;  %4668 = vtanh.f32 %v3756_v54 }
0x18e2   :  { %v3747_v45 = vmul.f32 %v3742_v62, %v3723_v6 }
0x18e3   :  { %v3725_v28 = vpop.f32.mrf.mxu0 }
0x18e4   :  { %v3726_v40 = vadd.f32 %v6203_v3, %v3725_v28  ;;  %v3752_v5 = vadd.f32 %v3747_v45, %v3723_v6  ;;  %v3731_v3 = vmul.f32 0.5, %v3721_v25 }
0x18e6   :  { %v3738_v48 = vmul.f32 0.044715, %v3726_v40  ;;  %v3757_v53 = vmul.f32 0.7978846, %v3752_v5  ;;  %v4669_v18 = vpop.eup %4668  ;;  %v3733_v43 = vmul.f32 0.5, %v3726_v40 }
0x18e7   :  { %v3874_v1 = vpop.xlane.xlu0 %3873  ;;  %v3766_v24 = vadd.f32 1.0, %v4669_v18 }
0x18e8   :  { %v3743_v37 = vmul.f32 %v3738_v48, %v3726_v40  ;;  %v3875_v41 = vmul.f32 %v3874_v1, %v4819_v7  ;;  %4670 = vtanh.f32 %v3757_v53 }
0x18e9   :  { %v3771_v20 = vmul.f32 %v3766_v24, %v3731_v3 }
0x18ea   :  { %v3876_v63 = vadd.f32 1e-05, %v3875_v41  ;;  %v3748_v57 = vmul.f32 %v3743_v37, %v3726_v40 }
0x18eb   :  { %v3727_v26 = vpop.f32.mrf.mxu0 }
0x18ec   :  { %4672 = vrsqrt.f32 %v3876_v63  ;;  %v3753_v46 = vadd.f32 %v3748_v57, %v3726_v40  ;;  %vm3883_vm7 = vweird.f32 %v3876_v63 }
0x18ee   :  { %v4671_v12 = vpop.eup %4670  ;;  %v3758_v39 = vmul.f32 0.7978846, %v3753_v46 }
0x18ef   :  { %v3767_v14 = vadd.f32 1.0, %v4671_v12 }
0x18f0   :  { %4674 = vtanh.f32 %v3758_v39 }
0x18f1   :  { %v3772_v61 = vmul.f32 %v3767_v14, %v3732_v35 }
0x18f2   :  { %v4673_v56 = vpop.eup %4672 }
0x18f3   :  { %v3878_v8 = vmul.f32 %v4673_v56, %v3876_v63  ;;  %v3775_v16 = vpack.c.bf16 %v3772_v61, %v3771_v20  ;;  %vm3884_vm1 = vweird.f32 %v4673_v56 }
0x18f4   :  { %vm3885_vm9 = vmor %vm3883_vm7, %vm3884_vm1 }
0x18f5   :  { %v3879_v7 = vmul.f32 %v4673_v56, %v3878_v8  ;;  %3853 = vmatmul.bf16.gmra.mxu2 %v3775_v16 }
0x18f6   :  { %v4675_v52 = vpop.eup %4674 }
0x18f7   :  { %v3880_v51 = vmul.f32 0.5, %v3879_v7  ;;  %v3768_v4 = vadd.f32 1.0, %v4675_v52 }
0x18f9   :  { %v3881_v34 = vsub.f32 1.5, %v3880_v51  ;;  %v3773_v13 = vmul.f32 %v3768_v4, %v3733_v43 }
0x18fb   :  { %v3882_v60 = vmul.f32 %v4673_v56, %v3881_v34  ;;  %v3776_v29 = vpack.c.bf16 %v3773_v13, %v3773_v13 }
0x18fd   :  { %v3886_v23 = vsel %vm3885_vm9, %v4673_v56, %v3882_v60 }
0x18fe   :  { %v3887_v42 = vmul.f32 %v3886_v23, %v3870_v32 }
0x1900   :  { %v3889_v27 = vmul.f32 %v4339_v21, %v3887_v42 }
0x1902   :  { %v3891_v19 = vadd.f32 %v4340_v33, %v3889_v27 }
0x1904   :  { %v3892_v9 = vpack.c.bf16 %v3891_v19, %v3891_v19 }
0x1905   :  { %3856 = vmatmul.bf16.gmra.mxu2 %v3776_v29 }
0x1906   :  { %4244 = vmatmul.msk.bf16.vlgmr.msra.gmra.mxu3 %vm209_vm2, %v3892_v9 }
0x1978   :  { %v3854_v15 = vpop.f32.mrf.mxu2 }
0x1980   :  { %v3855_v58 = vpop.f32.mrf.mxu2 }
0x1988   :  { %v3857_v59 = vpop.f32.mrf.mxu2 }
0x1989   :  { %v3923_v36 = vpop.f32.mrf.mxu3 }
0x198a   :  { %v3924_v2 = vadd.f32 %v4341_v22, %v3923_v36 }
0x198c   :  { %3927 = vst [vmem:[%s6241_s3] sm:$0xff] %v3924_v2 }
0x1990   :  { %v3858_v10 = vpop.f32.mrf.mxu2 }
0x1991   :  { %v3925_v32 = vpop.f32.mrf.mxu3 }
0x1992   :  { %3932 = vsyncpa [#allocation3], 1 }
0x1993   :  { %3933 = vsyncpa [#allocation5], 1 }

</bundles_post_ra>
